<compile_context>
chip_gen: v7x
topology: tpu7x:2x2x1
jax: 0.10.0
libtpu: 0.0.40
codegen_flags: <defaults>
</compile_context>

<pallas_src>
import functools

import jax
import jax.numpy as jnp
from jax.experimental import pallas as pl
from jax.experimental.pallas import tpu as pltpu

CFG = dict(
    vocab_size=128,
    context_length=16,
    emb_dim=32,
    num_heads=4,
    n_layers=2,
    drop_rate=0.0,   # dropout with p=0.0 is the identity -> omitted from the kernel
    qkv_bias=False,
)

DP_PAD = 128         # emb_dim padded to a full 128-lane vreg width


# ---------------------------------------------------------------------------
# in-kernel helpers
# ---------------------------------------------------------------------------
def _layernorm(x, scale, shift, lane_mask, d_true, eps=1e-5):
    # x: (T, DP) with padded lanes == 0; statistics over the true d_true lanes.
    mean = jnp.sum(x, axis=-1, keepdims=True) / d_true
    xm = (x - mean) * lane_mask                      # zero out padded-lane (-mean)
    var = jnp.sum(xm * xm, axis=-1, keepdims=True) / d_true   # unbiased=False
    return scale * (xm * jax.lax.rsqrt(var + eps)) + shift


def _gelu_tanh(x):
    c = jnp.sqrt(jnp.float32(2.0 / jnp.pi))
    return 0.5 * x * (1.0 + jnp.tanh(c * (x + 0.044715 * x ** 3)))


# ---------------------------------------------------------------------------
# fused full-forward kernel (one grid step == one batch element, T tokens)
# ---------------------------------------------------------------------------
def gpt_kernel(idx_ref, tok_ref, pos_ref, lnp_ref, wqkv_ref, wo_ref, bo_ref,
               w1_ref, b1_ref, w2_ref, b2_ref, flnp_ref, wout_ref, o_ref,
               *, n_layers, num_heads_pad, head_dim, d_true, seq, vocab, ctx_len):
    T, H, hd = seq, num_heads_pad, head_dim
    DP = H * hd
    inv_scale = jnp.float32(1.0 / (float(head_dim) ** 0.5))
    bf16 = jnp.bfloat16

    # lane mask: 1.0 for the true emb_dim lanes, 0.0 for the padding lanes
    lane = jax.lax.broadcasted_iota(jnp.int32, (1, DP), 1)
    lane_mask = (lane < d_true).astype(jnp.float32)

    # ---- token + position embedding as one-hot matmuls (gather-free) ----
    idx = idx_ref[...]                                                  # (T, 1) int32
    tok_oh = (idx == jax.lax.broadcasted_iota(jnp.int32, (T, vocab), 1)).astype(bf16)
    pos_oh = (jax.lax.broadcasted_iota(jnp.int32, (T, ctx_len), 0)
              == jax.lax.broadcasted_iota(jnp.int32, (T, ctx_len), 1)).astype(bf16)
    x = (jnp.dot(tok_oh, tok_ref[...], preferred_element_type=jnp.float32)
         + jnp.dot(pos_oh, pos_ref[...], preferred_element_type=jnp.float32))  # (T, DP) f32

    # ---- additive causal mask, hoisted above the layer loop ----
    row = jax.lax.broadcasted_iota(jnp.int32, (T, T), 0)
    col = jax.lax.broadcasted_iota(jnp.int32, (T, T), 1)
    mask_add = jnp.where(col <= row, 0.0, -1e9).astype(jnp.float32)[None, :, :]  # (1,T,T)

    for l in range(n_layers):                          # static layer unroll
        lnp = lnp_ref[l]                               # (4, DP): ln1 s/b, ln2 s/b

        # --- shortcut 1: LN -> causal MHA (all heads batched) -> residual ---
        h = _layernorm(x, lnp[0:1], lnp[1:2], lane_mask, d_true)
        qkv = jnp.dot(h.astype(bf16), wqkv_ref[l],
                      preferred_element_type=jnp.float32)            # (T, 3*DP)
        q = (qkv[:, 0:DP] * inv_scale).astype(bf16).reshape(T, H, hd)
        k = qkv[:, DP:2 * DP].astype(bf16).reshape(T, H, hd)
        v = qkv[:, 2 * DP:3 * DP].astype(bf16).reshape(T, H, hd)

        s = jnp.einsum('qhd,khd->hqk', q, k,
                       preferred_element_type=jnp.float32) + mask_add  # (H, T, T)
        p = jnp.exp(s - jnp.max(s, axis=-1, keepdims=True))
        p = p * pl.reciprocal(jnp.sum(p, axis=-1, keepdims=True), approx=True)
        ctx = jnp.einsum('hqk,khd->qhd', p.astype(bf16), v,
                         preferred_element_type=jnp.float32).reshape(T, DP)
        attn = jnp.dot(ctx.astype(bf16), wo_ref[l],
                       preferred_element_type=jnp.float32) + bo_ref[l]
        x = x + attn

        # --- shortcut 2: LN -> FFN (Linear, tanh-GELU, Linear) -> residual ---
        h2 = _layernorm(x, lnp[2:3], lnp[3:4], lane_mask, d_true)
        f = jnp.dot(h2.astype(bf16), w1_ref[l],
                    preferred_element_type=jnp.float32) + b1_ref[l]
        f = _gelu_tanh(f)
        f = jnp.dot(f.astype(bf16), w2_ref[l],
                    preferred_element_type=jnp.float32) + b2_ref[l]
        x = x + f

    # ---- final LayerNorm + LM head ----
    flnp = flnp_ref[...]                               # (2, DP)
    h = _layernorm(x, flnp[0:1], flnp[1:2], lane_mask, d_true)
    o_ref[...] = jnp.dot(h.astype(bf16), wout_ref[...],
                         preferred_element_type=jnp.float32)


# ---------------------------------------------------------------------------
# wrapper
# ---------------------------------------------------------------------------
def _cost_estimate(cfg, B, T, dp):
    D = cfg["emb_dim"]; V = cfg["vocab_size"]; C = cfg["context_length"]
    L = cfg["n_layers"]; H4 = 4 * D; hd = D // cfg["num_heads"]; hp = dp // hd
    mm = (2 * T * V * dp + 2 * T * C * dp                       # embeddings
          + L * (2 * T * dp * 3 * dp + 2 * T * dp * dp
                 + 2 * T * dp * H4 + 2 * T * H4 * dp
                 + 4 * hp * T * T * hd)                         # scores + PV
          + 2 * T * dp * V)                                     # LM head
    flops = B * mm
    trans = B * (L * (hp * T * T + T * H4) + (2 * L + 1) * T)   # exp + tanh + rsqrt
    w_bf16 = (V * dp + C * dp + L * (dp * 3 * dp + dp * dp + dp * H4 + H4 * dp) + dp * V)
    w_f32 = L * (4 * dp + dp + H4 + dp) + 2 * dp
    bytes_accessed = 2 * w_bf16 + 4 * w_f32 + 4 * B * T + 4 * B * T * V
    return pl.CostEstimate(flops=int(flops), transcendentals=int(trans),
                           bytes_accessed=int(bytes_accessed))


def gpt_forward(in_idx, params, cfg):
    B, T = in_idx.shape
    D = cfg["emb_dim"]; V = cfg["vocab_size"]; C = cfg["context_length"]
    L = cfg["n_layers"]; H4 = 4 * D
    dp = params["tok_emb"].shape[1]                  # padded emb width (128)
    hd = D // cfg["num_heads"]
    hp = dp // hd                                    # padded head count; extra heads are all-zero

    idx = in_idx.reshape(B * T, 1).astype(jnp.int32)

    kernel = functools.partial(
        gpt_kernel, n_layers=L, num_heads_pad=hp, head_dim=hd,
        d_true=D, seq=T, vocab=V, ctx_len=C)

    logits = pl.pallas_call(
        kernel,
        grid=(B,),
        in_specs=[
            pl.BlockSpec((T, 1), lambda b: (b, 0)),              # token ids
            pl.BlockSpec((V, dp), lambda b: (0, 0)),             # tok_emb (padded, bf16)
            pl.BlockSpec((C, dp), lambda b: (0, 0)),             # pos_emb (padded, bf16)
            pl.BlockSpec((L, 4, dp), lambda b: (0, 0, 0)),       # per-layer LN params
            pl.BlockSpec((L, dp, 3 * dp), lambda b: (0, 0, 0)),  # fused qkv weights
            pl.BlockSpec((L, dp, dp), lambda b: (0, 0, 0)),      # out_proj weights
            pl.BlockSpec((L, 1, dp), lambda b: (0, 0, 0)),       # out_proj bias
            pl.BlockSpec((L, dp, H4), lambda b: (0, 0, 0)),      # FFN w1
            pl.BlockSpec((L, 1, H4), lambda b: (0, 0, 0)),       # FFN b1
            pl.BlockSpec((L, H4, dp), lambda b: (0, 0, 0)),      # FFN w2
            pl.BlockSpec((L, 1, dp), lambda b: (0, 0, 0)),       # FFN b2
            pl.BlockSpec((2, dp), lambda b: (0, 0)),             # final LN params
            pl.BlockSpec((dp, V), lambda b: (0, 0)),             # LM head
        ],
        out_specs=pl.BlockSpec((T, V), lambda b: (b, 0)),
        out_shape=jax.ShapeDtypeStruct((B * T, V), jnp.float32),
        compiler_params=pltpu.CompilerParams(
            dimension_semantics=("parallel",)),
        cost_estimate=_cost_estimate(cfg, B, T, dp),
    )(idx, params["tok_emb"], params["pos_emb"], params["lnp"], params["wqkv"],
      params["wo"], params["bo"], params["w1"], params["b1"], params["w2"],
      params["b2"], params["flnp"], params["out_head"])

    return logits.reshape(B, T, V)


# ---------------------------------------------------------------------------
# parameter init (deterministic, synthetic, lane-padded & pre-packed)
# ---------------------------------------------------------------------------
def init_params(key, cfg, dp=DP_PAD):
    D = cfg["emb_dim"]; V = cfg["vocab_size"]; C = cfg["context_length"]
    L = cfg["n_layers"]; H4 = 4 * D
    keys = iter(jax.random.split(key, 64))

    def w(shape):
        return 0.02 * jax.random.normal(next(keys), shape, dtype=jnp.float32)

    def pad2(a, rows, cols):
        return jnp.pad(a, ((0, rows - a.shape[0]), (0, cols - a.shape[1])))

    ones_pad = jnp.pad(jnp.ones((D,), jnp.float32), (0, dp - D))   # scale: 0 in pad lanes
    zeros_pad = jnp.zeros((dp,), jnp.float32)
    lnp_layer = jnp.stack([ones_pad, zeros_pad, ones_pad, zeros_pad])   # (4, dp)

    wqkv, wo, bo, w1, b1, w2, b2 = [], [], [], [], [], [], []
    for _ in range(L):
        wq = pad2(w((D, D)), dp, dp)
        wk = pad2(w((D, D)), dp, dp)
        wv = pad2(w((D, D)), dp, dp)
        wqkv.append(jnp.concatenate([wq, wk, wv], axis=1))     # (dp, 3*dp)
        wo.append(pad2(w((D, D)), dp, dp))
        bo.append(pad2(w((1, D)), 1, dp))
        w1.append(pad2(w((D, H4)), dp, H4))
        b1.append(w((1, H4)))
        w2.append(pad2(w((H4, D)), H4, dp))
        b2.append(pad2(w((1, D)), 1, dp))

    return dict(
        tok_emb=pad2(w((V, D)), V, dp).astype(jnp.bfloat16),
        pos_emb=pad2(w((C, D)), C, dp).astype(jnp.bfloat16),
        lnp=jnp.tile(lnp_layer[None], (L, 1, 1)),              # (L, 4, dp) f32
        wqkv=jnp.stack(wqkv).astype(jnp.bfloat16),             # (L, dp, 3*dp)
        wo=jnp.stack(wo).astype(jnp.bfloat16),                 # (L, dp, dp)
        bo=jnp.stack(bo),                                      # (L, 1, dp) f32
        w1=jnp.stack(w1).astype(jnp.bfloat16),                 # (L, dp, H4)
        b1=jnp.stack(b1),                                      # (L, 1, H4) f32
        w2=jnp.stack(w2).astype(jnp.bfloat16),                 # (L, H4, dp)
        b2=jnp.stack(b2),                                      # (L, 1, dp) f32
        flnp=jnp.stack([ones_pad, zeros_pad]),                 # (2, dp) f32
        out_head=pad2(w((D, V)), dp, V).astype(jnp.bfloat16),  # (dp, V)
    )


if __name__ == "__main__":
    key = jax.random.PRNGKey(0)
    pkey, ikey = jax.random.split(key)
    params = init_params(pkey, CFG)

    B, T = 2, 8                                     # seq_len <= context_length
    in_idx = jax.random.randint(ikey, (B, T), 0, CFG["vocab_size"], dtype=jnp.int32)

    fwd = jax.jit(lambda idx: gpt_forward(idx, params, CFG))
    logits = jax.block_until_ready(fwd(in_idx))

    assert logits.shape == (B, T, CFG["vocab_size"]), logits.shape
    assert bool(jnp.all(jnp.isfinite(logits)))
    print("KERNEL_OK")
</pallas_src>

<mosaic_0001>
module attributes {stable_mosaic.version = 11 : i64} {
  func.func @gpt_kernel(%arg0: i32, %arg1: memref<8x1xi32, #tpu.memory_space<vmem>>, %arg2: memref<128x128xbf16, #tpu.memory_space<vmem>>, %arg3: memref<16x128xbf16, #tpu.memory_space<vmem>>, %arg4: memref<2x4x128xf32, #tpu.memory_space<vmem>>, %arg5: memref<2x128x384xbf16, #tpu.memory_space<vmem>>, %arg6: memref<2x128x128xbf16, #tpu.memory_space<vmem>>, %arg7: memref<2x1x128xf32, #tpu.memory_space<vmem>>, %arg8: memref<2x128x128xbf16, #tpu.memory_space<vmem>>, %arg9: memref<2x1x128xf32, #tpu.memory_space<vmem>>, %arg10: memref<2x128x128xbf16, #tpu.memory_space<vmem>>, %arg11: memref<2x1x128xf32, #tpu.memory_space<vmem>>, %arg12: memref<2x128xf32, #tpu.memory_space<vmem>>, %arg13: memref<128x128xbf16, #tpu.memory_space<vmem>>, %arg14: memref<8x128xf32, #tpu.memory_space<vmem>>) attributes {dimension_semantics = [#tpu.dimension_semantics<parallel>], iteration_bounds = array<i64: 2>, scalar_prefetch = 0 : i64, scratch_operands = 0 : i64, tpu.core_type = #tpu.core_type<tc>, window_params = [{transform_indices = @transform_0, window_bounds = array<i64: 8, 1>}, {pipeline_mode = #tpu.pipeline_mode<synchronous>, transform_indices = @transform_1, window_bounds = array<i64: 128, 128>}, {pipeline_mode = #tpu.pipeline_mode<synchronous>, transform_indices = @transform_2, window_bounds = array<i64: 16, 128>}, {pipeline_mode = #tpu.pipeline_mode<synchronous>, transform_indices = @transform_3, window_bounds = array<i64: 2, 4, 128>}, {pipeline_mode = #tpu.pipeline_mode<synchronous>, transform_indices = @transform_4, window_bounds = array<i64: 2, 128, 384>}, {pipeline_mode = #tpu.pipeline_mode<synchronous>, transform_indices = @transform_5, window_bounds = array<i64: 2, 128, 128>}, {pipeline_mode = #tpu.pipeline_mode<synchronous>, transform_indices = @transform_6, window_bounds = array<i64: 2, 1, 128>}, {pipeline_mode = #tpu.pipeline_mode<synchronous>, transform_indices = @transform_7, window_bounds = array<i64: 2, 128, 128>}, {pipeline_mode = #tpu.pipeline_mode<synchronous>, transform_indices = @transform_8, window_bounds = array<i64: 2, 1, 128>}, {pipeline_mode = #tpu.pipeline_mode<synchronous>, transform_indices = @transform_9, window_bounds = array<i64: 2, 128, 128>}, {pipeline_mode = #tpu.pipeline_mode<synchronous>, transform_indices = @transform_10, window_bounds = array<i64: 2, 1, 128>}, {pipeline_mode = #tpu.pipeline_mode<synchronous>, transform_indices = @transform_11, window_bounds = array<i64: 2, 128>}, {pipeline_mode = #tpu.pipeline_mode<synchronous>, transform_indices = @transform_12, window_bounds = array<i64: 128, 128>}, {transform_indices = @transform_13, window_bounds = array<i64: 8, 128>}]} {
    %0 = tpu.iota {dimensions = array<i32: 1>} : vector<1x128xi32>
    %c32_i32 = arith.constant 32 : i32
    %1 = vector.broadcast %c32_i32 : i32 to vector<1x128xi32>
    %2 = arith.cmpi slt, %0, %1 : vector<1x128xi32>
    %3 = arith.extui %2 : vector<1x128xi1> to vector<1x128xi32>
    %4 = arith.sitofp %3 : vector<1x128xi32> to vector<1x128xf32>
    %c0 = arith.constant 0 : index
    %c0_0 = arith.constant 0 : index
    %5 = vector.load %arg1[%c0, %c0_0] : memref<8x1xi32, #tpu.memory_space<vmem>>, vector<8x1xi32>
    %6 = tpu.iota {dimensions = array<i32: 1>} : vector<8x128xi32>
    %7 = vector.broadcast %5 : vector<8x1xi32> to vector<8x128xi32>
    %8 = arith.cmpi eq, %7, %6 : vector<8x128xi32>
    %9 = arith.extui %8 : vector<8x128xi1> to vector<8x128xi32>
    %10 = arith.sitofp %9 : vector<8x128xi32> to vector<8x128xf32>
    %11 = arith.truncf %10 : vector<8x128xf32> to vector<8x128xbf16>
    %12 = tpu.iota {dimensions = array<i32: 0>} : vector<8x16xi32>
    %13 = tpu.iota {dimensions = array<i32: 1>} : vector<8x16xi32>
    %14 = arith.cmpi eq, %12, %13 : vector<8x16xi32>
    %15 = arith.extui %14 : vector<8x16xi1> to vector<8x16xi32>
    %16 = arith.sitofp %15 : vector<8x16xi32> to vector<8x16xf32>
    %17 = arith.truncf %16 : vector<8x16xf32> to vector<8x16xbf16>
    %c0_1 = arith.constant 0 : index
    %c0_2 = arith.constant 0 : index
    %18 = vector.load %arg2[%c0_1, %c0_2] : memref<128x128xbf16, #tpu.memory_space<vmem>>, vector<128x128xbf16>
    %cst = arith.constant dense<0.000000e+00> : vector<8x128xf32>
    %19 = tpu.matmul %11, %18, %cst {dimension_numbers = #tpu.dot_dimension_numbers<[1], [0], [0], [1], [0, 0, 1, 1], [], []>} : vector<8x128xbf16>, vector<128x128xbf16>, vector<8x128xf32> -> vector<8x128xf32>
    %c0_3 = arith.constant 0 : index
    %c0_4 = arith.constant 0 : index
    %20 = vector.load %arg3[%c0_3, %c0_4] : memref<16x128xbf16, #tpu.memory_space<vmem>>, vector<16x128xbf16>
    %cst_5 = arith.constant dense<0.000000e+00> : vector<8x128xf32>
    %21 = tpu.matmul %17, %20, %cst_5 {dimension_numbers = #tpu.dot_dimension_numbers<[1], [0], [0], [1], [0, 0, 1, 1], [], []>} : vector<8x16xbf16>, vector<16x128xbf16>, vector<8x128xf32> -> vector<8x128xf32>
    %22 = arith.addf %19, %21 : vector<8x128xf32>
    %23 = tpu.iota {dimensions = array<i32: 0>} : vector<8x8xi32>
    %24 = tpu.iota {dimensions = array<i32: 1>} : vector<8x8xi32>
    %25 = arith.cmpi sle, %24, %23 : vector<8x8xi32>
    %cst_6 = arith.constant 0.000000e+00 : f32
    %cst_7 = arith.constant -1.000000e+09 : f32
    %26 = vector.broadcast %cst_6 : f32 to vector<8x8xf32>
    %27 = vector.broadcast %cst_7 : f32 to vector<8x8xf32>
    %28 = arith.select %25, %26, %27 : vector<8x8xi1>, vector<8x8xf32>
    %29 = vector.shape_cast %28 : vector<8x8xf32> to vector<1x8x8xf32>
    %c0_8 = arith.constant 0 : index
    %c0_9 = arith.constant 0 : index
    %c0_10 = arith.constant 0 : index
    %30 = vector.load %arg4[%c0_8, %c0_9, %c0_10] : memref<2x4x128xf32, #tpu.memory_space<vmem>>, vector<1x4x128xf32>
    %31 = vector.shape_cast %30 : vector<1x4x128xf32> to vector<4x128xf32>
    %32 = vector.extract_strided_slice %31 {offsets = [0, 0], sizes = [1, 128], strides = [1, 1]} : vector<4x128xf32> to vector<1x128xf32>
    %33 = vector.extract_strided_slice %31 {offsets = [1, 0], sizes = [1, 128], strides = [1, 1]} : vector<4x128xf32> to vector<1x128xf32>
    %cst_11 = arith.constant dense<0.000000e+00> : vector<8xf32>
    %34 = vector.multi_reduction <add>, %22, %cst_11 [1] : vector<8x128xf32> to vector<8xf32>
    %35 = vector.shape_cast %34 : vector<8xf32> to vector<8x1xf32>
    %cst_12 = arith.constant 3.200000e+01 : f32
    %36 = vector.broadcast %cst_12 : f32 to vector<8x1xf32>
    %37 = arith.divf %35, %36 : vector<8x1xf32>
    %38 = vector.broadcast %37 : vector<8x1xf32> to vector<8x128xf32>
    %39 = arith.subf %22, %38 : vector<8x128xf32>
    %40 = vector.broadcast %4 : vector<1x128xf32> to vector<8x128xf32>
    %41 = arith.mulf %39, %40 : vector<8x128xf32>
    %42 = arith.mulf %41, %41 : vector<8x128xf32>
    %cst_13 = arith.constant dense<0.000000e+00> : vector<8xf32>
    %43 = vector.multi_reduction <add>, %42, %cst_13 [1] : vector<8x128xf32> to vector<8xf32>
    %44 = vector.shape_cast %43 : vector<8xf32> to vector<8x1xf32>
    %cst_14 = arith.constant 3.200000e+01 : f32
    %45 = vector.broadcast %cst_14 : f32 to vector<8x1xf32>
    %46 = arith.divf %44, %45 : vector<8x1xf32>
    %cst_15 = arith.constant 9.99999974E-6 : f32
    %47 = vector.broadcast %cst_15 : f32 to vector<8x1xf32>
    %48 = arith.addf %46, %47 : vector<8x1xf32>
    %49 = math.rsqrt %48 : vector<8x1xf32>
    %50 = vector.broadcast %49 : vector<8x1xf32> to vector<8x128xf32>
    %51 = arith.mulf %41, %50 : vector<8x128xf32>
    %52 = vector.broadcast %32 : vector<1x128xf32> to vector<8x128xf32>
    %53 = arith.mulf %52, %51 : vector<8x128xf32>
    %54 = vector.broadcast %33 : vector<1x128xf32> to vector<8x128xf32>
    %55 = arith.addf %53, %54 : vector<8x128xf32>
    %56 = arith.truncf %55 : vector<8x128xf32> to vector<8x128xbf16>
    %c0_16 = arith.constant 0 : index
    %c0_17 = arith.constant 0 : index
    %c0_18 = arith.constant 0 : index
    %57 = vector.load %arg5[%c0_16, %c0_17, %c0_18] : memref<2x128x384xbf16, #tpu.memory_space<vmem>>, vector<1x128x384xbf16>
    %58 = vector.shape_cast %57 : vector<1x128x384xbf16> to vector<128x384xbf16>
    %cst_19 = arith.constant dense<0.000000e+00> : vector<8x384xf32>
    %59 = tpu.matmul %56, %58, %cst_19 {dimension_numbers = #tpu.dot_dimension_numbers<[1], [0], [0], [1], [0, 0, 1, 1], [], []>} : vector<8x128xbf16>, vector<128x384xbf16>, vector<8x384xf32> -> vector<8x384xf32>
    %60 = vector.extract_strided_slice %59 {offsets = [0, 0], sizes = [8, 128], strides = [1, 1]} : vector<8x384xf32> to vector<8x128xf32>
    %cst_20 = arith.constant 0.353553385 : f32
    %61 = vector.broadcast %cst_20 : f32 to vector<8x128xf32>
    %62 = arith.mulf %60, %61 : vector<8x128xf32>
    %63 = arith.truncf %62 : vector<8x128xf32> to vector<8x128xbf16>
    %64 = vector.shape_cast %63 : vector<8x128xbf16> to vector<8x16x8xbf16>
    %65 = vector.extract_strided_slice %59 {offsets = [0, 128], sizes = [8, 128], strides = [1, 1]} : vector<8x384xf32> to vector<8x128xf32>
    %66 = arith.truncf %65 : vector<8x128xf32> to vector<8x128xbf16>
    %67 = vector.shape_cast %66 : vector<8x128xbf16> to vector<8x16x8xbf16>
    %68 = vector.extract_strided_slice %59 {offsets = [0, 256], sizes = [8, 128], strides = [1, 1]} : vector<8x384xf32> to vector<8x128xf32>
    %69 = arith.truncf %68 : vector<8x128xf32> to vector<8x128xbf16>
    %70 = vector.shape_cast %69 : vector<8x128xbf16> to vector<8x16x8xbf16>
    "tpu.trace_start"() <{level = 10 : i32, message = "qhd,khd->hqk"}> : () -> ()
    %cst_21 = arith.constant dense<0.000000e+00> : vector<16x8x8xf32>
    %71 = tpu.matmul %64, %67, %cst_21 {dimension_numbers = #tpu.dot_dimension_numbers<[2], [2], [0], [0], [0, 1, 0, 0, 1, 0], [1], [1]>} : vector<8x16x8xbf16>, vector<8x16x8xbf16>, vector<16x8x8xf32> -> vector<16x8x8xf32>
    "tpu.trace_stop"() : () -> ()
    %72 = vector.broadcast %29 : vector<1x8x8xf32> to vector<16x8x8xf32>
    %73 = arith.addf %71, %72 : vector<16x8x8xf32>
    %cst_22 = arith.constant dense<0xFF800000> : vector<16x8xf32>
    %74 = vector.multi_reduction <maximumf>, %73, %cst_22 [2] : vector<16x8x8xf32> to vector<16x8xf32>
    %75 = vector.shape_cast %74 : vector<16x8xf32> to vector<16x8x1xf32>
    %76 = vector.broadcast %75 : vector<16x8x1xf32> to vector<16x8x8xf32>
    %77 = arith.subf %73, %76 : vector<16x8x8xf32>
    %78 = math.exp %77 : vector<16x8x8xf32>
    %cst_23 = arith.constant dense<0.000000e+00> : vector<16x8xf32>
    %79 = vector.multi_reduction <add>, %78, %cst_23 [2] : vector<16x8x8xf32> to vector<16x8xf32>
    %80 = vector.shape_cast %79 : vector<16x8xf32> to vector<16x8x1xf32>
    %81 = tpu.reciprocal %80 {approx = true} : vector<16x8x1xf32> -> vector<16x8x1xf32>
    %82 = vector.broadcast %81 : vector<16x8x1xf32> to vector<16x8x8xf32>
    %83 = arith.mulf %78, %82 : vector<16x8x8xf32>
    %84 = arith.truncf %83 : vector<16x8x8xf32> to vector<16x8x8xbf16>
    "tpu.trace_start"() <{level = 10 : i32, message = "hqk,khd->qhd"}> : () -> ()
    %cst_24 = arith.constant dense<0.000000e+00> : vector<16x8x8xf32>
    %85 = tpu.matmul %70, %84, %cst_24 {dimension_numbers = #tpu.dot_dimension_numbers<[0], [2], [2], [1], [0, 1, 0, 2, 1, 1], [1], [0]>} : vector<8x16x8xbf16>, vector<16x8x8xbf16>, vector<16x8x8xf32> -> vector<16x8x8xf32>
    %86 = tpu.transpose %85, [2, 0, 1] : vector<16x8x8xf32> -> vector<8x16x8xf32>
    "tpu.trace_stop"() : () -> ()
    %87 = vector.shape_cast %86 : vector<8x16x8xf32> to vector<8x128xf32>
    %88 = arith.truncf %87 : vector<8x128xf32> to vector<8x128xbf16>
    %c0_25 = arith.constant 0 : index
    %c0_26 = arith.constant 0 : index
    %c0_27 = arith.constant 0 : index
    %89 = vector.load %arg6[%c0_25, %c0_26, %c0_27] : memref<2x128x128xbf16, #tpu.memory_space<vmem>>, vector<1x128x128xbf16>
    %90 = vector.shape_cast %89 : vector<1x128x128xbf16> to vector<128x128xbf16>
    %cst_28 = arith.constant dense<0.000000e+00> : vector<8x128xf32>
    %91 = tpu.matmul %88, %90, %cst_28 {dimension_numbers = #tpu.dot_dimension_numbers<[1], [0], [0], [1], [0, 0, 1, 1], [], []>} : vector<8x128xbf16>, vector<128x128xbf16>, vector<8x128xf32> -> vector<8x128xf32>
    %c0_29 = arith.constant 0 : index
    %c0_30 = arith.constant 0 : index
    %c0_31 = arith.constant 0 : index
    %92 = vector.load %arg7[%c0_29, %c0_30, %c0_31] : memref<2x1x128xf32, #tpu.memory_space<vmem>>, vector<1x1x128xf32>
    %93 = vector.shape_cast %92 : vector<1x1x128xf32> to vector<1x128xf32>
    %94 = vector.broadcast %93 : vector<1x128xf32> to vector<8x128xf32>
    %95 = arith.addf %91, %94 : vector<8x128xf32>
    %96 = arith.addf %22, %95 : vector<8x128xf32>
    %97 = vector.extract_strided_slice %31 {offsets = [2, 0], sizes = [1, 128], strides = [1, 1]} : vector<4x128xf32> to vector<1x128xf32>
    %98 = vector.extract_strided_slice %31 {offsets = [3, 0], sizes = [1, 128], strides = [1, 1]} : vector<4x128xf32> to vector<1x128xf32>
    %cst_32 = arith.constant dense<0.000000e+00> : vector<8xf32>
    %99 = vector.multi_reduction <add>, %96, %cst_32 [1] : vector<8x128xf32> to vector<8xf32>
    %100 = vector.shape_cast %99 : vector<8xf32> to vector<8x1xf32>
    %cst_33 = arith.constant 3.200000e+01 : f32
    %101 = vector.broadcast %cst_33 : f32 to vector<8x1xf32>
    %102 = arith.divf %100, %101 : vector<8x1xf32>
    %103 = vector.broadcast %102 : vector<8x1xf32> to vector<8x128xf32>
    %104 = arith.subf %96, %103 : vector<8x128xf32>
    %105 = vector.broadcast %4 : vector<1x128xf32> to vector<8x128xf32>
    %106 = arith.mulf %104, %105 : vector<8x128xf32>
    %107 = arith.mulf %106, %106 : vector<8x128xf32>
    %cst_34 = arith.constant dense<0.000000e+00> : vector<8xf32>
    %108 = vector.multi_reduction <add>, %107, %cst_34 [1] : vector<8x128xf32> to vector<8xf32>
    %109 = vector.shape_cast %108 : vector<8xf32> to vector<8x1xf32>
    %cst_35 = arith.constant 3.200000e+01 : f32
    %110 = vector.broadcast %cst_35 : f32 to vector<8x1xf32>
    %111 = arith.divf %109, %110 : vector<8x1xf32>
    %cst_36 = arith.constant 9.99999974E-6 : f32
    %112 = vector.broadcast %cst_36 : f32 to vector<8x1xf32>
    %113 = arith.addf %111, %112 : vector<8x1xf32>
    %114 = math.rsqrt %113 : vector<8x1xf32>
    %115 = vector.broadcast %114 : vector<8x1xf32> to vector<8x128xf32>
    %116 = arith.mulf %106, %115 : vector<8x128xf32>
    %117 = vector.broadcast %97 : vector<1x128xf32> to vector<8x128xf32>
    %118 = arith.mulf %117, %116 : vector<8x128xf32>
    %119 = vector.broadcast %98 : vector<1x128xf32> to vector<8x128xf32>
    %120 = arith.addf %118, %119 : vector<8x128xf32>
    %121 = arith.truncf %120 : vector<8x128xf32> to vector<8x128xbf16>
    %c0_37 = arith.constant 0 : index
    %c0_38 = arith.constant 0 : index
    %c0_39 = arith.constant 0 : index
    %122 = vector.load %arg8[%c0_37, %c0_38, %c0_39] : memref<2x128x128xbf16, #tpu.memory_space<vmem>>, vector<1x128x128xbf16>
    %123 = vector.shape_cast %122 : vector<1x128x128xbf16> to vector<128x128xbf16>
    %cst_40 = arith.constant dense<0.000000e+00> : vector<8x128xf32>
    %124 = tpu.matmul %121, %123, %cst_40 {dimension_numbers = #tpu.dot_dimension_numbers<[1], [0], [0], [1], [0, 0, 1, 1], [], []>} : vector<8x128xbf16>, vector<128x128xbf16>, vector<8x128xf32> -> vector<8x128xf32>
    %c0_41 = arith.constant 0 : index
    %c0_42 = arith.constant 0 : index
    %c0_43 = arith.constant 0 : index
    %125 = vector.load %arg9[%c0_41, %c0_42, %c0_43] : memref<2x1x128xf32, #tpu.memory_space<vmem>>, vector<1x1x128xf32>
    %126 = vector.shape_cast %125 : vector<1x1x128xf32> to vector<1x128xf32>
    %127 = vector.broadcast %126 : vector<1x128xf32> to vector<8x128xf32>
    %128 = arith.addf %124, %127 : vector<8x128xf32>
    %cst_44 = arith.constant 0.636619746 : f32
    %129 = math.sqrt %cst_44 : f32
    %cst_45 = arith.constant 5.000000e-01 : f32
    %130 = vector.broadcast %cst_45 : f32 to vector<8x128xf32>
    %131 = arith.mulf %130, %128 : vector<8x128xf32>
    %132 = arith.mulf %128, %128 : vector<8x128xf32>
    %133 = arith.mulf %128, %132 : vector<8x128xf32>
    %cst_46 = arith.constant 4.471500e-02 : f32
    %134 = vector.broadcast %cst_46 : f32 to vector<8x128xf32>
    %135 = arith.mulf %134, %133 : vector<8x128xf32>
    %136 = arith.addf %128, %135 : vector<8x128xf32>
    %137 = vector.broadcast %129 : f32 to vector<8x128xf32>
    %138 = arith.mulf %137, %136 : vector<8x128xf32>
    %139 = math.tanh %138 : vector<8x128xf32>
    %cst_47 = arith.constant 1.000000e+00 : f32
    %140 = vector.broadcast %cst_47 : f32 to vector<8x128xf32>
    %141 = arith.addf %140, %139 : vector<8x128xf32>
    %142 = arith.mulf %131, %141 : vector<8x128xf32>
    %143 = arith.truncf %142 : vector<8x128xf32> to vector<8x128xbf16>
    %c0_48 = arith.constant 0 : index
    %c0_49 = arith.constant 0 : index
    %c0_50 = arith.constant 0 : index
    %144 = vector.load %arg10[%c0_48, %c0_49, %c0_50] : memref<2x128x128xbf16, #tpu.memory_space<vmem>>, vector<1x128x128xbf16>
    %145 = vector.shape_cast %144 : vector<1x128x128xbf16> to vector<128x128xbf16>
    %cst_51 = arith.constant dense<0.000000e+00> : vector<8x128xf32>
    %146 = tpu.matmul %143, %145, %cst_51 {dimension_numbers = #tpu.dot_dimension_numbers<[1], [0], [0], [1], [0, 0, 1, 1], [], []>} : vector<8x128xbf16>, vector<128x128xbf16>, vector<8x128xf32> -> vector<8x128xf32>
    %c0_52 = arith.constant 0 : index
    %c0_53 = arith.constant 0 : index
    %c0_54 = arith.constant 0 : index
    %147 = vector.load %arg11[%c0_52, %c0_53, %c0_54] : memref<2x1x128xf32, #tpu.memory_space<vmem>>, vector<1x1x128xf32>
    %148 = vector.shape_cast %147 : vector<1x1x128xf32> to vector<1x128xf32>
    %149 = vector.broadcast %148 : vector<1x128xf32> to vector<8x128xf32>
    %150 = arith.addf %146, %149 : vector<8x128xf32>
    %151 = arith.addf %96, %150 : vector<8x128xf32>
    %c1 = arith.constant 1 : index
    %c0_55 = arith.constant 0 : index
    %c0_56 = arith.constant 0 : index
    %152 = vector.load %arg4[%c1, %c0_55, %c0_56] : memref<2x4x128xf32, #tpu.memory_space<vmem>>, vector<1x4x128xf32>
    %153 = vector.shape_cast %152 : vector<1x4x128xf32> to vector<4x128xf32>
    %154 = vector.extract_strided_slice %153 {offsets = [0, 0], sizes = [1, 128], strides = [1, 1]} : vector<4x128xf32> to vector<1x128xf32>
    %155 = vector.extract_strided_slice %153 {offsets = [1, 0], sizes = [1, 128], strides = [1, 1]} : vector<4x128xf32> to vector<1x128xf32>
    %cst_57 = arith.constant dense<0.000000e+00> : vector<8xf32>
    %156 = vector.multi_reduction <add>, %151, %cst_57 [1] : vector<8x128xf32> to vector<8xf32>
    %157 = vector.shape_cast %156 : vector<8xf32> to vector<8x1xf32>
    %cst_58 = arith.constant 3.200000e+01 : f32
    %158 = vector.broadcast %cst_58 : f32 to vector<8x1xf32>
    %159 = arith.divf %157, %158 : vector<8x1xf32>
    %160 = vector.broadcast %159 : vector<8x1xf32> to vector<8x128xf32>
    %161 = arith.subf %151, %160 : vector<8x128xf32>
    %162 = vector.broadcast %4 : vector<1x128xf32> to vector<8x128xf32>
    %163 = arith.mulf %161, %162 : vector<8x128xf32>
    %164 = arith.mulf %163, %163 : vector<8x128xf32>
    %cst_59 = arith.constant dense<0.000000e+00> : vector<8xf32>
    %165 = vector.multi_reduction <add>, %164, %cst_59 [1] : vector<8x128xf32> to vector<8xf32>
    %166 = vector.shape_cast %165 : vector<8xf32> to vector<8x1xf32>
    %cst_60 = arith.constant 3.200000e+01 : f32
    %167 = vector.broadcast %cst_60 : f32 to vector<8x1xf32>
    %168 = arith.divf %166, %167 : vector<8x1xf32>
    %cst_61 = arith.constant 9.99999974E-6 : f32
    %169 = vector.broadcast %cst_61 : f32 to vector<8x1xf32>
    %170 = arith.addf %168, %169 : vector<8x1xf32>
    %171 = math.rsqrt %170 : vector<8x1xf32>
    %172 = vector.broadcast %171 : vector<8x1xf32> to vector<8x128xf32>
    %173 = arith.mulf %163, %172 : vector<8x128xf32>
    %174 = vector.broadcast %154 : vector<1x128xf32> to vector<8x128xf32>
    %175 = arith.mulf %174, %173 : vector<8x128xf32>
    %176 = vector.broadcast %155 : vector<1x128xf32> to vector<8x128xf32>
    %177 = arith.addf %175, %176 : vector<8x128xf32>
    %178 = arith.truncf %177 : vector<8x128xf32> to vector<8x128xbf16>
    %c1_62 = arith.constant 1 : index
    %c0_63 = arith.constant 0 : index
    %c0_64 = arith.constant 0 : index
    %179 = vector.load %arg5[%c1_62, %c0_63, %c0_64] : memref<2x128x384xbf16, #tpu.memory_space<vmem>>, vector<1x128x384xbf16>
    %180 = vector.shape_cast %179 : vector<1x128x384xbf16> to vector<128x384xbf16>
    %cst_65 = arith.constant dense<0.000000e+00> : vector<8x384xf32>
    %181 = tpu.matmul %178, %180, %cst_65 {dimension_numbers = #tpu.dot_dimension_numbers<[1], [0], [0], [1], [0, 0, 1, 1], [], []>} : vector<8x128xbf16>, vector<128x384xbf16>, vector<8x384xf32> -> vector<8x384xf32>
    %182 = vector.extract_strided_slice %181 {offsets = [0, 0], sizes = [8, 128], strides = [1, 1]} : vector<8x384xf32> to vector<8x128xf32>
    %cst_66 = arith.constant 0.353553385 : f32
    %183 = vector.broadcast %cst_66 : f32 to vector<8x128xf32>
    %184 = arith.mulf %182, %183 : vector<8x128xf32>
    %185 = arith.truncf %184 : vector<8x128xf32> to vector<8x128xbf16>
    %186 = vector.shape_cast %185 : vector<8x128xbf16> to vector<8x16x8xbf16>
    %187 = vector.extract_strided_slice %181 {offsets = [0, 128], sizes = [8, 128], strides = [1, 1]} : vector<8x384xf32> to vector<8x128xf32>
    %188 = arith.truncf %187 : vector<8x128xf32> to vector<8x128xbf16>
    %189 = vector.shape_cast %188 : vector<8x128xbf16> to vector<8x16x8xbf16>
    %190 = vector.extract_strided_slice %181 {offsets = [0, 256], sizes = [8, 128], strides = [1, 1]} : vector<8x384xf32> to vector<8x128xf32>
    %191 = arith.truncf %190 : vector<8x128xf32> to vector<8x128xbf16>
    %192 = vector.shape_cast %191 : vector<8x128xbf16> to vector<8x16x8xbf16>
    "tpu.trace_start"() <{level = 10 : i32, message = "qhd,khd->hqk"}> : () -> ()
    %cst_67 = arith.constant dense<0.000000e+00> : vector<16x8x8xf32>
    %193 = tpu.matmul %186, %189, %cst_67 {dimension_numbers = #tpu.dot_dimension_numbers<[2], [2], [0], [0], [0, 1, 0, 0, 1, 0], [1], [1]>} : vector<8x16x8xbf16>, vector<8x16x8xbf16>, vector<16x8x8xf32> -> vector<16x8x8xf32>
    "tpu.trace_stop"() : () -> ()
    %194 = vector.broadcast %29 : vector<1x8x8xf32> to vector<16x8x8xf32>
    %195 = arith.addf %193, %194 : vector<16x8x8xf32>
    %cst_68 = arith.constant dense<0xFF800000> : vector<16x8xf32>
    %196 = vector.multi_reduction <maximumf>, %195, %cst_68 [2] : vector<16x8x8xf32> to vector<16x8xf32>
    %197 = vector.shape_cast %196 : vector<16x8xf32> to vector<16x8x1xf32>
    %198 = vector.broadcast %197 : vector<16x8x1xf32> to vector<16x8x8xf32>
    %199 = arith.subf %195, %198 : vector<16x8x8xf32>
    %200 = math.exp %199 : vector<16x8x8xf32>
    %cst_69 = arith.constant dense<0.000000e+00> : vector<16x8xf32>
    %201 = vector.multi_reduction <add>, %200, %cst_69 [2] : vector<16x8x8xf32> to vector<16x8xf32>
    %202 = vector.shape_cast %201 : vector<16x8xf32> to vector<16x8x1xf32>
    %203 = tpu.reciprocal %202 {approx = true} : vector<16x8x1xf32> -> vector<16x8x1xf32>
    %204 = vector.broadcast %203 : vector<16x8x1xf32> to vector<16x8x8xf32>
    %205 = arith.mulf %200, %204 : vector<16x8x8xf32>
    %206 = arith.truncf %205 : vector<16x8x8xf32> to vector<16x8x8xbf16>
    "tpu.trace_start"() <{level = 10 : i32, message = "hqk,khd->qhd"}> : () -> ()
    %cst_70 = arith.constant dense<0.000000e+00> : vector<16x8x8xf32>
    %207 = tpu.matmul %192, %206, %cst_70 {dimension_numbers = #tpu.dot_dimension_numbers<[0], [2], [2], [1], [0, 1, 0, 2, 1, 1], [1], [0]>} : vector<8x16x8xbf16>, vector<16x8x8xbf16>, vector<16x8x8xf32> -> vector<16x8x8xf32>
    %208 = tpu.transpose %207, [2, 0, 1] : vector<16x8x8xf32> -> vector<8x16x8xf32>
    "tpu.trace_stop"() : () -> ()
    %209 = vector.shape_cast %208 : vector<8x16x8xf32> to vector<8x128xf32>
    %210 = arith.truncf %209 : vector<8x128xf32> to vector<8x128xbf16>
    %c1_71 = arith.constant 1 : index
    %c0_72 = arith.constant 0 : index
    %c0_73 = arith.constant 0 : index
    %211 = vector.load %arg6[%c1_71, %c0_72, %c0_73] : memref<2x128x128xbf16, #tpu.memory_space<vmem>>, vector<1x128x128xbf16>
    %212 = vector.shape_cast %211 : vector<1x128x128xbf16> to vector<128x128xbf16>
    %cst_74 = arith.constant dense<0.000000e+00> : vector<8x128xf32>
    %213 = tpu.matmul %210, %212, %cst_74 {dimension_numbers = #tpu.dot_dimension_numbers<[1], [0], [0], [1], [0, 0, 1, 1], [], []>} : vector<8x128xbf16>, vector<128x128xbf16>, vector<8x128xf32> -> vector<8x128xf32>
    %c1_75 = arith.constant 1 : index
    %c0_76 = arith.constant 0 : index
    %c0_77 = arith.constant 0 : index
    %214 = vector.load %arg7[%c1_75, %c0_76, %c0_77] : memref<2x1x128xf32, #tpu.memory_space<vmem>>, vector<1x1x128xf32>
    %215 = vector.shape_cast %214 : vector<1x1x128xf32> to vector<1x128xf32>
    %216 = vector.broadcast %215 : vector<1x128xf32> to vector<8x128xf32>
    %217 = arith.addf %213, %216 : vector<8x128xf32>
    %218 = arith.addf %151, %217 : vector<8x128xf32>
    %219 = vector.extract_strided_slice %153 {offsets = [2, 0], sizes = [1, 128], strides = [1, 1]} : vector<4x128xf32> to vector<1x128xf32>
    %220 = vector.extract_strided_slice %153 {offsets = [3, 0], sizes = [1, 128], strides = [1, 1]} : vector<4x128xf32> to vector<1x128xf32>
    %cst_78 = arith.constant dense<0.000000e+00> : vector<8xf32>
    %221 = vector.multi_reduction <add>, %218, %cst_78 [1] : vector<8x128xf32> to vector<8xf32>
    %222 = vector.shape_cast %221 : vector<8xf32> to vector<8x1xf32>
    %cst_79 = arith.constant 3.200000e+01 : f32
    %223 = vector.broadcast %cst_79 : f32 to vector<8x1xf32>
    %224 = arith.divf %222, %223 : vector<8x1xf32>
    %225 = vector.broadcast %224 : vector<8x1xf32> to vector<8x128xf32>
    %226 = arith.subf %218, %225 : vector<8x128xf32>
    %227 = vector.broadcast %4 : vector<1x128xf32> to vector<8x128xf32>
    %228 = arith.mulf %226, %227 : vector<8x128xf32>
    %229 = arith.mulf %228, %228 : vector<8x128xf32>
    %cst_80 = arith.constant dense<0.000000e+00> : vector<8xf32>
    %230 = vector.multi_reduction <add>, %229, %cst_80 [1] : vector<8x128xf32> to vector<8xf32>
    %231 = vector.shape_cast %230 : vector<8xf32> to vector<8x1xf32>
    %cst_81 = arith.constant 3.200000e+01 : f32
    %232 = vector.broadcast %cst_81 : f32 to vector<8x1xf32>
    %233 = arith.divf %231, %232 : vector<8x1xf32>
    %cst_82 = arith.constant 9.99999974E-6 : f32
    %234 = vector.broadcast %cst_82 : f32 to vector<8x1xf32>
    %235 = arith.addf %233, %234 : vector<8x1xf32>
    %236 = math.rsqrt %235 : vector<8x1xf32>
    %237 = vector.broadcast %236 : vector<8x1xf32> to vector<8x128xf32>
    %238 = arith.mulf %228, %237 : vector<8x128xf32>
    %239 = vector.broadcast %219 : vector<1x128xf32> to vector<8x128xf32>
    %240 = arith.mulf %239, %238 : vector<8x128xf32>
    %241 = vector.broadcast %220 : vector<1x128xf32> to vector<8x128xf32>
    %242 = arith.addf %240, %241 : vector<8x128xf32>
    %243 = arith.truncf %242 : vector<8x128xf32> to vector<8x128xbf16>
    %c1_83 = arith.constant 1 : index
    %c0_84 = arith.constant 0 : index
    %c0_85 = arith.constant 0 : index
    %244 = vector.load %arg8[%c1_83, %c0_84, %c0_85] : memref<2x128x128xbf16, #tpu.memory_space<vmem>>, vector<1x128x128xbf16>
    %245 = vector.shape_cast %244 : vector<1x128x128xbf16> to vector<128x128xbf16>
    %cst_86 = arith.constant dense<0.000000e+00> : vector<8x128xf32>
    %246 = tpu.matmul %243, %245, %cst_86 {dimension_numbers = #tpu.dot_dimension_numbers<[1], [0], [0], [1], [0, 0, 1, 1], [], []>} : vector<8x128xbf16>, vector<128x128xbf16>, vector<8x128xf32> -> vector<8x128xf32>
    %c1_87 = arith.constant 1 : index
    %c0_88 = arith.constant 0 : index
    %c0_89 = arith.constant 0 : index
    %247 = vector.load %arg9[%c1_87, %c0_88, %c0_89] : memref<2x1x128xf32, #tpu.memory_space<vmem>>, vector<1x1x128xf32>
    %248 = vector.shape_cast %247 : vector<1x1x128xf32> to vector<1x128xf32>
    %249 = vector.broadcast %248 : vector<1x128xf32> to vector<8x128xf32>
    %250 = arith.addf %246, %249 : vector<8x128xf32>
    %cst_90 = arith.constant 0.636619746 : f32
    %251 = math.sqrt %cst_90 : f32
    %cst_91 = arith.constant 5.000000e-01 : f32
    %252 = vector.broadcast %cst_91 : f32 to vector<8x128xf32>
    %253 = arith.mulf %252, %250 : vector<8x128xf32>
    %254 = arith.mulf %250, %250 : vector<8x128xf32>
    %255 = arith.mulf %250, %254 : vector<8x128xf32>
    %cst_92 = arith.constant 4.471500e-02 : f32
    %256 = vector.broadcast %cst_92 : f32 to vector<8x128xf32>
    %257 = arith.mulf %256, %255 : vector<8x128xf32>
    %258 = arith.addf %250, %257 : vector<8x128xf32>
    %259 = vector.broadcast %251 : f32 to vector<8x128xf32>
    %260 = arith.mulf %259, %258 : vector<8x128xf32>
    %261 = math.tanh %260 : vector<8x128xf32>
    %cst_93 = arith.constant 1.000000e+00 : f32
    %262 = vector.broadcast %cst_93 : f32 to vector<8x128xf32>
    %263 = arith.addf %262, %261 : vector<8x128xf32>
    %264 = arith.mulf %253, %263 : vector<8x128xf32>
    %265 = arith.truncf %264 : vector<8x128xf32> to vector<8x128xbf16>
    %c1_94 = arith.constant 1 : index
    %c0_95 = arith.constant 0 : index
    %c0_96 = arith.constant 0 : index
    %266 = vector.load %arg10[%c1_94, %c0_95, %c0_96] : memref<2x128x128xbf16, #tpu.memory_space<vmem>>, vector<1x128x128xbf16>
    %267 = vector.shape_cast %266 : vector<1x128x128xbf16> to vector<128x128xbf16>
    %cst_97 = arith.constant dense<0.000000e+00> : vector<8x128xf32>
    %268 = tpu.matmul %265, %267, %cst_97 {dimension_numbers = #tpu.dot_dimension_numbers<[1], [0], [0], [1], [0, 0, 1, 1], [], []>} : vector<8x128xbf16>, vector<128x128xbf16>, vector<8x128xf32> -> vector<8x128xf32>
    %c1_98 = arith.constant 1 : index
    %c0_99 = arith.constant 0 : index
    %c0_100 = arith.constant 0 : index
    %269 = vector.load %arg11[%c1_98, %c0_99, %c0_100] : memref<2x1x128xf32, #tpu.memory_space<vmem>>, vector<1x1x128xf32>
    %270 = vector.shape_cast %269 : vector<1x1x128xf32> to vector<1x128xf32>
    %271 = vector.broadcast %270 : vector<1x128xf32> to vector<8x128xf32>
    %272 = arith.addf %268, %271 : vector<8x128xf32>
    %273 = arith.addf %218, %272 : vector<8x128xf32>
    %c0_101 = arith.constant 0 : index
    %c0_102 = arith.constant 0 : index
    %274 = vector.load %arg12[%c0_101, %c0_102] : memref<2x128xf32, #tpu.memory_space<vmem>>, vector<2x128xf32>
    %275 = vector.extract_strided_slice %274 {offsets = [0, 0], sizes = [1, 128], strides = [1, 1]} : vector<2x128xf32> to vector<1x128xf32>
    %276 = vector.extract_strided_slice %274 {offsets = [1, 0], sizes = [1, 128], strides = [1, 1]} : vector<2x128xf32> to vector<1x128xf32>
    %cst_103 = arith.constant dense<0.000000e+00> : vector<8xf32>
    %277 = vector.multi_reduction <add>, %273, %cst_103 [1] : vector<8x128xf32> to vector<8xf32>
    %278 = vector.shape_cast %277 : vector<8xf32> to vector<8x1xf32>
    %cst_104 = arith.constant 3.200000e+01 : f32
    %279 = vector.broadcast %cst_104 : f32 to vector<8x1xf32>
    %280 = arith.divf %278, %279 : vector<8x1xf32>
    %281 = vector.broadcast %280 : vector<8x1xf32> to vector<8x128xf32>
    %282 = arith.subf %273, %281 : vector<8x128xf32>
    %283 = vector.broadcast %4 : vector<1x128xf32> to vector<8x128xf32>
    %284 = arith.mulf %282, %283 : vector<8x128xf32>
    %285 = arith.mulf %284, %284 : vector<8x128xf32>
    %cst_105 = arith.constant dense<0.000000e+00> : vector<8xf32>
    %286 = vector.multi_reduction <add>, %285, %cst_105 [1] : vector<8x128xf32> to vector<8xf32>
    %287 = vector.shape_cast %286 : vector<8xf32> to vector<8x1xf32>
    %cst_106 = arith.constant 3.200000e+01 : f32
    %288 = vector.broadcast %cst_106 : f32 to vector<8x1xf32>
    %289 = arith.divf %287, %288 : vector<8x1xf32>
    %cst_107 = arith.constant 9.99999974E-6 : f32
    %290 = vector.broadcast %cst_107 : f32 to vector<8x1xf32>
    %291 = arith.addf %289, %290 : vector<8x1xf32>
    %292 = math.rsqrt %291 : vector<8x1xf32>
    %293 = vector.broadcast %292 : vector<8x1xf32> to vector<8x128xf32>
    %294 = arith.mulf %284, %293 : vector<8x128xf32>
    %295 = vector.broadcast %275 : vector<1x128xf32> to vector<8x128xf32>
    %296 = arith.mulf %295, %294 : vector<8x128xf32>
    %297 = vector.broadcast %276 : vector<1x128xf32> to vector<8x128xf32>
    %298 = arith.addf %296, %297 : vector<8x128xf32>
    %299 = arith.truncf %298 : vector<8x128xf32> to vector<8x128xbf16>
    %c0_108 = arith.constant 0 : index
    %c0_109 = arith.constant 0 : index
    %300 = vector.load %arg13[%c0_108, %c0_109] : memref<128x128xbf16, #tpu.memory_space<vmem>>, vector<128x128xbf16>
    %cst_110 = arith.constant dense<0.000000e+00> : vector<8x128xf32>
    %301 = tpu.matmul %299, %300, %cst_110 {dimension_numbers = #tpu.dot_dimension_numbers<[1], [0], [0], [1], [0, 0, 1, 1], [], []>} : vector<8x128xbf16>, vector<128x128xbf16>, vector<8x128xf32> -> vector<8x128xf32>
    %c0_111 = arith.constant 0 : index
    %c0_112 = arith.constant 0 : index
    %302 = vector.load %arg14[%c0_111, %c0_112] : memref<8x128xf32, #tpu.memory_space<vmem>>, vector<8x128xf32>
    tpu.vector_store %arg14[%c0_111, %c0_112], %301 {strides = array<i32>} : memref<8x128xf32, #tpu.memory_space<vmem>>, vector<8x128xf32>,
    return
  }
  func.func @transform_0(%arg0: i32) -> (i32, i32) {
    %c0_i32 = arith.constant 0 : i32
    %c0_i32_0 = arith.constant 0 : i32
    return %arg0, %c0_i32 : i32, i32
  }
  func.func @transform_1(%arg0: i32) -> (i32, i32) {
    %c0_i32 = arith.constant 0 : i32
    %c0_i32_0 = arith.constant 0 : i32
    %c0_i32_1 = arith.constant 0 : i32
    return %c0_i32, %c0_i32_0 : i32, i32
  }
  func.func @transform_2(%arg0: i32) -> (i32, i32) {
    %c0_i32 = arith.constant 0 : i32
    %c0_i32_0 = arith.constant 0 : i32
    %c0_i32_1 = arith.constant 0 : i32
    return %c0_i32, %c0_i32_0 : i32, i32
  }
  func.func @transform_3(%arg0: i32) -> (i32, i32, i32) {
    %c0_i32 = arith.constant 0 : i32
    %c0_i32_0 = arith.constant 0 : i32
    %c0_i32_1 = arith.constant 0 : i32
    %c0_i32_2 = arith.constant 0 : i32
    return %c0_i32, %c0_i32_0, %c0_i32_1 : i32, i32, i32
  }
  func.func @transform_4(%arg0: i32) -> (i32, i32, i32) {
    %c0_i32 = arith.constant 0 : i32
    %c0_i32_0 = arith.constant 0 : i32
    %c0_i32_1 = arith.constant 0 : i32
    %c0_i32_2 = arith.constant 0 : i32
    return %c0_i32, %c0_i32_0, %c0_i32_1 : i32, i32, i32
  }
  func.func @transform_5(%arg0: i32) -> (i32, i32, i32) {
    %c0_i32 = arith.constant 0 : i32
    %c0_i32_0 = arith.constant 0 : i32
    %c0_i32_1 = arith.constant 0 : i32
    %c0_i32_2 = arith.constant 0 : i32
    return %c0_i32, %c0_i32_0, %c0_i32_1 : i32, i32, i32
  }
  func.func @transform_6(%arg0: i32) -> (i32, i32, i32) {
    %c0_i32 = arith.constant 0 : i32
    %c0_i32_0 = arith.constant 0 : i32
    %c0_i32_1 = arith.constant 0 : i32
    %c0_i32_2 = arith.constant 0 : i32
    return %c0_i32, %c0_i32_0, %c0_i32_1 : i32, i32, i32
  }
  func.func @transform_7(%arg0: i32) -> (i32, i32, i32) {
    %c0_i32 = arith.constant 0 : i32
    %c0_i32_0 = arith.constant 0 : i32
    %c0_i32_1 = arith.constant 0 : i32
    %c0_i32_2 = arith.constant 0 : i32
    return %c0_i32, %c0_i32_0, %c0_i32_1 : i32, i32, i32
  }
  func.func @transform_8(%arg0: i32) -> (i32, i32, i32) {
    %c0_i32 = arith.constant 0 : i32
    %c0_i32_0 = arith.constant 0 : i32
    %c0_i32_1 = arith.constant 0 : i32
    %c0_i32_2 = arith.constant 0 : i32
    return %c0_i32, %c0_i32_0, %c0_i32_1 : i32, i32, i32
  }
  func.func @transform_9(%arg0: i32) -> (i32, i32, i32) {
    %c0_i32 = arith.constant 0 : i32
    %c0_i32_0 = arith.constant 0 : i32
    %c0_i32_1 = arith.constant 0 : i32
    %c0_i32_2 = arith.constant 0 : i32
    return %c0_i32, %c0_i32_0, %c0_i32_1 : i32, i32, i32
  }
  func.func @transform_10(%arg0: i32) -> (i32, i32, i32) {
    %c0_i32 = arith.constant 0 : i32
    %c0_i32_0 = arith.constant 0 : i32
    %c0_i32_1 = arith.constant 0 : i32
    %c0_i32_2 = arith.constant 0 : i32
    return %c0_i32, %c0_i32_0, %c0_i32_1 : i32, i32, i32
  }
  func.func @transform_11(%arg0: i32) -> (i32, i32) {
    %c0_i32 = arith.constant 0 : i32
    %c0_i32_0 = arith.constant 0 : i32
    %c0_i32_1 = arith.constant 0 : i32
    return %c0_i32, %c0_i32_0 : i32, i32
  }
  func.func @transform_12(%arg0: i32) -> (i32, i32) {
    %c0_i32 = arith.constant 0 : i32
    %c0_i32_0 = arith.constant 0 : i32
    %c0_i32_1 = arith.constant 0 : i32
    return %c0_i32, %c0_i32_0 : i32, i32
  }
  func.func @transform_13(%arg0: i32) -> (i32, i32) {
    %c0_i32 = arith.constant 0 : i32
    %c0_i32_0 = arith.constant 0 : i32
    return %arg0, %c0_i32 : i32, i32
  }
}

</mosaic_0001>

<bundles_post_ra>
// kernel: _lambda_.1
= control target key start
LH: loop header
LB: loop body
LE: loop exit
PB: predicated region body
PF: predicated region fallthrough
CT: control target
= control target key end

     0   :  { %s12351_s0 = inlined_call_operand.vmem [shape: s32[16,1], index: 0, kind: input, shape index: {}]   ;;  %s12352_s1 = inlined_call_operand.vmem [shape: bf16[128,128], index: 1, kind: input, shape index: {}]   ;;  %s12353_s2 = inlined_call_operand.vmem [shape: bf16[16,128], index: 2, kind: input, shape index: {}]   ;;  %s12354_s3 = inlined_call_operand.vmem [shape: f32[2,4,128], index: 3, kind: input, shape index: {}]   ;;  %s12355_s4 = inlined_call_operand.vmem [shape: bf16[2,128,384], index: 4, kind: input, shape index: {}]   ;;  %s12356_s5 = inlined_call_operand.vmem [shape: bf16[2,128,128], index: 5, kind: input, shape index: {}]   ;;  %s12357_s6 = inlined_call_operand.vmem [shape: f32[2,1,128], index: 6, kind: input, shape index: {}]   ;;  %s12358_s7 = inlined_call_operand.vmem [shape: bf16[2,128,128], index: 7, kind: input, shape index: {}]   ;;  %s12359_s8 = inlined_call_operand.vmem [shape: f32[2,1,128], index: 8, kind: input, shape index: {}]   ;;  %s12360_s9 = inlined_call_operand.vmem [shape: bf16[2,128,128], index: 9, kind: input, shape index: {}]   ;;  %s12361_s10 = inlined_call_operand.vmem [shape: f32[2,1,128], index: 10, kind: input, shape index: {}]   ;;  %s12362_s11 = inlined_call_operand.vmem [shape: f32[2,128], index: 11, kind: input, shape index: {}]   ;;  %s12363_s12 = inlined_call_operand.vmem [shape: bf16[128,128], index: 12, kind: input, shape index: {}]   ;;  %s12364_s13 = inlined_call_operand.hbm [shape: f32[16,128], index: 13, kind: output, shape index: {}]  }
   0x1   :  { %12408 = sst [smem:[#allocation14_spill]] %s12351_s0 }
   0x2   :  { %12409 = sst [smem:[#allocation15_spill]] %s12352_s1 }
   0x3   :  { %12410 = sst [smem:[#allocation16_spill]] %s12353_s2 }
   0x4   :  { %12411 = sst [smem:[#allocation17_spill]] %s12359_s8 }
   0x5   :  { %12412 = sst [smem:[#allocation18_spill]] %s12361_s10 }
   0x6   :  { %12413 = sst [smem:[#allocation19_spill]] %s12362_s11 }
   0x7   :  { %12414 = sst [smem:[#allocation20_spill]] %s12363_s12 }
   0x8   :  { %12415 = sst [smem:[#allocation21_spill]] %s12364_s13 }
   0x9   :  { %18 = vsyncpa [#allocation3], 0 }
   0xa   :  { %20 = vsyncpa [#allocation3 + $0x1], 0  ;;  %s10597_s25 = smov 0   ;;  %s10599_s26 = smov 0  }
   0xb   :  { %s10601_s27 = smov 0   ;;  %s10603_s28 = smov 0  }
   0xc LB: > { %12416 = sst [smem:[#allocation5_spill]] %s10490_s25  ;;  %s10618_s29 = sadd.s32 4294967295, %s10502_s28   ;;  %s10502_s28 = sphi %s10603_s28, %s12459_s28   ;;  %s10498_s27 = sphi %s10601_s27, %s12462_s27   ;;  %s10494_s26 = sphi %s10599_s26, %s12461_s26   ;;  %s10490_s25 = sphi %s10597_s25, %s12460_s25  }
   0xd   : > { %12417 = sst [smem:[#allocation6_spill]] %s10494_s26  ;;  %s8976_s30 = sadd.s32 4294967294, %s10502_s28  }
   0xe   : > { %12418 = sst [smem:[#allocation7_spill]] %s10498_s27  ;;  %s10622_s14 = sadd.s32 1, %s10502_s28  }
   0xf   : > { %12419 = sst [smem:[#allocation8_spill]] %s10502_s28  ;;  %s311_s15 = sadd.s32 1, %s10498_s27 }
  0x10   : > { %12420 = sst [smem:[#allocation9_spill]] %s10618_s29  ;;  %s308_s16 = ssub.s32 %s10502_s28, %s10622_s14 }
  0x11   : > { %12421 = sst [smem:[#allocation10_spill]] %s10622_s14  ;;  %p321_p0 = scmp.ne.s32.totalorder %s10498_s27, %s10494_s26 }
  0x12   : > { %p309_p1 = scmp.eq.s32.totalorder %s308_s16, 0  ;;  %p322_p2 = scmp.eq.s32.totalorder %s10618_s29, 1 }
  0x13   : > { %p327_p3 = scmp.ne.s32.totalorder %s10494_s26, %s10490_s25  ;;  %p328_p4 = scmp.eq.s32.totalorder %s8976_s30, 1 }
  0x14   : > { %s10633_s17 = scalar_select %p309_p1, %s10498_s27, %s311_s15  }
  0x15   : > { %p10635_p5 = por %p322_p2, %p321_p0  ;;  %p10639_p6 = por %p328_p4, %p327_p3 }
  0x16   : > { %12422 = sst [smem:[#allocation11_spill]] %s10633_s17  ;;  %p8979_p7 = scmp.ge.s32.totalorder %s10502_s28, 1 }
  0x17   : > { %s12423_s18 = scalar_select %p10635_p5, 1, 0 }
  0x18   : > { %s12425_s19 = scalar_select %p10639_p6, 1, 0 }
  0x19   : > { %12424 = sst [smem:[#allocation12_spill]] %s12423_s18  ;;  %p389_p8 = scmp.lt.s32.totalorder %s10502_s28, 3 }
  0x1a   : > { %12426 = sst [smem:[#allocation13_spill]] %s12425_s19 }
  0x1b   : > { %p390_p9 = pnand %p8979_p7, %p389_p8 }
  0x1c   : > { %p432_p10 = scmp.lt.s32.totalorder (!%p390_p9), %s10618_s29, 1  ;;  %s12427_s2 = sld [smem:[#allocation16_spill]] (!%p390_p9)  ;;  %v437_v1 = vlaneseq (!%p390_p9)  ;;  %v10504_v2 = vmov (!%p390_p9), 0   ;;  %v10505_v3 = vmov (!%p390_p9), 0.0   ;;  %vm10506_vm0 = vmmov (!%p390_p9), 0  }
  0x1d   : > { %393 = sbr.rel (%p390_p9) target bundleno = 6864 (0x1ad0), region = 72  ;;  %10166 = vset.pattern.permute.xlu0 (!%p390_p9), %v10504_v2  ;;  %9511 = vmatprep.subr.bf16.mxu0 (!%p390_p9), %v10505_v3  ;;  %vm480_vm2 = vcmask (!%p390_p9), 130048   ;;  %s12428_s0 = sld [smem:[#allocation14_spill]] (!%p390_p9)  ;;  %v10507_v18 = vmov (!%p390_p9), 1.0|1.0   ;;  %vm1267_vm6 = vcmask (!%p390_p9), 1043456  }
  0x1e   : > { %9513 = vmatprep.mubr.msk.bf16.mxu0 (!%p390_p9), %vm10506_vm0, %v10505_v3  ;;  %v10654_v4 = vand.u32 (!%p390_p9), 127, %v437_v1  ;;  %v10656_v5 = vshrl.u32 (!%p390_p9), %v437_v1, 7  ;;  %831 = vmatprep.mubr.bf16.mxu1 (!%p390_p9), %v10504_v2  ;;  %s12429_s1 = sld [smem:[#allocation15_spill]] (!%p390_p9)  ;;  %v10176_v23 = vld [vmem:[%s12355_s4 + $0x4] ss:$12 sps:$4 sm:$0xff] (!%p390_p9)   ;;  %s12367_s16 = smov (!%p390_p9), 80  }
  0x1f   : > { %v10178_v24 = vld [vmem:[%s12355_s4] ss:$12 sps:$4 sm:$0xff] (!%p390_p9)   ;;  %v10179_v25 = vld [vmem:[%s12355_s4 + $0x1c] ss:$12 sps:$4 sm:$0xff] (!%p390_p9)   ;;  %799 = vmatprep.subr.bf16.mxu1 (!%p390_p9), %v10176_v23  ;;  %v10181_v26 = vld [vmem:[%s12355_s4 + $0x18] ss:$12 sps:$4 sm:$0xff] (!%p390_p9)  }
  0x20   : > { %vm452_vm1 = vcmp.eq.s32.totalorder (!%p390_p9), %v10656_v5, %v10654_v4  ;;  %800 = vmatpush1.bf16.msra.mxu1 (!%p390_p9), %v10178_v24  ;;  %v10182_v27 = vld [vmem:[%s12355_s4 + $0x34] ss:$12 sps:$4 sm:$0xff] (!%p390_p9)   ;;  %v10184_v28 = vld [vmem:[%s12355_s4 + $0x30] ss:$12 sps:$4 sm:$0xff] (!%p390_p9)   ;;  %vm439_vm5 = vcmp.lt.s32.totalorder (!%p390_p9), %v10654_v4, 32  ;;  %v10763_v48 = vsub.s32 (!%p390_p9), 0, %v10656_v5  ;;  %vm612_vm8 = vcmp.le.s32.totalorder (!%p390_p9), %v10654_v4, %v10656_v5 }
  0x21   : > { %v8984_v6 = vsel (!%p390_p9), %vm452_vm1, 1.0, %v10505_v3  ;;  %801 = vmatprep.subr.bf16.mxu1 (!%p390_p9), %v10179_v25  ;;  %v10727_v31 = vsel (!%p390_p9), %vm439_vm5, 1.0, %v10505_v3  ;;  %v10185_v35 = vld [vmem:[%s12355_s4 + $0x4c] ss:$12 sps:$4 sm:$0xff] (!%p390_p9)   ;;  %v10187_v36 = vld [vmem:[%s12355_s4 + $0x48] ss:$12 sps:$4 sm:$0xff] (!%p390_p9)  }
  0x22   : > { %v10167_v0 = vld [vmem:[%s12427_s2] sm:$0xff] (!%p390_p9)   ;;  %v455_v9 = vpack.c.bf16 (!%p390_p9), %v8984_v6, %v8984_v6  ;;  %v10191_v39 = vld [vmem:[%s12355_s4 + $0x7c] ss:$12 sps:$4 sm:$0xff] (!%p390_p9)   ;;  %v10197_v43 = vld [vmem:[%s12355_s4 + $0xac] ss:$12 sps:$4 sm:$0xff] (!%p390_p9)   ;;  %v10769_v50 = vsub.s32 (!%p390_p9), 1, %v10656_v5 }
  0x23   : > { %9512 = vmatpush3.bf16.msra.mxu0 (!%p390_p9), %v10167_v0  ;;  %v10188_v37 = vld [vmem:[%s12355_s4 + $0x64] ss:$12 sps:$4 sm:$0xff] (!%p390_p9)   ;;  %v10190_v38 = vld [vmem:[%s12355_s4 + $0x60] ss:$12 sps:$4 sm:$0xff] (!%p390_p9)   ;;  %v10199_v44 = vld [vmem:[%s12355_s4 + $0xa8] ss:$12 sps:$4 sm:$0xff] (!%p390_p9)  }
  0x24   : > { %s433_s22 = scalar_select %p432_p10, %s10618_s29, 1  ;;  %9517 = vmatprep.subr.bf16.mxu0 %v10505_v3  ;;  %v10168_v7 = vld [vmem:[%s12429_s1] sm:$0xff]   ;;  %v10169_v10 = vld [vmem:[%s12429_s1 + $0x8] sm:$0xff]   ;;  %v10170_v11 = vld [vmem:[%s12429_s1 + $0x10] sm:$0xff]   ;;  %802 = vmatpush1.bf16.msra.mxu1 %v10181_v26  ;;  %vm1263_vm7 = vcmask 64512   ;;  %vm4303_vm9 = vcmask 195584  }
  0x25   : > { %v10171_v12 = vld [vmem:[%s12429_s1 + $0x18] sm:$0xff]   ;;  %v10172_v13 = vld [vmem:[%s12429_s1 + $0x20] sm:$0xff]   ;;  %v10173_v14 = vld [vmem:[%s12429_s1 + $0x28] sm:$0xff]   ;;  %803 = vmatprep.subr.bf16.mxu1 %v10182_v27  ;;  %s12383_s20 = smov 120   ;;  %s12393_s21 = smov 104   ;;  %vm4305_vm10 = vcmask 261120  }
  0x26   : > { %s8981_s23 = sshll.u32 %s433_s22, 3  ;;  %9514 = vmatmul.mubr.msk.bf16.vlgmr.msra.gmra.mrb[0].mxu0 %vm480_vm2, %v455_v9  ;;  %v10174_v15 = vld [vmem:[%s12429_s1 + $0x30] sm:$0xff]   ;;  %v10175_v16 = vld [vmem:[%s12429_s1 + $0x38] sm:$0xff]   ;;  %v614_v49 = vld [vmem:[%s12354_s3] sm:$0xf]  ;;  %s12387_s1 = smov 112  }
  0x27   : > { %s435_s15 = scalar_lea.vmem %s12428_s0, %s8981_s23  ;;  %9518 = vmatpush3.bf16.msra.mxu0 %v10168_v7  ;;  %9533 = vmatprep.mubr.msk.bf16.mxu0 %vm10506_vm0, %v10505_v3  ;;  %v10193_v40 = vld [vmem:[%s12355_s4 + $0x78] ss:$12 sps:$4 sm:$0xff]   ;;  %v10194_v41 = vld [vmem:[%s12355_s4 + $0x94] ss:$12 sps:$4 sm:$0xff]   ;;  %v10196_v42 = vld [vmem:[%s12355_s4 + $0x90] ss:$12 sps:$4 sm:$0xff]   ;;  %v631_v51 = vrot.slane %v614_v49, %v10763_v48  ;;  %v636_v54 = vrot.slane %v614_v49, %v10769_v50 }
  0x28   : > { %v442_v8 = vld [vmem:[%s435_s15] sm:$0xff]  ;;  %9519 = vmatprep.subr.bf16.mxu0 %v10505_v3  ;;  %804 = vmatpush1.bf16.msra.mxu1 %v10184_v28  ;;  %v10200_v57 = vld [vmem:[%s12355_s4 + $0x8] ss:$12 sps:$4 sm:$0xff]   ;;  %v10203_v61 = vld [vmem:[%s12355_s4 + $0x50] ss:$12 sps:$4 sm:$0xff]   ;;  %s12365_s0 = smov 40  }
  0x29   : > { %444 = vperm.xlu0 %10166, %v442_v8   ;;  %805 = vmatprep.subr.bf16.mxu1 %v10185_v35  ;;  %v10201_v59 = vld [vmem:[%s12355_s4 + $0x20] ss:$12 sps:$4 sm:$0xff]   ;;  %v10202_v60 = vld [vmem:[%s12355_s4 + $0x38] ss:$12 sps:$4 sm:$0xff]   ;;  %v10204_v62 = vld [vmem:[%s12355_s4 + $0x68] ss:$12 sps:$4 sm:$0xff]  }
  0x2a   : > { %v10205_v63 = vld [vmem:[%s12355_s4 + $0x80] ss:$12 sps:$4 sm:$0xff]   ;;  %v10206_v0 = vld [vmem:[%s12355_s4 + $0x98] ss:$12 sps:$4 sm:$0xff]   ;;  %v10207_v1 = vld [vmem:[%s12355_s4 + $0xb0] ss:$12 sps:$4 sm:$0xff]  }
  0x2b   : > { %9520 = vmatpush3.bf16.msra.mxu0 %v10169_v10  ;;  %s12389_s22 = smov 96   ;;  %s12391_s23 = smov 88   ;;  %vm4307_vm11 = vcmask 326656   ;;  %vm4309_vm12 = vcmask 392192   ;;  %vm12405_vm13 = vcmask 457728   ;;  %vm4313_vm14 = vcmask 523264  }
  0x2c   : > { %9521 = vmatprep.subr.bf16.mxu0 %v10505_v3  ;;  %806 = vmatpush1.bf16.msra.mxu1 %v10187_v36  ;;  %s12369_s24 = smov 72   ;;  %s12371_s30 = smov 64   ;;  %vm4315_vm15 = vcmask 588800   ;;  %vm4317_vm1 = vcmask 654336   ;;  %vm4323_vm5 = vcmask 850944  }
  0x2d   : > { %807 = vmatprep.subr.bf16.mxu1 %v10188_v37  ;;  %s12373_s15 = smov 56   ;;  %s12435_s2 = smov 40  }
  0x2e   : > { %s12441_s17 = smov 112   ;;  %s12442_s27 = smov 104  }
  0x2f   : > { %9522 = vmatpush3.bf16.msra.mxu0 %v10170_v11  ;;  %s12443_s14 = smov 88   ;;  %s12444_s19 = smov 96  }
  0x30   : > { %9523 = vmatprep.subr.bf16.mxu0 %v10505_v3  ;;  %808 = vmatpush1.bf16.msra.mxu1 %v10190_v38  ;;  %s12445_s8 = sld [smem:[#allocation17_spill]]  ;;  %s12446_s10 = sld [smem:[#allocation18_spill]] }
  0x31   : > { %809 = vmatprep.subr.bf16.mxu1 %v10191_v39  ;;  %s12449_s11 = sld [smem:[#allocation18_spill]]  ;;  %s12455_s12 = sld [smem:[#allocation21_spill]] }
  0x33   : > { %9524 = vmatpush3.bf16.msra.mxu0 %v10171_v12 }
  0x34   : > { %9525 = vmatprep.subr.bf16.mxu0 %v10505_v3  ;;  %810 = vmatpush1.bf16.msra.mxu1 %v10193_v40 }
  0x35   : > { %811 = vmatprep.subr.bf16.mxu1 %v10194_v41 }
  0x37   : > { %9526 = vmatpush3.bf16.msra.mxu0 %v10172_v13 }
  0x38   : > { %9527 = vmatprep.subr.bf16.mxu0 %v10505_v3  ;;  %812 = vmatpush1.bf16.msra.mxu1 %v10196_v42 }
  0x39   : > { %813 = vmatprep.subr.bf16.mxu1 %v10197_v43 }
  0x3b   : > { %9528 = vmatpush3.bf16.msra.mxu0 %v10173_v14 }
  0x3c   : > { %9529 = vmatprep.subr.bf16.mxu0 %v10505_v3  ;;  %814 = vmatpush1.bf16.msra.mxu1 %v10199_v44 }
  0x3d   : > { %9537 = vmatprep.subr.bf16.mxu1 %v10505_v3 }
  0x3f   : > { %9530 = vmatpush3.bf16.msra.mxu0 %v10174_v15 }
  0x40   : > { %9531 = vmatprep.subr.bf16.mxu0 %v10505_v3 }
  0x43   : > { %9532 = vmatpush3.bf16.msra.mxu0 %v10175_v16 }
  0x44   : > { %9557 = vmatprep.subr.bf16.mxu0 %v10505_v3 }
  0xa8   : > { %v445_v17 = vpop.permute.xlu0 %444 }
  0xa9   : > { %vm446_vm3 = vcmp.eq.s32.totalorder %v445_v17, %v10654_v4 }
  0xaa   : > { %vm8995_vm4 = vmpackc.low %vm446_vm3, %vm446_vm3  ;;  %vm4319_vm3 = vcmask 719872  }
  0xab   : > { %9534 = vmatmul.mubr.msk.bf16.vlgmr.msra.gmra.mrb[0].mxu0 %vm8995_vm4, %v10507_v18  ;;  %vm4321_vm4 = vcmask 785408  }
  0xac   : > { %9559 = vmatprep.mubr.msk.bf16.mxu0 %vm10506_vm0, %v10505_v3 }
 0x17e   : > { %v10704_v19 = vpop.f32.mrb[0].mxu0 }
 0x17f   : > { %615 = vadd.xlane.f32.xlu0 %v10704_v19  ;;  %v9535_v20 = vpop.f32.mrb[1].mxu0 }
 0x180   : > { %v609_v21 = vpop.f32.mrb[2].mxu0 }
 0x181   : > { %v9536_v22 = vpop.f32.mrb[3].mxu0 }
 0x20c   : > { %v616_v29 = vpop.xlane.xlu0 %615 }
 0x20d   : > { %v618_v30 = vmul.f32 0.03125, %v616_v29 }
 0x20f   : > { %v619_v32 = vsub.f32 %v10704_v19, %v618_v30 }
 0x211   : > { %v620_v33 = vmul.f32 %v10727_v31, %v619_v32 }
 0x213   : > { %v621_v34 = vmul.f32 %v620_v33, %v620_v33 }
 0x215   : > { %622 = vadd.xlane.f32.xlu1 %v621_v34 }
 0x2a2   : > { %v623_v45 = vpop.xlane.xlu1 %622 }
 0x2a3   : > { %v624_v46 = vmul.f32 0.03125, %v623_v45 }
 0x2a5   : > { %v625_v47 = vadd.f32 1e-05, %v624_v46 }
 0x2a7   : > { %10296 = vrsqrt.f32 %v625_v47 }
 0x2b1   : > { %v10297_v52 = vpop.eup %10296 }
 0x2b2   : > { %v627_v53 = vmul.f32 %v10297_v52, %v620_v33 }
 0x2b4   : > { %v632_v55 = vmul.f32 %v631_v51, %v627_v53 }
 0x2b6   : > { %v637_v56 = vadd.f32 %v636_v54, %v632_v55 }
 0x2b8   : > { %v638_v58 = vpack.c.bf16 %v637_v56, %v637_v56 }
 0x2ba   : > { %832 = vmatmul.mubr.bf16.vlgmr.msra.gmra.mrb[0].mxu1 %v638_v58 }
 0x2bb   : > { %9538 = vmatpush3.bf16.msra.mxu1 %v10200_v57  ;;  %9553 = vmatprep.mubr.msk.bf16.mxu1 %vm10506_vm0, %v10505_v3 }
 0x2bc   : > { %9539 = vmatprep.subr.bf16.mxu1 %v10505_v3 }
 0x2bf   : > { %9540 = vmatpush3.bf16.msra.mxu1 %v10201_v59 }
 0x2c0   : > { %9541 = vmatprep.subr.bf16.mxu1 %v10505_v3 }
 0x2c3   : > { %9542 = vmatpush3.bf16.msra.mxu1 %v10202_v60 }
 0x2c4   : > { %9543 = vmatprep.subr.bf16.mxu1 %v10505_v3 }
 0x2c7   : > { %9544 = vmatpush3.bf16.msra.mxu1 %v10203_v61 }
 0x2c8   : > { %9545 = vmatprep.subr.bf16.mxu1 %v10505_v3 }
 0x2cb   : > { %9546 = vmatpush3.bf16.msra.mxu1 %v10204_v62 }
 0x2cc   : > { %9547 = vmatprep.subr.bf16.mxu1 %v10505_v3 }
 0x2cf   : > { %9548 = vmatpush3.bf16.msra.mxu1 %v10205_v63 }
 0x2d0   : > { %9549 = vmatprep.subr.bf16.mxu1 %v10505_v3 }
 0x2d3   : > { %9550 = vmatpush3.bf16.msra.mxu1 %v10206_v0 }
 0x2d4   : > { %9551 = vmatprep.subr.bf16.mxu1 %v10505_v3 }
 0x2d7   : > { %9552 = vmatpush3.bf16.msra.mxu1 %v10207_v1 }
 0x2d8   : > { %9581 = vmatprep.subr.bf16.mxu1 %v10505_v3 }
 0x2da   : > { %9554 = vmatmul.mubr.bf16.vlgmr.msra.gmra.mrb[4].mxu1 %v638_v58 }
 0x2db   : > { %9583 = vmatprep.mubr.msk.bf16.mxu1 %vm10506_vm0, %v10505_v3 }
 0x38d   : > { %v833_v6 = vpop.f32.mrb[0].mxu1 }
 0x38e   : > { %v835_v7 = vpop.f32.mrb[1].mxu1  ;;  %v880_v15 = vmul.f32 0.35355338, %v833_v6 }
 0x38f   : > { %v913_v8 = vpack.c.bf16 %v835_v7, %v835_v7  ;;  %v837_v9 = vpop.f32.mrb[2].mxu1 }
 0x390   : > { %v838_v10 = vpop.f32.mrb[3].mxu1  ;;  %v881_v16 = vpack.c.bf16 %v880_v15, %v880_v15 }
 0x391   : > { %930 = vrot.lane.b32.xlu0 %v913_v8, %s12367_s16  ;;  %915 = vrot.lane.b32.xlu1 %v913_v8, %s12383_s20  ;;  %s12375_s16 = smov 32  }
 0x395   : > { %945 = vrot.lane.b32.xlu0 %v913_v8, %s12365_s0  ;;  %918 = vrot.lane.b32.xlu1 %v913_v8, %s12387_s1  ;;  %s12379_s0 = smov 48  }
 0x399   : > { %921 = vrot.lane.b32.xlu1 %v913_v8, %s12393_s21 }
 0x39d   : > { %924 = vrot.lane.b32.xlu1 %v913_v8, %s12389_s22 }
 0x3a1   : > { %927 = vrot.lane.b32.xlu1 %v913_v8, %s12391_s23 }
 0x3a5   : > { %933 = vrot.lane.b32.xlu1 %v913_v8, %s12369_s24  ;;  %s12377_s24 = smov 24  }
 0x3a9   : > { %936 = vrot.lane.b32.xlu1 %v913_v8, %s12371_s30  ;;  %s12381_s30 = smov 16  }
 0x3ad   : > { %v10818_v11 = vpop.f32.mrb[4].mxu1  ;;  %939 = vrot.lane.b32.xlu1 %v913_v8, %s12373_s15  ;;  %s12385_s15 = smov 8  }
 0x3ae   : > { %v9555_v12 = vpop.f32.mrb[5].mxu1  ;;  %v10848_v38 = vpack.c.bf16 %v10818_v11, %v10818_v11 }
 0x3af   : > { %v877_v13 = vpop.f32.mrb[6].mxu1 }
 0x3b0   : > { %v9556_v14 = vpop.f32.mrb[7].mxu1 }
 0x3b1   : > { %942 = vrot.lane.b32.xlu1 %v913_v8, %s12379_s0  ;;  %s12432_s0 = smov 64  }
 0x3b3   : > { %1007 = vxpose.xlu0.c.b16.start.end [1/1] (short) (narrow) %v913_v8, 16 }
 0x3b5   : > { %948 = vrot.lane.b32.xlu1 %v913_v8, %s12375_s16  ;;  %s12430_s16 = smov 72  }
 0x3b9   : > { %951 = vrot.lane.b32.xlu1 %v913_v8, %s12377_s24  ;;  %s12431_s24 = smov 80  }
 0x3bc   : > { %954 = vrot.lane.b32.xlu0 %v913_v8, %s12381_s30  ;;  %s12433_s30 = smov 48  }
 0x3bd   : > { %883 = vrot.lane.b32.xlu1 %v881_v16, %s12383_s20  ;;  %s12434_s20 = smov 56  }
 0x3c0   : > { %957 = vrot.lane.b32.xlu0 %v913_v8, %s12385_s15  ;;  %s12436_s15 = smov 32  }
 0x3c1   : > { %885 = vrot.lane.b32.xlu1 %v881_v16, %s12387_s1  ;;  %s12437_s1 = smov 16  }
 0x3c4   : > { %889 = vrot.lane.b32.xlu0 %v881_v16, %s12389_s22  ;;  %s12438_s22 = smov 24  }
 0x3c5   : > { %887 = vrot.lane.b32.xlu1 %v881_v16, %s12393_s21  ;;  %s12440_s21 = smov 120  }
 0x3c8   : > { %891 = vrot.lane.b32.xlu0 %v881_v16, %s12391_s23  ;;  %s12439_s23 = smov 8  }
 0x3c9   : > { %895 = vrot.lane.b32.xlu1 %v881_v16, %s12430_s16 }
 0x3cc   : > { %893 = vrot.lane.b32.xlu0 %v881_v16, %s12431_s24 }
 0x3cd   : > { %897 = vrot.lane.b32.xlu1 %v881_v16, %s12432_s0 }
 0x3d0   : > { %901 = vrot.lane.b32.xlu0 %v881_v16, %s12433_s30 }
 0x3d1   : > { %899 = vrot.lane.b32.xlu1 %v881_v16, %s12434_s20 }
 0x3d4   : > { %903 = vrot.lane.b32.xlu0 %v881_v16, %s12435_s2 }
 0x3d5   : > { %905 = vrot.lane.b32.xlu1 %v881_v16, %s12436_s15 }
 0x3d8   : > { %909 = vrot.lane.b32.xlu0 %v881_v16, %s12437_s1 }
 0x403   : > { %v916_v17 = vpop.permute.xlu1 %915  ;;  %v931_v21 = vpop.permute.xlu0 %930 }
 0x404   : > { %1023 = vxpose.xlu1.c.b16.start.end [1/1] (short) (narrow) %v916_v17, 16 }
 0x407   : > { %v919_v18 = vpop.permute.xlu1 %918  ;;  %v946_v24 = vpop.permute.xlu0 %945 }
 0x408   : > { %1039 = vxpose.xlu1.c.b16.start.end [1/1] (short) (narrow) %v919_v18, 16 }
 0x40b   : > { %v922_v20 = vpop.permute.xlu1 %921 }
 0x40c   : > { %1055 = vxpose.xlu0.c.b16.start.end [1/1] (short) (narrow) %v922_v20, 16 }
 0x40f   : > { %v925_v22 = vpop.permute.xlu1 %924 }
 0x410   : > { %1071 = vxpose.xlu1.c.b16.start.end [1/1] (short) (narrow) %v925_v22, 16 }
 0x413   : > { %v928_v23 = vpop.permute.xlu1 %927 }
 0x414   : > { %1103 = vxpose.xlu1.c.b16.start.end [1/1] (short) (narrow) %v931_v21, 16  ;;  %1087 = vxpose.xlu0.c.b16.start.end [1/1] (short) (narrow) %v928_v23, 16 }
 0x417   : > { %v934_v25 = vpop.permute.xlu1 %933 }
 0x418   : > { %907 = vrot.lane.b32.xlu1 %v881_v16, %s12438_s22  ;;  %1119 = vxpose.xlu0.c.b16.start.end [1/1] (short) (narrow) %v934_v25, 16 }
 0x419   : > { %v1015_v26 = vpop.trf.xlu0 }
 0x41a   : > { %v1269_v27 = vsel %vm1267_vm6, %v1015_v26, 0 }
 0x41b   : > { %9558 = vmatpush3.bf16.msra.mxu0 %v1269_v27  ;;  %v937_v28 = vpop.permute.xlu1 %936 }
 0x41c   : > { %9563 = vmatprep.subr.bf16.mxu0 %v10505_v3 }
 0x41e   : > { %9560 = vmatmul.mubr.msk.bf16.vlgmr.msra.gmra.mrb[4].mxu0 %vm1263_vm7, %v881_v16 }
 0x41f   : > { %v940_v29 = vpop.permute.xlu1 %939  ;;  %9565 = vmatprep.mubr.msk.bf16.mxu0 %vm10506_vm0, %v10505_v3 }
 0x420   : > { %1151 = vxpose.xlu0.c.b16.start.end [1/1] (short) (narrow) %v940_v29, 16 }
 0x423   : > { %v943_v30 = vpop.permute.xlu1 %942 }
 0x427   : > { %v949_v32 = vpop.permute.xlu1 %948 }
 0x429   : > { %911 = vrot.lane.b32.xlu0 %v881_v16, %s12439_s23 }
 0x42b   : > { %v952_v33 = vpop.permute.xlu1 %951 }
 0x42e   : > { %v955_v35 = vpop.permute.xlu0 %954 }
 0x42f   : > { %v884_v34 = vpop.permute.xlu1 %883 }
 0x432   : > { %v958_v37 = vpop.permute.xlu0 %957 }
 0x433   : > { %v886_v36 = vpop.permute.xlu1 %885 }
 0x436   : > { %v890_v40 = vpop.permute.xlu0 %889 }
 0x437   : > { %v888_v39 = vpop.permute.xlu1 %887 }
 0x43a   : > { %v892_v42 = vpop.permute.xlu0 %891 }
 0x43b   : > { %1135 = vxpose.xlu1.c.b16.start.end [1/1] (short) (narrow) %v937_v28, 16  ;;  %v896_v41 = vpop.permute.xlu1 %895 }
 0x43e   : > { %v894_v44 = vpop.permute.xlu0 %893 }
 0x43f   : > { %1167 = vxpose.xlu1.c.b16.start.end [1/1] (short) (narrow) %v943_v30, 16  ;;  %v10860_v43 = vpop.permute.xlu1 %897 }
 0x442   : > { %v10868_v46 = vpop.permute.xlu0 %901 }
 0x443   : > { %1199 = vxpose.xlu1.c.b16.start.end [1/1] (short) (narrow) %v949_v32, 16  ;;  %v900_v45 = vpop.permute.xlu1 %899 }
 0x446   : > { %v10874_v49 = vpop.permute.xlu0 %903 }
 0x447   : > { %1183 = vxpose.xlu0.c.b16.start.end [1/1] (short) (narrow) %v946_v24, 16  ;;  %1215 = vxpose.xlu1.c.b16.start.end [1/1] (short) (narrow) %v952_v33, 16  ;;  %v10872_v47 = vpop.permute.xlu1 %905  ;;  %v10523_v33 = vmov -1e+09  }
 0x44a   : > { %v10878_v53 = vpop.permute.xlu0 %909 }
 0x44b   : > { %1231 = vxpose.xlu1.c.b16.start.end [1/1] (short) (narrow) %v955_v35, 16 }
 0x44f   : > { %1247 = vxpose.xlu1.c.b16.start.end [1/1] (short) (narrow) %v958_v37, 16 }
 0x450   : > { %962 = vrot.lane.b32.xlu0 %v10848_v38, %s12440_s21 }
 0x453   : > { %965 = vrot.lane.b32.xlu1 %v10848_v38, %s12441_s17 }
 0x454   : > { %968 = vrot.lane.b32.xlu0 %v10848_v38, %s12442_s27 }
 0x457   : > { %974 = vrot.lane.b32.xlu1 %v10848_v38, %s12443_s14 }
 0x458   : > { %971 = vrot.lane.b32.xlu0 %v10848_v38, %s12444_s19 }
 0x45b   : > { %980 = vrot.lane.b32.xlu1 %v10848_v38, %s12430_s16 }
 0x45c   : > { %977 = vrot.lane.b32.xlu0 %v10848_v38, %s12431_s24 }
 0x460   : > { %983 = vrot.lane.b32.xlu0 %v10848_v38, %s12432_s0 }
 0x464   : > { %989 = vrot.lane.b32.xlu0 %v10848_v38, %s12433_s30 }
 0x46a   : > { %v1031_v51 = vpop.trf.xlu1 }
 0x46b   : > { %v1315_v52 = vsel %vm1267_vm6, %v1031_v51, 0 }
 0x46c   : > { %9564 = vmatpush3.bf16.msra.mxu0 %v1315_v52 }
 0x46d   : > { %9569 = vmatprep.subr.bf16.mxu0 %v10505_v3 }
 0x46e   : > { %v1047_v54 = vpop.trf.xlu1 }
 0x46f   : > { %9566 = vmatmul.mubr.msk.bf16.vlgmr.msra.gmra.mrb[8].mxu0 %vm1263_vm7, %v884_v34  ;;  %v1361_v55 = vsel %vm1267_vm6, %v1047_v54, 0  ;;  %v10961_v34 = vsel %vm612_vm8, 0.0, %v10523_v33  ;;  %vm4325_vm8 = vcmask 916480  }
 0x470   : > { %9570 = vmatpush3.bf16.msra.mxu0 %v1361_v55  ;;  %9571 = vmatprep.mubr.msk.bf16.mxu0 %vm10506_vm0, %v10505_v3 }
 0x471   : > { %9575 = vmatprep.subr.bf16.mxu0 %v10505_v3 }
 0x472   : > { %v1063_v56 = vpop.trf.xlu0 }
 0x473   : > { %v1407_v57 = vsel %vm1267_vm6, %v1063_v56, 0 }
 0x476   : > { %v1079_v58 = vpop.trf.xlu1 }
 0x477   : > { %v1453_v59 = vsel %vm1267_vm6, %v1079_v58, 0  ;;  %9572 = vmatmul.mubr.msk.bf16.vlgmr.msra.gmra.mrb[12].mxu0 %vm1263_vm7, %v886_v36 }
 0x478   : > { %9582 = vmatpush3.bf16.msra.mxu1 %v1453_v59  ;;  %9576 = vmatpush3.bf16.msra.mxu0 %v1407_v57 }
 0x479   : > { %9577 = vmatprep.mubr.msk.bf16.mxu0 %vm10506_vm0, %v10505_v3  ;;  %9593 = vmatprep.subr.bf16.mxu1 %v10505_v3 }
 0x47a   : > { %v1111_v60 = vpop.trf.xlu1  ;;  %v1095_v61 = vpop.trf.xlu0  ;;  %9587 = vmatprep.subr.bf16.mxu0 %v10505_v3 }
 0x47b   : > { %9584 = vmatmul.mubr.msk.bf16.vlgmr.msra.gmra.mrb[8].mxu1 %vm1263_vm7, %v890_v40  ;;  %v1545_v62 = vsel %vm1267_vm6, %v1111_v60, 0  ;;  %v1499_v63 = vsel %vm1267_vm6, %v1095_v61, 0 }
 0x47c   : > { %9594 = vmatpush3.bf16.msra.mxu1 %v1545_v62  ;;  %9595 = vmatprep.mubr.msk.bf16.mxu1 %vm10506_vm0, %v10505_v3 }
 0x47d   : > { %9605 = vmatprep.subr.bf16.mxu1 %v10505_v3 }
 0x47e   : > { %v1127_v0 = vpop.trf.xlu0 }
 0x47f   : > { %9578 = vmatmul.mubr.msk.bf16.vlgmr.msra.gmra.mrb[16].mxu0 %vm1263_vm7, %v888_v39  ;;  %v1591_v1 = vsel %vm1267_vm6, %v1127_v0, 0 }
 0x480   : > { %9588 = vmatpush3.bf16.msra.mxu0 %v1499_v63  ;;  %9589 = vmatprep.mubr.msk.bf16.mxu0 %vm10506_vm0, %v10505_v3 }
 0x481   : > { %9599 = vmatprep.subr.bf16.mxu0 %v10505_v3 }
 0x482   : > { %2193 = vxpose.xlu0.c.b16.start.end [1/1] (short) (narrow) %v10848_v38, 16 }
 0x483   : > { %9596 = vmatmul.mubr.msk.bf16.vlgmr.msra.gmra.mrb[12].mxu1 %vm1263_vm7, %v894_v44 }
 0x484   : > { %9607 = vmatprep.mubr.msk.bf16.mxu1 %vm10506_vm0, %v10505_v3 }
 0x486   : > { %v1159_v6 = vpop.trf.xlu0 }
 0x487   : > { %9590 = vmatmul.mubr.msk.bf16.vlgmr.msra.gmra.mrb[20].mxu0 %vm1263_vm7, %v892_v42  ;;  %v1683_v7 = vsel %vm1267_vm6, %v1159_v6, 0 }
 0x488   : > { %9600 = vmatpush3.bf16.msra.mxu0 %v1591_v1  ;;  %9601 = vmatprep.mubr.msk.bf16.mxu0 %vm10506_vm0, %v10505_v3 }
 0x489   : > { %9611 = vmatprep.subr.bf16.mxu0 %v10505_v3 }
 0x48a   : > { %v908_v8 = vpop.permute.xlu1 %907 }
 0x48f   : > { %9602 = vmatmul.mubr.msk.bf16.vlgmr.msra.gmra.mrb[24].mxu0 %vm1263_vm7, %v896_v41 }
 0x490   : > { %9612 = vmatpush3.bf16.msra.mxu0 %v1683_v7  ;;  %9613 = vmatprep.mubr.msk.bf16.mxu0 %vm10506_vm0, %v10505_v3 }
 0x491   : > { %9623 = vmatprep.subr.bf16.mxu0 %v10505_v3 }
 0x497   : > { %9614 = vmatmul.mubr.msk.bf16.vlgmr.msra.gmra.mrb[28].mxu0 %vm1263_vm7, %v900_v45 }
 0x498   : > { %9625 = vmatprep.mubr.msk.bf16.mxu0 %vm10506_vm0, %v10505_v3 }
 0x49b   : > { %v912_v13 = vpop.permute.xlu0 %911 }
 0x4a1   : > { %v1143_v9 = vpop.trf.xlu1 }
 0x4a2   : > { %v1637_v10 = vsel %vm1267_vm6, %v1143_v9, 0 }
 0x4a3   : > { %9606 = vmatpush3.bf16.msra.mxu1 %v1637_v10 }
 0x4a4   : > { %9617 = vmatprep.subr.bf16.mxu1 %v10505_v3 }
 0x4a5   : > { %v1175_v11 = vpop.trf.xlu1 }
 0x4a6   : > { %9608 = vmatmul.mubr.msk.bf16.vlgmr.msra.gmra.mrb[16].mxu1 %vm1263_vm7, %v10860_v43  ;;  %v1729_v12 = vsel %vm1267_vm6, %v1175_v11, 0 }
 0x4a7   : > { %9618 = vmatpush3.bf16.msra.mxu1 %v1729_v12  ;;  %9619 = vmatprep.mubr.msk.bf16.mxu1 %vm10506_vm0, %v10505_v3 }
 0x4a8   : > { %9629 = vmatprep.subr.bf16.mxu1 %v10505_v3 }
 0x4a9   : > { %v1207_v14 = vpop.trf.xlu1 }
 0x4aa   : > { %v1821_v15 = vsel %vm1267_vm6, %v1207_v14, 0 }
 0x4ad   : > { %v1191_v16 = vpop.trf.xlu0  ;;  %v1223_v17 = vpop.trf.xlu1 }
 0x4ae   : > { %v1775_v18 = vsel %vm1267_vm6, %v1191_v16, 0  ;;  %9620 = vmatmul.mubr.msk.bf16.vlgmr.msra.gmra.mrb[20].mxu1 %vm1263_vm7, %v10868_v46  ;;  %v1867_v20 = vsel %vm1267_vm6, %v1223_v17, 0 }
 0x4af   : > { %9624 = vmatpush3.bf16.msra.mxu0 %v1775_v18  ;;  %9630 = vmatpush3.bf16.msra.mxu1 %v1821_v15 }
 0x4b0   : > { %9631 = vmatprep.mubr.msk.bf16.mxu1 %vm10506_vm0, %v10505_v3  ;;  %9635 = vmatprep.subr.bf16.mxu0 %v10505_v3 }
 0x4b1   : > { %v1239_v21 = vpop.trf.xlu1  ;;  %9641 = vmatprep.subr.bf16.mxu1 %v10505_v3 }
 0x4b2   : > { %9626 = vmatmul.mubr.msk.bf16.vlgmr.msra.gmra.mrb[32].mxu0 %vm1263_vm7, %v10874_v49  ;;  %v1913_v22 = vsel %vm1267_vm6, %v1239_v21, 0 }
 0x4b3   : > { %9636 = vmatpush3.bf16.msra.mxu0 %v1867_v20  ;;  %9637 = vmatprep.mubr.msk.bf16.mxu0 %vm10506_vm0, %v10505_v3 }
 0x4b4   : > { %9647 = vmatprep.subr.bf16.mxu0 %v10505_v3 }
 0x4b5   : > { %v1255_v23 = vpop.trf.xlu1 }
 0x4b6   : > { %9632 = vmatmul.mubr.msk.bf16.vlgmr.msra.gmra.mrb[24].mxu1 %vm1263_vm7, %v10872_v47  ;;  %v1959_v24 = vsel %vm1267_vm6, %v1255_v23, 0 }
 0x4b7   : > { %9642 = vmatpush3.bf16.msra.mxu1 %v1913_v22  ;;  %9643 = vmatprep.mubr.msk.bf16.mxu1 %vm10506_vm0, %v10505_v3 }
 0x4b8   : > { %9653 = vmatprep.subr.bf16.mxu1 %v10505_v3 }
 0x4ba   : > { %9638 = vmatmul.mubr.msk.bf16.vlgmr.msra.gmra.mrb[36].mxu0 %vm1263_vm7, %v908_v8 }
 0x4bb   : > { %9648 = vmatpush3.bf16.msra.mxu0 %v1959_v24  ;;  %9649 = vmatprep.mubr.msk.bf16.mxu0 %vm10506_vm0, %v10505_v3 }
 0x4bc   : > { %9659 = vmatprep.subr.bf16.mxu0 %v10505_v3 }
 0x4be   : > { %9644 = vmatmul.mubr.msk.bf16.vlgmr.msra.gmra.mrb[28].mxu1 %vm1263_vm7, %v10878_v53 }
 0x4bf   : > { %9655 = vmatprep.mubr.msk.bf16.mxu1 %vm10506_vm0, %v10505_v3 }
 0x4c2   : > { %9650 = vmatmul.mubr.msk.bf16.vlgmr.msra.gmra.mrb[40].mxu0 %vm1263_vm7, %v912_v13  ;;  %v963_v25 = vpop.permute.xlu0 %962 }
 0x4c3   : > { %2209 = vxpose.xlu1.c.b16.start.end [1/1] (short) (narrow) %v963_v25, 16  ;;  %9661 = vmatprep.mubr.msk.bf16.mxu0 %vm10506_vm0, %v10505_v3 }
 0x4c5   : > { %v966_v26 = vpop.permute.xlu1 %965 }
 0x4c6   : > { %2225 = vxpose.xlu0.c.b16.start.end [1/1] (short) (narrow) %v966_v26, 16  ;;  %v969_v27 = vpop.permute.xlu0 %968 }
 0x4c9   : > { %v975_v29 = vpop.permute.xlu1 %974 }
 0x4ca   : > { %2241 = vxpose.xlu0.c.b16.start.end [1/1] (short) (narrow) %v969_v27, 16  ;;  %v972_v28 = vpop.permute.xlu0 %971 }
 0x4cb   : > { %2257 = vxpose.xlu1.c.b16.start.end [1/1] (short) (narrow) %v972_v28, 16 }
 0x4cd   : > { %v981_v32 = vpop.permute.xlu1 %980 }
 0x4ce   : > { %2273 = vxpose.xlu0.c.b16.start.end [1/1] (short) (narrow) %v975_v29, 16  ;;  %v978_v30 = vpop.permute.xlu0 %977 }
 0x4cf   : > { %2289 = vxpose.xlu1.c.b16.start.end [1/1] (short) (narrow) %v978_v30, 16 }
 0x4d2   : > { %2305 = vxpose.xlu0.c.b16.start.end [1/1] (short) (narrow) %v981_v32, 16 }
 0x4f1   : > { %v1305_v35 = vpop.f32.mrb[4].mxu0 }
 0x4f2   : > { %v10964_v36 = vadd.f32 %v1305_v35, %v10961_v34  ;;  %v9561_v37 = vpop.f32.mrb[5].mxu0 }
 0x4f3   : > { %v1308_v39 = vpop.f32.mrb[6].mxu0 }
 0x4f4   : > { %v9562_v40 = vpop.f32.mrb[7].mxu0  ;;  %v2001_v41 = vsel %vm1263_vm7, %v10964_v36, -inf }
 0x4f5   : > { %2002 = vmax.xlane.f32.xlu1 %v2001_v41 }
 0x529   : > { %v11008_v33 = vpop.trf.xlu1 }
 0x531   : > { %v11010_v35 = vpop.trf.xlu1 }
 0x542   : > { %v1351_v42 = vpop.f32.mrb[8].mxu0 }
 0x543   : > { %v10969_v43 = vadd.f32 %v1351_v42, %v10961_v34  ;;  %v9567_v44 = vpop.f32.mrb[9].mxu0 }
 0x544   : > { %v1354_v4 = vpop.f32.mrb[10].mxu0 }
 0x545   : > { %v9568_v45 = vpop.f32.mrb[11].mxu0  ;;  %v2004_v46 = vsel %vm1263_vm7, %v10969_v43, -inf  ;;  %v11017_v4 = vpop.trf.xlu1 }
 0x546   : > { %2005 = vmax.xlane.f32.xlu1 %v2004_v46 }
 0x54a   : > { %v1397_v47 = vpop.f32.mrb[12].mxu0 }
 0x54b   : > { %v10974_v49 = vadd.f32 %v1397_v47, %v10961_v34  ;;  %v9573_v51 = vpop.f32.mrb[13].mxu0 }
 0x54c   : > { %v1400_v52 = vpop.f32.mrb[14].mxu0 }
 0x54d   : > { %v9574_v53 = vpop.f32.mrb[15].mxu0  ;;  %v2007_v54 = vsel %vm1263_vm7, %v10974_v49, -inf }
 0x54e   : > { %v1489_v55 = vpop.f32.mrb[8].mxu1  ;;  %2008 = vmax.xlane.f32.xlu0 %v2007_v54 }
 0x54f   : > { %v10979_v56 = vadd.f32 %v1489_v55, %v10961_v34  ;;  %v9585_v57 = vpop.f32.mrb[9].mxu1 }
 0x550   : > { %v1492_v58 = vpop.f32.mrb[10].mxu1 }
 0x551   : > { %v9586_v59 = vpop.f32.mrb[11].mxu1  ;;  %v2013_v60 = vsel %vm1263_vm7, %v10979_v56, -inf }
 0x552   : > { %2014 = vmax.xlane.f32.xlu1 %v2013_v60  ;;  %v1443_v61 = vpop.f32.mrb[16].mxu0 }
 0x553   : > { %v10984_v62 = vadd.f32 %v1443_v61, %v10961_v34  ;;  %v9579_v63 = vpop.f32.mrb[17].mxu0 }
 0x554   : > { %v1446_v0 = vpop.f32.mrb[18].mxu0 }
 0x555   : > { %v9580_v1 = vpop.f32.mrb[19].mxu0  ;;  %v2010_v6 = vsel %vm1263_vm7, %v10984_v62, -inf }
 0x556   : > { %v1581_v7 = vpop.f32.mrb[12].mxu1  ;;  %2011 = vmax.xlane.f32.xlu1 %v2010_v6 }
 0x557   : > { %v10989_v8 = vadd.f32 %v1581_v7, %v10961_v34  ;;  %v9597_v9 = vpop.f32.mrb[13].mxu1 }
 0x558   : > { %v1584_v10 = vpop.f32.mrb[14].mxu1 }
 0x559   : > { %v9598_v11 = vpop.f32.mrb[15].mxu1  ;;  %v2019_v12 = vsel %vm1263_vm7, %v10989_v8, -inf }
 0x55a   : > { %2020 = vmax.xlane.f32.xlu0 %v2019_v12  ;;  %v1535_v13 = vpop.f32.mrb[20].mxu0 }
 0x55b   : > { %v10994_v14 = vadd.f32 %v1535_v13, %v10961_v34  ;;  %v9591_v15 = vpop.f32.mrb[21].mxu0 }
 0x55c   : > { %v1538_v16 = vpop.f32.mrb[22].mxu0 }
 0x55d   : > { %v9592_v17 = vpop.f32.mrb[23].mxu0  ;;  %v2016_v18 = vsel %vm1263_vm7, %v10994_v14, -inf }
 0x55e   : > { %2017 = vmax.xlane.f32.xlu1 %v2016_v18 }
 0x562   : > { %v1627_v20 = vpop.f32.mrb[24].mxu0 }
 0x563   : > { %v10999_v21 = vadd.f32 %v1627_v20, %v10961_v34  ;;  %v9603_v22 = vpop.f32.mrb[25].mxu0 }
 0x564   : > { %v1630_v23 = vpop.f32.mrb[26].mxu0 }
 0x565   : > { %v9604_v24 = vpop.f32.mrb[27].mxu0  ;;  %v2022_v25 = vsel %vm1263_vm7, %v10999_v21, -inf }
 0x566   : > { %2023 = vmax.xlane.f32.xlu1 %v2022_v25 }
 0x56a   : > { %v1719_v26 = vpop.f32.mrb[28].mxu0 }
 0x56b   : > { %v11004_v27 = vadd.f32 %v1719_v26, %v10961_v34  ;;  %v9615_v28 = vpop.f32.mrb[29].mxu0 }
 0x56c   : > { %v1722_v29 = vpop.f32.mrb[30].mxu0 }
 0x56d   : > { %v9616_v30 = vpop.f32.mrb[31].mxu0  ;;  %v2028_v32 = vsel %vm1263_vm7, %v11004_v27, -inf }
 0x56e   : > { %2029 = vmax.xlane.f32.xlu1 %v2028_v32 }
 0x579   : > { %v1673_v37 = vpop.f32.mrb[16].mxu1 }
 0x57a   : > { %v11013_v39 = vadd.f32 %v1673_v37, %v10961_v34  ;;  %v9609_v40 = vpop.f32.mrb[17].mxu1 }
 0x57b   : > { %v1676_v41 = vpop.f32.mrb[18].mxu1  ;;  %v984_v40 = vpop.permute.xlu0 %983 }
 0x57c   : > { %v9610_v42 = vpop.f32.mrb[19].mxu1  ;;  %v2025_v44 = vsel %vm1263_vm7, %v11013_v39, -inf }
 0x57d   : > { %2026 = vmax.xlane.f32.xlu0 %v2025_v44 }
 0x57f   : > { %v11051_v41 = vpop.permute.xlu0 %989 }
 0x581   : > { %v1765_v45 = vpop.f32.mrb[20].mxu1 }
 0x582   : > { %v11020_v46 = vadd.f32 %v1765_v45, %v10961_v34  ;;  %v9621_v47 = vpop.f32.mrb[21].mxu1  ;;  %v2003_v51 = vpop.xlane.xlu1 %2002 }
 0x583   : > { %v2049_v52 = vsub.f32 %v10964_v36, %v2003_v51  ;;  %v1768_v53 = vpop.f32.mrb[22].mxu1  ;;  %v11056_v44 = vpop.trf.xlu0 }
 0x584   : > { %v9622_v54 = vpop.f32.mrb[23].mxu1  ;;  %v2031_v55 = vsel %vm1263_vm7, %v11020_v46, -inf }
 0x585   : > { %v2065_v57 = vmul.f32 1.442695, %v2049_v52  ;;  %2032 = vmax.xlane.f32.xlu0 %v2031_v55  ;;  %v1811_v58 = vpop.f32.mrb[32].mxu0 }
 0x586   : > { %v9627_v59 = vpop.f32.mrb[33].mxu0  ;;  %v11033_v16 = vadd.f32 %v1811_v58, %v10961_v34 }
 0x587   : > { %10298 = vpow2.f32 %v2065_v57  ;;  %v1814_v60 = vpop.f32.mrb[34].mxu0  ;;  %v11060_v47 = vpop.trf.xlu0 }
 0x588   : > { %v9628_v61 = vpop.f32.mrb[35].mxu0  ;;  %v2034_v26 = vsel %vm1263_vm7, %v11033_v16, -inf }
 0x589   : > { %v1857_v63 = vpop.f32.mrb[24].mxu1 }
 0x58a   : > { %v11026_v0 = vadd.f32 %v1857_v63, %v10961_v34  ;;  %v9633_v1 = vpop.f32.mrb[25].mxu1 }
 0x58b   : > { %v1860_v6 = vpop.f32.mrb[26].mxu1  ;;  %v11062_v51 = vpop.trf.xlu0 }
 0x58c   : > { %v9634_v7 = vpop.f32.mrb[27].mxu1  ;;  %v2037_v36 = vsel %vm1263_vm7, %v11026_v0, -inf }
 0x58d   : > { %2038 = vmax.xlane.f32.xlu0 %v2037_v36  ;;  %v1903_v9 = vpop.f32.mrb[36].mxu0 }
 0x58e   : > { %v9639_v10 = vpop.f32.mrb[37].mxu0  ;;  %v11038_v24 = vadd.f32 %v1903_v9, %v10961_v34 }
 0x58f   : > { %v1906_v11 = vpop.f32.mrb[38].mxu0  ;;  %v11064_v52 = vpop.trf.xlu0 }
 0x590   : > { %v9640_v12 = vpop.f32.mrb[39].mxu0  ;;  %v2040_v32 = vsel %vm1263_vm7, %v11038_v24, -inf }
 0x591   : > { %v11030_v13 = vpop.eup %10298  ;;  %v1949_v15 = vpop.f32.mrb[28].mxu1 }
 0x592   : > { %v9645_v17 = vpop.f32.mrb[29].mxu1  ;;  %v2097_v18 = vsel %vm1263_vm7, %v11030_v13, 0.0  ;;  %v11054_v42 = vadd.f32 %v1949_v15, %v10961_v34 }
 0x593   : > { %v1952_v20 = vpop.f32.mrb[30].mxu1  ;;  %2098 = vadd.xlane.f32.xlu1 %v2097_v18  ;;  %v11067_v55 = vpop.trf.xlu0 }
 0x594   : > { %v9646_v22 = vpop.f32.mrb[31].mxu1  ;;  %v2043_v45 = vsel %vm1263_vm7, %v11054_v42, -inf }
 0x595   : > { %v1995_v23 = vpop.f32.mrb[40].mxu0 }
 0x596   : > { %v9651_v25 = vpop.f32.mrb[41].mxu0  ;;  %v11043_v30 = vadd.f32 %v1995_v23, %v10961_v34 }
 0x597   : > { %2035 = vmax.xlane.f32.xlu1 %v2034_v26  ;;  %v1998_v28 = vpop.f32.mrb[42].mxu0 }
 0x598   : > { %v9652_v29 = vpop.f32.mrb[43].mxu0  ;;  %v2046_v37 = vsel %vm1263_vm7, %v11043_v30, -inf }
 0x59b   : > { %2041 = vmax.xlane.f32.xlu1 %v2040_v32 }
 0x59f   : > { %2047 = vmax.xlane.f32.xlu1 %v2046_v37 }
 0x5a3   : > { %995 = vrot.lane.b32.xlu0 %v10848_v38, %s12436_s15 }
 0x5c2   : > { %2044 = vmax.xlane.f32.xlu0 %v2043_v45 }
 0x5d3   : > { %v2006_v53 = vpop.xlane.xlu1 %2005 }
 0x5d4   : > { %v2050_v54 = vsub.f32 %v10969_v43, %v2006_v53 }
 0x5d6   : > { %v2067_v57 = vmul.f32 1.442695, %v2050_v54 }
 0x5d8   : > { %10300 = vpow2.f32 %v2067_v57 }
 0x5db   : > { %v2009_v58 = vpop.xlane.xlu0 %2008 }
 0x5dc   : > { %v2051_v59 = vsub.f32 %v10974_v49, %v2009_v58 }
 0x5de   : > { %v2069_v1 = vmul.f32 1.442695, %v2051_v59 }
 0x5df   : > { %v2015_v60 = vpop.xlane.xlu1 %2014 }
 0x5e0   : > { %v2053_v61 = vsub.f32 %v10979_v56, %v2015_v60 }
 0x5e2   : > { %v11071_v63 = vpop.eup %10300  ;;  %v2073_v6 = vmul.f32 1.442695, %v2053_v61 }
 0x5e3   : > { %v2100_v7 = vsel %vm1263_vm7, %v11071_v63, 0.0 }
 0x5e4   : > { %10302 = vpow2.f32 %v2073_v6  ;;  %2101 = vadd.xlane.f32.xlu1 %v2100_v7 }
 0x5e5   : > { %10304 = vpow2.f32 %v2069_v1 }
 0x5e7   : > { %v2021_v43 = vpop.xlane.xlu0 %2020 }
 0x5e8   : > { %v2055_v36 = vsub.f32 %v10989_v8, %v2021_v43  ;;  %v2012_v8 = vpop.xlane.xlu1 %2011 }
 0x5e9   : > { %v2052_v54 = vsub.f32 %v10984_v62, %v2012_v8 }
 0x5ea   : > { %v2077_v9 = vmul.f32 1.442695, %v2055_v36 }
 0x5ec   : > { %10306 = vpow2.f32 %v2077_v9  ;;  %v2018_v17 = vpop.xlane.xlu1 %2017 }
 0x5ed   : > { %v2054_v60 = vsub.f32 %v10994_v14, %v2018_v17 }
 0x5ee   : > { %v11076_v10 = vpop.eup %10302 }
 0x5ef   : > { %v2109_v49 = vsel %vm1263_vm7, %v11076_v10, 0.0  ;;  %v11080_v56 = vpop.eup %10304  ;;  %v2075_v62 = vmul.f32 1.442695, %v2054_v60 }
 0x5f0   : > { %2110 = vadd.xlane.f32.xlu0 %v2109_v49  ;;  %v2103_v11 = vsel %vm1263_vm7, %v11080_v56, 0.0 }
 0x5f3   : > { %v2024_v22 = vpop.xlane.xlu1 %2023 }
 0x5f4   : > { %2104 = vadd.xlane.f32.xlu0 %v2103_v11 }
 0x5f6   : > { %v11084_v12 = vpop.eup %10306 }
 0x5f7   : > { %v2115_v15 = vsel %vm1263_vm7, %v11084_v12, 0.0 }
 0x5f8   : > { %2116 = vadd.xlane.f32.xlu0 %v2115_v15 }
 0x5fb   : > { %v2030_v28 = vpop.xlane.xlu1 %2029 }
 0x5fc   : > { %v2058_v43 = vsub.f32 %v11004_v27, %v2030_v28 }
 0x5fe   : > { %v2083_v9 = vmul.f32 1.442695, %v2058_v43 }
 0x60a   : > { %v2027_v18 = vpop.xlane.xlu0 %2026 }
 0x60b   : > { %v2057_v20 = vsub.f32 %v11013_v39, %v2027_v18 }
 0x60d   : > { %v2081_v25 = vmul.f32 1.442695, %v2057_v20 }
 0x60e   : > { %1001 = vrot.lane.b32.xlu0 %v10848_v38, %s12437_s1 }
 0x60f   : > { %10308 = vpow2.f32 %v2081_v25 }
 0x611   : > { %2321 = vxpose.xlu1.c.b16.start.end [1/1] (short) (narrow) %v984_v40, 16 }
 0x612   : > { %v2033_v23 = vpop.xlane.xlu0 %2032 }
 0x613   : > { %v2059_v26 = vsub.f32 %v11020_v46, %v2033_v23 }
 0x615   : > { %986 = vrot.lane.b32.xlu1 %v10848_v38, %s12434_s20  ;;  %v2085_v32 = vmul.f32 1.442695, %v2059_v26 }
 0x619   : > { %992 = vrot.lane.b32.xlu1 %v10848_v38, %s12435_s2  ;;  %v11099_v45 = vpop.eup %10308 }
 0x61a   : > { %v2039_v29 = vpop.xlane.xlu0 %2038  ;;  %v2121_v46 = vsel %vm1263_vm7, %v11099_v45, 0.0 }
 0x61b   : > { %v2061_v37 = vsub.f32 %v11026_v0, %v2039_v29  ;;  %v2071_v0 = vmul.f32 1.442695, %v2052_v54 }
 0x61d   : > { %998 = vrot.lane.b32.xlu1 %v10848_v38, %s12438_s22  ;;  %v2089_v39 = vmul.f32 1.442695, %v2061_v37 }
 0x61e   : > { %v11137_v18 = vpop.permute.xlu0 %995 }
 0x620   : > { %v2099_v40 = vpop.xlane.xlu1 %2098 }
 0x621   : > { %10310 = vrcp.f32 %v2099_v40 }
 0x622   : > { %10312 = vpow2.f32 %v2085_v32 }
 0x623   : > { %10314 = vpow2.f32 %v2089_v39 }
 0x624   : > { %10316 = vpow2.f32 %v2071_v0  ;;  %v2036_v36 = vpop.xlane.xlu1 %2035 }
 0x625   : > { %10318 = vpow2.f32 %v2075_v62  ;;  %v2060_v49 = vsub.f32 %v11033_v16, %v2036_v36 }
 0x627   : > { %v2087_v11 = vmul.f32 1.442695, %v2060_v49 }
 0x628   : > { %v2042_v37 = vpop.xlane.xlu1 %2041 }
 0x629   : > { %v2062_v39 = vsub.f32 %v11038_v24, %v2042_v37 }
 0x62b   : > { %v10311_v53 = vpop.eup %10310 }
 0x62c   : > { %v2161_v57 = vmul.f32 %v10311_v53, %v11030_v13  ;;  %v11105_v58 = vpop.eup %10312  ;;  %v2056_v13 = vsub.f32 %v10999_v21, %v2024_v22  ;;  %v2048_v40 = vpop.xlane.xlu1 %2047  ;;  %v2091_v53 = vmul.f32 1.442695, %v2062_v39 }
 0x62d   : > { %2122 = vadd.xlane.f32.xlu0 %v2121_v46  ;;  %v2127_v61 = vsel %vm1263_vm7, %v11105_v58, 0.0  ;;  %v11111_v6 = vpop.eup %10314  ;;  %v2064_v54 = vsub.f32 %v11043_v30, %v2048_v40 }
 0x62e   : > { %v2177_v59 = vpack.c.bf16 %v2161_v57, %v2161_v57  ;;  %v2133_v7 = vsel %vm1263_vm7, %v11111_v6, 0.0  ;;  %v2079_v14 = vmul.f32 1.442695, %v2056_v13  ;;  %v11123_v21 = vpop.eup %10316 }
 0x62f   : > { %v2106_v15 = vsel %vm1263_vm7, %v11123_v21, 0.0  ;;  %v11127_v8 = vpop.eup %10318  ;;  %v2095_v46 = vmul.f32 1.442695, %v2064_v54 }
 0x630   : > { %v2453_v1 = vsel %vm1263_vm7, %v2177_v59, 0  ;;  %10320 = vpow2.f32 %v2079_v14  ;;  %v2112_v27 = vsel %vm1263_vm7, %v11127_v8, 0.0 }
 0x631   : > { %2128 = vadd.xlane.f32.xlu0 %v2127_v61  ;;  %9654 = vmatpush3.bf16.xpose.msra.mxu1 %v2453_v1  ;;  %10322 = vpow2.f32 %v2083_v9 }
 0x632   : > { %9665 = vmatprep.subr.bf16.mxu1 %v10505_v3  ;;  %10324 = vpow2.f32 %v2087_v11 }
 0x635   : > { %2134 = vadd.xlane.f32.xlu0 %v2133_v7 }
 0x638   : > { %9656 = vmatmul.mubr.msk.bf16.vlgmr.msra.gmra.mrb[32].mxu1 %vm1263_vm7, %v11056_v44 }
 0x639   : > { %9667 = vmatprep.mubr.msk.bf16.mxu1 %vm10506_vm0, %v10505_v3 }
 0x63a   : > { %v11131_v44 = vpop.eup %10320 }
 0x63b   : > { %v2118_v16 = vsel %vm1263_vm7, %v11131_v44, 0.0  ;;  %v11135_v17 = vpop.eup %10322 }
 0x63c   : > { %v2124_v20 = vsel %vm1263_vm7, %v11135_v17, 0.0  ;;  %v11141_v22 = vpop.eup %10324 }
 0x63d   : > { %v2130_v26 = vsel %vm1263_vm7, %v11141_v22, 0.0 }
 0x641   : > { %2107 = vadd.xlane.f32.xlu1 %v2106_v15 }
 0x645   : > { %2113 = vadd.xlane.f32.xlu1 %v2112_v27 }
 0x649   : > { %2119 = vadd.xlane.f32.xlu1 %v2118_v16 }
 0x64d   : > { %2125 = vadd.xlane.f32.xlu1 %v2124_v20 }
 0x64f   : > { %v2045_v23 = vpop.xlane.xlu0 %2044 }
 0x650   : > { %v2063_v25 = vsub.f32 %v11054_v42, %v2045_v23 }
 0x651   : > { %2131 = vadd.xlane.f32.xlu1 %v2130_v26 }
 0x652   : > { %v2093_v28 = vmul.f32 1.442695, %v2063_v25 }
 0x654   : > { %10326 = vpow2.f32 %v2093_v28 }
 0x65e   : > { %v11146_v29 = vpop.eup %10326 }
 0x65f   : > { %v2139_v32 = vsel %vm1263_vm7, %v11146_v29, 0.0 }
 0x660   : > { %2140 = vadd.xlane.f32.xlu0 %v2139_v32 }
 0x662   : > { %1004 = vrot.lane.b32.xlu1 %v10848_v38, %s12439_s23 }
 0x671   : > { %v2102_v42 = vpop.xlane.xlu1 %2101 }
 0x672   : > { %10328 = vrcp.f32 %v2102_v42 }
 0x673   : > { %10330 = vpow2.f32 %v2091_v53 }
 0x674   : > { %10332 = vpow2.f32 %v2095_v46 }
 0x677   : > { %v2329_v24 = vpop.trf.xlu1 }
 0x67c   : > { %v10329_v57 = vpop.eup %10328 }
 0x67d   : > { %v2111_v59 = vpop.xlane.xlu0 %2110  ;;  %v2162_v0 = vmul.f32 %v10329_v57, %v11071_v63  ;;  %v11156_v1 = vpop.eup %10330 }
 0x67e   : > { %v2136_v30 = vsel %vm1263_vm7, %v11156_v1, 0.0  ;;  %v11161_v62 = vpop.eup %10332 }
 0x67f   : > { %v2178_v60 = vpack.c.bf16 %v2162_v0, %v2162_v0  ;;  %v2142_v7 = vsel %vm1263_vm7, %v11161_v62, 0.0 }
 0x681   : > { %v2105_v61 = vpop.xlane.xlu0 %2104  ;;  %v2499_v38 = vsel %vm1263_vm7, %v2178_v60, 0 }
 0x682   : > { %10334 = vrcp.f32 %v2105_v61  ;;  %9660 = vmatpush3.bf16.xpose.msra.mxu0 %v2499_v38 }
 0x683   : > { %9671 = vmatprep.subr.bf16.mxu0 %v10505_v3  ;;  %10336 = vrcp.f32 %v2111_v59 }
 0x685   : > { %v2117_v63 = vpop.xlane.xlu0 %2116 }
 0x686   : > { %2137 = vadd.xlane.f32.xlu1 %v2136_v30  ;;  %10338 = vrcp.f32 %v2117_v63 }
 0x687   : > { %v987_v13 = vpop.permute.xlu1 %986 }
 0x689   : > { %9662 = vmatmul.mubr.msk.bf16.vlgmr.msra.gmra.mrb[44].mxu0 %vm1263_vm7, %v11008_v33 }
 0x68a   : > { %2143 = vadd.xlane.f32.xlu1 %v2142_v7  ;;  %9673 = vmatprep.mubr.msk.bf16.mxu0 %vm10506_vm0, %v10505_v3 }
 0x68b   : > { %v993_v9 = vpop.permute.xlu1 %992 }
 0x68c   : > { %v10335_v14 = vpop.eup %10334 }
 0x68d   : > { %2337 = vxpose.xlu0.c.b16.start.end [1/1] (short) (narrow) %v987_v13, 16  ;;  %v2163_v43 = vmul.f32 %v10335_v14, %v11080_v56  ;;  %v10337_v36 = vpop.eup %10336 }
 0x68e   : > { %v2165_v33 = vmul.f32 %v10337_v36, %v11076_v10 }
 0x68f   : > { %v2179_v49 = vpack.c.bf16 %v2163_v43, %v2163_v43  ;;  %v999_v15 = vpop.permute.xlu1 %998 }
 0x690   : > { %v2181_v27 = vpack.c.bf16 %v2165_v33, %v2165_v33  ;;  %v10339_v16 = vpop.eup %10338 }
 0x691   : > { %2369 = vxpose.xlu0.c.b16.start.end [1/1] (short) (narrow) %v993_v9, 16  ;;  %v2545_v11 = vsel %vm1263_vm7, %v2179_v49, 0  ;;  %v2167_v20 = vmul.f32 %v10339_v16, %v11084_v12 }
 0x692   : > { %9666 = vmatpush3.bf16.xpose.msra.mxu1 %v2545_v11  ;;  %v2637_v56 = vsel %vm1263_vm7, %v2181_v27, 0 }
 0x693   : > { %9677 = vmatprep.subr.bf16.mxu1 %v10505_v3  ;;  %v2183_v10 = vpack.c.bf16 %v2167_v20, %v2167_v20 }
 0x695   : > { %2401 = vxpose.xlu0.c.b16.start.end [1/1] (short) (narrow) %v999_v15, 16  ;;  %v2729_v23 = vsel %vm1263_vm7, %v2183_v10, 0 }
 0x699   : > { %9668 = vmatmul.mubr.msk.bf16.vlgmr.msra.gmra.mrb[36].mxu1 %vm1263_vm7, %v11060_v47  ;;  %v1002_v47 = vpop.permute.xlu0 %1001 }
 0x69a   : > { %9678 = vmatpush3.bf16.xpose.msra.mxu1 %v2637_v56  ;;  %9679 = vmatprep.mubr.msk.bf16.mxu1 %vm10506_vm0, %v10505_v3 }
 0x69b   : > { %9689 = vmatprep.subr.bf16.mxu1 %v10505_v3 }
 0x6a1   : > { %9680 = vmatmul.mubr.msk.bf16.vlgmr.msra.gmra.mrb[40].mxu1 %vm1263_vm7, %v11010_v35 }
 0x6a2   : > { %9690 = vmatpush3.bf16.xpose.msra.mxu1 %v2729_v23  ;;  %9691 = vmatprep.mubr.msk.bf16.mxu1 %vm10506_vm0, %v10505_v3 }
 0x6a3   : > { %9701 = vmatprep.subr.bf16.mxu1 %v10505_v3 }
 0x6a9   : > { %9692 = vmatmul.mubr.msk.bf16.vlgmr.msra.gmra.mrb[44].mxu1 %vm1263_vm7, %v11017_v4 }
 0x6aa   : > { %9703 = vmatprep.mubr.msk.bf16.mxu1 %vm10506_vm0, %v10505_v3 }
 0x6b7   : > { %2353 = vxpose.xlu1.c.b16.start.end [1/1] (short) (narrow) %v11051_v41, 16 }
 0x6ba   : > { %v2123_v12 = vpop.xlane.xlu0 %2122 }
 0x6bb   : > { %10340 = vrcp.f32 %v2123_v12  ;;  %2385 = vxpose.xlu1.c.b16.start.end [1/1] (short) (narrow) %v11137_v18, 16 }
 0x6be   : > { %v2129_v35 = vpop.xlane.xlu0 %2128 }
 0x6bf   : > { %10342 = vrcp.f32 %v2129_v35  ;;  %2417 = vxpose.xlu1.c.b16.start.end [1/1] (short) (narrow) %v1002_v47, 16 }
 0x6c2   : > { %v2135_v7 = vpop.xlane.xlu0 %2134 }
 0x6c5   : > { %v10341_v25 = vpop.eup %10340 }
 0x6c6   : > { %v2169_v26 = vmul.f32 %v10341_v25, %v11099_v45 }
 0x6c8   : > { %v2185_v28 = vpack.c.bf16 %v2169_v26, %v2169_v26 }
 0x6c9   : > { %v10343_v32 = vpop.eup %10342 }
 0x6ca   : > { %v2821_v4 = vsel %vm1263_vm7, %v2185_v28, 0  ;;  %v2171_v37 = vmul.f32 %v10343_v32, %v11105_v58 }
 0x6cb   : > { %9702 = vmatpush3.bf16.xpose.msra.mxu1 %v2821_v4 }
 0x6cc   : > { %9713 = vmatprep.subr.bf16.mxu1 %v10505_v3  ;;  %v2187_v40 = vpack.c.bf16 %v2171_v37, %v2171_v37 }
 0x6ce   : > { %v2108_v41 = vpop.xlane.xlu1 %2107  ;;  %v2913_v39 = vsel %vm1263_vm7, %v2187_v40, 0 }
 0x6cf   : > { %10344 = vrcp.f32 %v2108_v41 }
 0x6d2   : > { %9704 = vmatmul.mubr.msk.bf16.vlgmr.msra.gmra.mrb[48].mxu1 %vm1263_vm7, %v2329_v24  ;;  %v2114_v18 = vpop.xlane.xlu1 %2113 }
 0x6d3   : > { %10346 = vrcp.f32 %v2114_v18  ;;  %9714 = vmatpush3.bf16.xpose.msra.mxu1 %v2913_v39  ;;  %9715 = vmatprep.mubr.msk.bf16.mxu1 %vm10506_vm0, %v10505_v3 }
 0x6d4   : > { %9725 = vmatprep.subr.bf16.mxu1 %v10505_v3 }
 0x6d6   : > { %v2120_v45 = vpop.xlane.xlu1 %2119 }
 0x6d7   : > { %10348 = vrcp.f32 %v2120_v45 }
 0x6d9   : > { %v10345_v58 = vpop.eup %10344 }
 0x6da   : > { %v2126_v42 = vpop.xlane.xlu1 %2125  ;;  %v2164_v53 = vmul.f32 %v10345_v58, %v11123_v21 }
 0x6db   : > { %10350 = vrcp.f32 %v2126_v42 }
 0x6dc   : > { %v2180_v54 = vpack.c.bf16 %v2164_v53, %v2164_v53 }
 0x6dd   : > { %v10347_v46 = vpop.eup %10346 }
 0x6de   : > { %v2132_v57 = vpop.xlane.xlu1 %2131  ;;  %v2591_v59 = vsel %vm1263_vm7, %v2180_v54, 0  ;;  %v2166_v0 = vmul.f32 %v10347_v46, %v11127_v8 }
 0x6df   : > { %9672 = vmatpush3.bf16.xpose.msra.mxu0 %v2591_v59  ;;  %10352 = vrcp.f32 %v2132_v57 }
 0x6e0   : > { %9683 = vmatprep.subr.bf16.mxu0 %v10505_v3  ;;  %v2182_v61 = vpack.c.bf16 %v2166_v0, %v2166_v0  ;;  %10354 = vrcp.f32 %v2135_v7 }
 0x6e1   : > { %v10349_v38 = vpop.eup %10348 }
 0x6e2   : > { %v1005_v60 = vpop.permute.xlu1 %1004  ;;  %v2683_v21 = vsel %vm1263_vm7, %v2182_v61, 0  ;;  %v2168_v24 = vmul.f32 %v10349_v38, %v11131_v44 }
 0x6e3   : > { %2433 = vxpose.xlu0.c.b16.start.end [1/1] (short) (narrow) %v1005_v60, 16 }
 0x6e4   : > { %v2184_v8 = vpack.c.bf16 %v2168_v24, %v2168_v24 }
 0x6e5   : > { %v10351_v30 = vpop.eup %10350 }
 0x6e6   : > { %9674 = vmatmul.mubr.msk.bf16.vlgmr.msra.gmra.mrb[48].mxu0 %vm1263_vm7, %v11062_v51  ;;  %v2775_v13 = vsel %vm1263_vm7, %v2184_v8, 0  ;;  %v2170_v51 = vmul.f32 %v10351_v30, %v11135_v17 }
 0x6e7   : > { %9684 = vmatpush3.bf16.xpose.msra.mxu0 %v2683_v21  ;;  %9685 = vmatprep.mubr.msk.bf16.mxu0 %vm10506_vm0, %v10505_v3 }
 0x6e8   : > { %9695 = vmatprep.subr.bf16.mxu0 %v10505_v3  ;;  %v2186_v44 = vpack.c.bf16 %v2170_v51, %v2170_v51 }
 0x6e9   : > { %v10353_v63 = vpop.eup %10352 }
 0x6ea   : > { %v2867_v14 = vsel %vm1263_vm7, %v2186_v44, 0  ;;  %v10355_v15 = vpop.eup %10354 }
 0x6eb   : > { %v2173_v16 = vmul.f32 %v10355_v15, %v11111_v6 }
 0x6ed   : > { %v2141_v43 = vpop.xlane.xlu0 %2140  ;;  %v2189_v20 = vpack.c.bf16 %v2173_v16, %v2173_v16 }
 0x6ee   : > { %9686 = vmatmul.mubr.msk.bf16.vlgmr.msra.gmra.mrb[52].mxu0 %vm1263_vm7, %v11064_v52  ;;  %v2172_v52 = vmul.f32 %v10353_v63, %v11141_v22  ;;  %10356 = vrcp.f32 %v2141_v43 }
 0x6ef   : > { %9696 = vmatpush3.bf16.xpose.msra.mxu0 %v2775_v13  ;;  %9697 = vmatprep.mubr.msk.bf16.mxu0 %vm10506_vm0, %v10505_v3  ;;  %v3005_v12 = vsel %vm1263_vm7, %v2189_v20, 0 }
 0x6f0   : > { %9707 = vmatprep.subr.bf16.mxu0 %v10505_v3  ;;  %v2188_v17 = vpack.c.bf16 %v2172_v52, %v2172_v52 }
 0x6f2   : > { %v2959_v9 = vsel %vm1263_vm7, %v2188_v17, 0 }
 0x6f3   : > { %v2345_v36 = vpop.trf.xlu0 }
 0x6f6   : > { %9698 = vmatmul.mubr.msk.bf16.vlgmr.msra.gmra.mrb[56].mxu0 %vm1263_vm7, %v11067_v55 }
 0x6f7   : > { %9708 = vmatpush3.bf16.xpose.msra.mxu0 %v2867_v14  ;;  %9709 = vmatprep.mubr.msk.bf16.mxu0 %vm10506_vm0, %v10505_v3  ;;  %v2377_v55 = vpop.trf.xlu0 }
 0x6f8   : > { %9719 = vmatprep.subr.bf16.mxu0 %v10505_v3  ;;  %v10357_v10 = vpop.eup %10356 }
 0x6f9   : > { %v2175_v35 = vmul.f32 %v10357_v10, %v11146_v29 }
 0x6fb   : > { %v2191_v28 = vpack.c.bf16 %v2175_v35, %v2175_v35  ;;  %v2409_v41 = vpop.trf.xlu0 }
 0x6fd   : > { %v3097_v29 = vsel %vm1263_vm7, %v2191_v28, 0 }
 0x6fe   : > { %9710 = vmatmul.mubr.msk.bf16.vlgmr.msra.gmra.mrb[60].mxu0 %vm1263_vm7, %v2345_v36 }
 0x6ff   : > { %9720 = vmatpush3.bf16.xpose.msra.mxu0 %v2959_v9  ;;  %9721 = vmatprep.mubr.msk.bf16.mxu0 %vm10506_vm0, %v10505_v3 }
 0x700   : > { %9731 = vmatprep.subr.bf16.mxu0 %v10505_v3 }
 0x706   : > { %9722 = vmatmul.mubr.msk.bf16.vlgmr.msra.gmra.mrb[64].mxu0 %vm1263_vm7, %v2377_v55 }
 0x707   : > { %9733 = vmatprep.mubr.msk.bf16.mxu0 %vm10506_vm0, %v10505_v3 }
 0x70b   : > { %v2489_v22 = vpop.f32.mrb[32].mxu1 }
 0x70c   : > { %v9657_v49 = vpop.f32.mrb[33].mxu1  ;;  %3185 = vxpose.xlu1.b32.start.end [1/1] (short) (narrow) %v2489_v22, 8 }
 0x70d   : > { %v2492_v11 = vpop.f32.mrb[34].mxu1 }
 0x70e   : > { %v9658_v33 = vpop.f32.mrb[35].mxu1 }
 0x713   : > { %v2138_v27 = vpop.xlane.xlu1 %2137 }
 0x714   : > { %10358 = vrcp.f32 %v2138_v27 }
 0x717   : > { %v2144_v56 = vpop.xlane.xlu1 %2143 }
 0x718   : > { %10360 = vrcp.f32 %v2144_v56 }
 0x71d   : > { %v2361_v23 = vpop.trf.xlu1 }
 0x71e   : > { %v10359_v47 = vpop.eup %10358  ;;  %9716 = vmatmul.mubr.msk.bf16.vlgmr.msra.gmra.mrb[52].mxu1 %vm1263_vm7, %v2361_v23 }
 0x71f   : > { %9726 = vmatpush3.bf16.xpose.msra.mxu1 %v3005_v12  ;;  %v2174_v25 = vmul.f32 %v10359_v47, %v11156_v1  ;;  %9727 = vmatprep.mubr.msk.bf16.mxu1 %vm10506_vm0, %v10505_v3 }
 0x720   : > { %9737 = vmatprep.subr.bf16.mxu1 %v10505_v3 }
 0x721   : > { %v2190_v6 = vpack.c.bf16 %v2174_v25, %v2174_v25  ;;  %v2393_v4 = vpop.trf.xlu1 }
 0x722   : > { %v10361_v26 = vpop.eup %10360 }
 0x723   : > { %v3051_v32 = vsel %vm1263_vm7, %v2190_v6, 0  ;;  %v2176_v37 = vmul.f32 %v10361_v26, %v11161_v62 }
 0x724   : > { %9732 = vmatpush3.bf16.xpose.msra.mxu0 %v3051_v32 }
 0x725   : > { %9743 = vmatprep.subr.bf16.mxu0 %v10505_v3  ;;  %v2192_v1 = vpack.c.bf16 %v2176_v37, %v2176_v37  ;;  %v2425_v62 = vpop.trf.xlu1 }
 0x726   : > { %9728 = vmatmul.mubr.msk.bf16.vlgmr.msra.gmra.mrb[56].mxu1 %vm1263_vm7, %v2393_v4 }
 0x727   : > { %9738 = vmatpush3.bf16.xpose.msra.mxu1 %v3097_v29  ;;  %9739 = vmatprep.mubr.msk.bf16.mxu1 %vm10506_vm0, %v10505_v3  ;;  %v3143_v40 = vsel %vm1263_vm7, %v2192_v1, 0 }
 0x728   : > { %9749 = vmatprep.subr.bf16.mxu1 %v10505_v3 }
 0x72b   : > { %9734 = vmatmul.mubr.msk.bf16.vlgmr.msra.gmra.mrb[68].mxu0 %vm1263_vm7, %v2409_v41 }
 0x72c   : > { %9744 = vmatpush3.bf16.xpose.msra.mxu0 %v3143_v40  ;;  %9745 = vmatprep.mubr.msk.bf16.mxu0 %vm10506_vm0, %v10505_v3 }
 0x72d   : > { %9769 = vmatprep.subr.bf16.mxu0 %v10505_v3 }
 0x72e   : > { %9740 = vmatmul.mubr.msk.bf16.vlgmr.msra.gmra.mrb[60].mxu1 %vm1263_vm7, %v2425_v62 }
 0x72f   : > { %9765 = vmatprep.mubr.msk.bf16.mxu1 %vm10506_vm0, %v10505_v3 }
 0x749   : > { %v2441_v18 = vpop.trf.xlu0 }
 0x74a   : > { %9746 = vmatmul.mubr.msk.bf16.vlgmr.msra.gmra.mrb[72].mxu0 %vm1263_vm7, %v2441_v18 }
 0x74b   : > { %9785 = vmatprep.mubr.msk.bf16.mxu0 %vm10506_vm0, %v10505_v3 }
 0x75c   : > { %v2535_v39 = vpop.f32.mrb[44].mxu0 }
 0x75d   : > { %3217 = vxpose.xlu0.b32.start.end [1/1] (short) (narrow) %v2535_v39, 8  ;;  %v9663_v45 = vpop.f32.mrb[45].mxu0 }
 0x75e   : > { %v2538_v58 = vpop.f32.mrb[46].mxu0 }
 0x75f   : > { %v9664_v42 = vpop.f32.mrb[47].mxu0 }
 0x76c   : > { %v2581_v53 = vpop.f32.mrb[36].mxu1 }
 0x76d   : > { %v9669_v54 = vpop.f32.mrb[37].mxu1  ;;  %3249 = vxpose.xlu0.b32.start.end [1/1] (short) (narrow) %v2581_v53, 8 }
 0x76e   : > { %v2584_v46 = vpop.f32.mrb[38].mxu1  ;;  %v10524_v54 = vmov 1983009808  }
 0x76f   : > { %v9670_v57 = vpop.f32.mrb[39].mxu1  ;;  %v3700_v46 = vunpack.c.l.s4 %v10524_v54 }
 0x771   : > { %v3701_v57 = vunpack.c.0.s8 %v3700_v46 }
 0x774   : > { %v2673_v59 = vpop.f32.mrb[40].mxu1 }
 0x775   : > { %v9681_v0 = vpop.f32.mrb[41].mxu1  ;;  %3313 = vxpose.xlu1.b32.start.end [1/1] (short) (narrow) %v2673_v59, 8 }
 0x776   : > { %v2676_v60 = vpop.f32.mrb[42].mxu1 }
 0x777   : > { %v9682_v61 = vpop.f32.mrb[43].mxu1  ;;  %v10525_v60 = vmov 1934713408  }
 0x778   : > { %v3764_v61 = vunpack.c.l.s4 %v10525_v60 }
 0x77c   : > { %v2765_v38 = vpop.f32.mrb[44].mxu1 }
 0x77d   : > { %v9693_v21 = vpop.f32.mrb[45].mxu1  ;;  %3377 = vxpose.xlu1.b32.start.end [1/1] (short) (narrow) %v2765_v38, 8  ;;  %v11262_v38 = vsub.s32 %v3701_v57, %v10656_v5 }
 0x77e   : > { %v2768_v24 = vpop.f32.mrb[46].mxu1 }
 0x77f   : > { %v9694_v8 = vpop.f32.mrb[47].mxu1 }
 0x780   : > { %v3765_v8 = vunpack.c.0.s8 %v3764_v61 }
 0x78c   : > { %v3201_v0 = vpop.trf.xlu1 }
 0x7a5   : > { %v2857_v30 = vpop.f32.mrb[48].mxu1 }
 0x7a6   : > { %3441 = vxpose.xlu1.b32.start.end [1/1] (short) (narrow) %v2857_v30, 8  ;;  %v9705_v13 = vpop.f32.mrb[49].mxu1 }
 0x7a7   : > { %v2860_v51 = vpop.f32.mrb[50].mxu1 }
 0x7a8   : > { %v9706_v44 = vpop.f32.mrb[51].mxu1 }
 0x7b9   : > { %v2627_v63 = vpop.f32.mrb[48].mxu0 }
 0x7ba   : > { %3281 = vxpose.xlu0.b32.start.end [1/1] (short) (narrow) %v2627_v63, 8  ;;  %v9675_v7 = vpop.f32.mrb[49].mxu0 }
 0x7bb   : > { %v2630_v14 = vpop.f32.mrb[50].mxu0  ;;  %v11267_v7 = vsub.s32 %v3765_v8, %v10656_v5 }
 0x7bc   : > { %v9676_v52 = vpop.f32.mrb[51].mxu0 }
 0x7c1   : > { %v2719_v43 = vpop.f32.mrb[52].mxu0 }
 0x7c2   : > { %3345 = vxpose.xlu0.b32.start.end [1/1] (short) (narrow) %v2719_v43, 8  ;;  %v9687_v17 = vpop.f32.mrb[53].mxu0 }
 0x7c3   : > { %v2722_v36 = vpop.f32.mrb[54].mxu0 }
 0x7c4   : > { %v9688_v9 = vpop.f32.mrb[55].mxu0 }
 0x7c9   : > { %v2811_v55 = vpop.f32.mrb[56].mxu0 }
 0x7ca   : > { %3409 = vxpose.xlu0.b32.start.end [1/1] (short) (narrow) %v2811_v55, 8  ;;  %v9699_v22 = vpop.f32.mrb[57].mxu0 }
 0x7cb   : > { %v2814_v49 = vpop.f32.mrb[58].mxu0 }
 0x7cc   : > { %v9700_v11 = vpop.f32.mrb[59].mxu0 }
 0x7d1   : > { %v2903_v33 = vpop.f32.mrb[60].mxu0 }
 0x7d2   : > { %3473 = vxpose.xlu0.b32.start.end [1/1] (short) (narrow) %v2903_v33, 8  ;;  %v9711_v15 = vpop.f32.mrb[61].mxu0 }
 0x7d3   : > { %v2906_v27 = vpop.f32.mrb[62].mxu0 }
 0x7d4   : > { %v9712_v16 = vpop.f32.mrb[63].mxu0 }
 0x7d9   : > { %v2995_v56 = vpop.f32.mrb[64].mxu0 }
 0x7da   : > { %3537 = vxpose.xlu0.b32.start.end [1/1] (short) (narrow) %v2995_v56, 8  ;;  %v9723_v20 = vpop.f32.mrb[65].mxu0 }
 0x7db   : > { %v2998_v10 = vpop.f32.mrb[66].mxu0 }
 0x7dc   : > { %v9724_v23 = vpop.f32.mrb[67].mxu0 }
 0x7dd   : > { %v3233_v53 = vpop.trf.xlu0 }
 0x7ed   : > { %v3265_v59 = vpop.trf.xlu0 }
 0x7ee   : > { %v3697_v21 = vcombine.low %v3201_v0, %v3265_v59  ;;  %v3698_v24 = vcombine.high %v3201_v0, %v3265_v59 }
 0x7f0   : > { %v3705_v13 = vrot.slane %v3697_v21, %v11262_v38  ;;  %v3712_v51 = vrot.slane %v3698_v24, %v11262_v38 }
 0x7f1   : > { %v2949_v47 = vpop.f32.mrb[52].mxu1 }
 0x7f2   : > { %3505 = vxpose.xlu1.b32.start.end [1/1] (short) (narrow) %v2949_v47, 8  ;;  %v9717_v12 = vpop.f32.mrb[53].mxu1 }
 0x7f3   : > { %v2952_v35 = vpop.f32.mrb[54].mxu1 }
 0x7f4   : > { %v9718_v25 = vpop.f32.mrb[55].mxu1 }
 0x7f5   : > { %v3329_v43 = vpop.trf.xlu1 }
 0x7f9   : > { %v3041_v6 = vpop.f32.mrb[56].mxu1 }
 0x7fa   : > { %v9729_v26 = vpop.f32.mrb[57].mxu1  ;;  %3569 = vxpose.xlu1.b32.start.end [1/1] (short) (narrow) %v3041_v6, 8 }
 0x7fb   : > { %v3044_v28 = vpop.f32.mrb[58].mxu1 }
 0x7fc   : > { %v9730_v32 = vpop.f32.mrb[59].mxu1 }
 0x7fd   : > { %v3393_v20 = vpop.trf.xlu1 }
 0x7fe   : > { %v3087_v4 = vpop.f32.mrb[68].mxu0  ;;  %v3729_v25 = vcombine.low %v3329_v43, %v3393_v20  ;;  %v3730_v6 = vcombine.high %v3329_v43, %v3393_v20 }
 0x7ff   : > { %v9735_v37 = vpop.f32.mrb[69].mxu0  ;;  %3601 = vxpose.xlu0.b32.start.end [1/1] (short) (narrow) %v3087_v4, 8 }
 0x800   : > { %v3090_v29 = vpop.f32.mrb[70].mxu0 }
 0x801   : > { %v9736_v1 = vpop.f32.mrb[71].mxu0  ;;  %v3133_v41 = vpop.f32.mrb[60].mxu1 }
 0x802   : > { %3633 = vxpose.xlu1.b32.start.end [1/1] (short) (narrow) %v3133_v41, 8  ;;  %v9741_v40 = vpop.f32.mrb[61].mxu1 }
 0x803   : > { %v3136_v62 = vpop.f32.mrb[62].mxu1  ;;  %v3737_v40 = vrot.slane %v3729_v25, %v11262_v38 }
 0x804   : > { %v9742_v18 = vpop.f32.mrb[63].mxu1  ;;  %v3744_v62 = vrot.slane %v3730_v6, %v11262_v38 }
 0x81d   : > { %v3179_v39 = vpop.f32.mrb[72].mxu0 }
 0x81e   : > { %3665 = vxpose.xlu0.b32.start.end [1/1] (short) (narrow) %v3179_v39, 8  ;;  %v9747_v45 = vpop.f32.mrb[73].mxu0 }
 0x81f   : > { %v3182_v58 = vpop.f32.mrb[74].mxu0 }
 0x820   : > { %v9748_v42 = vpop.f32.mrb[75].mxu0 }
 0x83a   : > { %v3297_v30 = vpop.trf.xlu0 }
 0x83b   : > { %v3713_v44 = vcombine.low %v3233_v53, %v3297_v30  ;;  %v3714_v63 = vcombine.high %v3233_v53, %v3297_v30 }
 0x83d   : > { %v3721_v14 = vrot.slane %v3713_v44, %v11262_v38  ;;  %v3728_v52 = vrot.slane %v3714_v63, %v11262_v38 }
 0x83f   : > { %v3761_v17 = vcombine.low %v3705_v13, %v3721_v14  ;;  %v3762_v36 = vcombine.high %v3705_v13, %v3721_v14  ;;  %v3777_v9 = vcombine.low %v3712_v51, %v3728_v52  ;;  %v3778_v55 = vcombine.high %v3712_v51, %v3728_v52 }
 0x841   : > { %v3769_v22 = vrot.slane %v3761_v17, %v11267_v7  ;;  %v3776_v49 = vrot.slane %v3762_v36, %v11267_v7  ;;  %v3785_v11 = vrot.slane %v3777_v9, %v11267_v7  ;;  %v3792_v33 = vrot.slane %v3778_v55, %v11267_v7 }
 0x842   : > { %v3361_v10 = vpop.trf.xlu0 }
 0x843   : > { %v9053_v15 = vcombine.low %v3769_v22, %v3776_v49  ;;  %v9055_v27 = vcombine.high %v3769_v22, %v3776_v49  ;;  %v9057_v16 = vcombine.low %v3785_v11, %v3792_v33  ;;  %v9059_v56 = vcombine.high %v3785_v11, %v3792_v33 }
 0x845   : > { %v3977_v23 = vrot.slane %v9053_v15, %v11262_v38  ;;  %v3993_v47 = vrot.slane %v9055_v27, %v11262_v38  ;;  %v4009_v12 = vrot.slane %v9057_v16, %v11262_v38  ;;  %v4025_v35 = vrot.slane %v9059_v56, %v11262_v38 }
 0x847   : > { %v4033_v26 = vcombine.low %v3977_v23, %v3993_v47  ;;  %v4065_v28 = vcombine.low %v4009_v12, %v4025_v35  ;;  %v4034_v32 = vcombine.high %v3977_v23, %v3993_v47  ;;  %v4066_v4 = vcombine.high %v4009_v12, %v4025_v35  ;;  %v3457_v23 = vpop.trf.xlu1 }
 0x849   : > { %v11280_v37 = vrot.slane %v4033_v26, %v11267_v7  ;;  %v11283_v29 = vrot.slane %v4065_v28, %v11267_v7  ;;  %v4048_v1 = vrot.slane %v4034_v32, %v11267_v7  ;;  %v4080_v41 = vrot.slane %v4066_v4, %v11267_v7 }
 0x84a   : > { %v3425_v18 = vpop.trf.xlu0 }
 0x84b   : > { %v3745_v39 = vcombine.low %v3361_v10, %v3425_v18  ;;  %v3746_v45 = vcombine.high %v3361_v10, %v3425_v18  ;;  %v4098_v58 = vcombine.high %v11280_v37, %v11283_v29  ;;  %v4099_v42 = vcombine.low %v4048_v1, %v4080_v41 }
 0x84c   : > { %v4097_v53 = vcombine.low %v11280_v37, %v11283_v29  ;;  %v4100_v57 = vcombine.high %v4048_v1, %v4080_v41 }
 0x84d   : > { %v3753_v54 = vrot.slane %v3745_v39, %v11262_v38  ;;  %v3760_v46 = vrot.slane %v3746_v45, %v11262_v38  ;;  %4242 = vrot.lane.b32.xlu1 %v4098_v58, %s12439_s23  ;;  %4246 = vrot.lane.b32.xlu0 %v4099_v42, %s12437_s1 }
 0x84f   : > { %v3793_v59 = vcombine.low %v3737_v40, %v3753_v54  ;;  %v3794_v0 = vcombine.high %v3737_v40, %v3753_v54  ;;  %v3809_v60 = vcombine.low %v3744_v62, %v3760_v46  ;;  %v3810_v61 = vcombine.high %v3744_v62, %v3760_v46 }
 0x851   : > { %v3801_v21 = vrot.slane %v3793_v59, %v11267_v7  ;;  %v3808_v24 = vrot.slane %v3794_v0, %v11267_v7  ;;  %v3817_v8 = vrot.slane %v3809_v60, %v11267_v7  ;;  %v3824_v30 = vrot.slane %v3810_v61, %v11267_v7  ;;  %4250 = vrot.lane.b32.xlu1 %v4100_v57, %s12438_s22 }
 0x852   : > { %v3489_v10 = vpop.trf.xlu0 }
 0x853   : > { %v9054_v13 = vcombine.low %v3801_v21, %v3808_v24  ;;  %v9056_v51 = vcombine.high %v3801_v21, %v3808_v24  ;;  %v9058_v44 = vcombine.low %v3817_v8, %v3824_v30  ;;  %v9060_v63 = vcombine.high %v3817_v8, %v3824_v30  ;;  %v10208_v24 = vld [vmem:[%s12356_s5] sm:$0xff]  }
 0x854   : > { %9750 = vmatpush3.bf16.msra.mxu1 %v10208_v24 }
 0x855   : > { %v3984_v14 = vrot.slane %v9054_v13, %v11262_v38  ;;  %v4000_v52 = vrot.slane %v9056_v51, %v11262_v38  ;;  %v4016_v43 = vrot.slane %v9058_v44, %v11262_v38  ;;  %v4032_v17 = vrot.slane %v9060_v63, %v11262_v38  ;;  %v10209_v44 = vld [vmem:[%s12356_s5 + $0x8] sm:$0xff]   ;;  %9751 = vmatprep.subr.bf16.mxu1 %v10505_v3 }
 0x857   : > { %v4049_v36 = vcombine.low %v3984_v14, %v4000_v52  ;;  %v4081_v9 = vcombine.low %v4016_v43, %v4032_v17  ;;  %v4050_v55 = vcombine.high %v3984_v14, %v4000_v52  ;;  %v4082_v22 = vcombine.high %v4016_v43, %v4032_v17 }
 0x858   : > { %9752 = vmatpush3.bf16.msra.mxu1 %v10209_v44 }
 0x859   : > { %v4057_v49 = vrot.slane %v4049_v36, %v11267_v7  ;;  %v4089_v11 = vrot.slane %v4081_v9, %v11267_v7  ;;  %v4064_v33 = vrot.slane %v4050_v55, %v11267_v7  ;;  %v4096_v15 = vrot.slane %v4082_v22, %v11267_v7  ;;  %v10210_v9 = vld [vmem:[%s12356_s5 + $0x10] sm:$0xff]   ;;  %9753 = vmatprep.subr.bf16.mxu1 %v10505_v3 }
 0x85a   : > { %v3553_v47 = vpop.trf.xlu0 }
 0x85b   : > { %v4101_v27 = vcombine.low %v4057_v49, %v4089_v11  ;;  %v4104_v16 = vcombine.high %v4064_v33, %v4096_v15  ;;  %v4102_v56 = vcombine.high %v4057_v49, %v4089_v11  ;;  %v4103_v20 = vcombine.low %v4064_v33, %v4096_v15  ;;  %v10211_v49 = vld [vmem:[%s12356_s5 + $0x18] sm:$0xff]   ;;  %v10212_v11 = vld [vmem:[%s12356_s5 + $0x20] sm:$0xff]   ;;  %v10213_v33 = vld [vmem:[%s12356_s5 + $0x28] sm:$0xff]  }
 0x85c   : > { %v3849_v12 = vcombine.low %v3489_v10, %v3553_v47  ;;  %v3850_v35 = vcombine.high %v3489_v10, %v3553_v47  ;;  %9754 = vmatpush3.bf16.msra.mxu1 %v10210_v9 }
 0x85d   : > { %4254 = vrot.lane.b32.xlu1 %v4101_v27, %s12436_s15  ;;  %4266 = vrot.lane.b32.xlu0 %v4104_v16, %s12434_s20 }
 0x85e   : > { %v3857_v28 = vrot.slane %v3849_v12, %v11262_v38  ;;  %v3864_v32 = vrot.slane %v3850_v35, %v11262_v38  ;;  %9755 = vmatprep.subr.bf16.mxu1 %v10505_v3 }
 0x860   : > { %9756 = vmatpush3.bf16.msra.mxu1 %v10211_v49 }
 0x861   : > { %4258 = vrot.lane.b32.xlu1 %v4102_v56, %s12435_s2  ;;  %9757 = vmatprep.subr.bf16.mxu1 %v10505_v3 }
 0x864   : > { %9758 = vmatpush3.bf16.msra.mxu1 %v10212_v11 }
 0x865   : > { %4262 = vrot.lane.b32.xlu1 %v4103_v20, %s12433_s30  ;;  %9759 = vmatprep.subr.bf16.mxu1 %v10505_v3 }
 0x868   : > { %9760 = vmatpush3.bf16.msra.mxu1 %v10213_v33 }
 0x869   : > { %9761 = vmatprep.subr.bf16.mxu1 %v10505_v3 }
 0x872   : > { %v3521_v25 = vpop.trf.xlu1 }
 0x873   : > { %v3833_v6 = vcombine.low %v3457_v23, %v3521_v25  ;;  %v3834_v26 = vcombine.high %v3457_v23, %v3521_v25 }
 0x875   : > { %v3841_v4 = vrot.slane %v3833_v6, %v11262_v38  ;;  %v3848_v1 = vrot.slane %v3834_v26, %v11262_v38 }
 0x877   : > { %v3897_v41 = vcombine.low %v3841_v4, %v3857_v28  ;;  %v3898_v40 = vcombine.high %v3841_v4, %v3857_v28  ;;  %v3913_v62 = vcombine.low %v3848_v1, %v3864_v32  ;;  %v3914_v18 = vcombine.high %v3848_v1, %v3864_v32  ;;  %v10214_v1 = vld [vmem:[%s12356_s5 + $0x30] sm:$0xff]  }
 0x878   : > { %9762 = vmatpush3.bf16.msra.mxu1 %v10214_v1 }
 0x879   : > { %v3905_v39 = vrot.slane %v3897_v41, %v11267_v7  ;;  %v3912_v45 = vrot.slane %v3898_v40, %v11267_v7  ;;  %v3921_v58 = vrot.slane %v3913_v62, %v11267_v7  ;;  %v3928_v42 = vrot.slane %v3914_v18, %v11267_v7  ;;  %9763 = vmatprep.subr.bf16.mxu1 %v10505_v3 }
 0x87a   : > { %v3585_v15 = vpop.trf.xlu1 }
 0x87b   : > { %v9061_v54 = vcombine.low %v3905_v39, %v3912_v45  ;;  %v9063_v46 = vcombine.high %v3905_v39, %v3912_v45  ;;  %v9065_v57 = vcombine.low %v3921_v58, %v3928_v42  ;;  %v9067_v59 = vcombine.high %v3921_v58, %v3928_v42 }
 0x87d   : > { %v4113_v0 = vrot.slane %v9061_v54, %v11262_v38  ;;  %v4129_v60 = vrot.slane %v9063_v46, %v11262_v38  ;;  %v4145_v61 = vrot.slane %v9065_v57, %v11262_v38  ;;  %v4161_v21 = vrot.slane %v9067_v59, %v11262_v38  ;;  %v10215_v54 = vld [vmem:[%s12356_s5 + $0x38] sm:$0xff]  }
 0x87e   : > { %9764 = vmatpush3.bf16.msra.mxu1 %v10215_v54 }
 0x87f   : > { %v4169_v8 = vcombine.low %v4113_v0, %v4129_v60  ;;  %v4201_v30 = vcombine.low %v4145_v61, %v4161_v21  ;;  %v4170_v13 = vcombine.high %v4113_v0, %v4129_v60  ;;  %v4202_v51 = vcombine.high %v4145_v61, %v4161_v21  ;;  %v3617_v27 = vpop.trf.xlu0  ;;  %9789 = vmatprep.subr.bf16.mxu1 %v10505_v3 }
 0x881   : > { %v4177_v63 = vrot.slane %v4169_v8, %v11267_v7  ;;  %v4209_v14 = vrot.slane %v4201_v30, %v11267_v7  ;;  %v4184_v52 = vrot.slane %v4170_v13, %v11267_v7  ;;  %v4216_v43 = vrot.slane %v4202_v51, %v11267_v7 }
 0x882   : > { %v3649_v16 = vpop.trf.xlu1 }
 0x883   : > { %v4233_v17 = vcombine.low %v4177_v63, %v4209_v14  ;;  %v4234_v36 = vcombine.high %v4177_v63, %v4209_v14  ;;  %v4235_v55 = vcombine.low %v4184_v52, %v4216_v43  ;;  %v4236_v22 = vcombine.high %v4184_v52, %v4216_v43 }
 0x884   : > { %v3865_v56 = vcombine.low %v3585_v15, %v3649_v16  ;;  %v3866_v20 = vcombine.high %v3585_v15, %v3649_v16 }
 0x885   : > { %4270 = vrot.lane.b32.xlu1 %v4233_v17, %s12432_s0  ;;  %4274 = vrot.lane.b32.xlu0 %v4234_v36, %s12430_s16 }
 0x886   : > { %v3873_v12 = vrot.slane %v3865_v56, %v11262_v38  ;;  %v3880_v35 = vrot.slane %v3866_v20, %v11262_v38 }
 0x889   : > { %4278 = vrot.lane.b32.xlu1 %v4235_v55, %s12431_s24  ;;  %4282 = vrot.lane.b32.xlu0 %v4236_v22, %s12443_s14 }
 0x89e   : > { %v3681_v10 = vpop.trf.xlu0 }
 0x89f   : > { %v3881_v23 = vcombine.low %v3617_v27, %v3681_v10  ;;  %v3882_v47 = vcombine.high %v3617_v27, %v3681_v10 }
 0x8a1   : > { %v3889_v25 = vrot.slane %v3881_v23, %v11262_v38  ;;  %v3896_v6 = vrot.slane %v3882_v47, %v11262_v38 }
 0x8a3   : > { %v3929_v26 = vcombine.low %v3873_v12, %v3889_v25  ;;  %v3930_v28 = vcombine.high %v3873_v12, %v3889_v25  ;;  %v3945_v32 = vcombine.low %v3880_v35, %v3896_v6  ;;  %v3946_v4 = vcombine.high %v3880_v35, %v3896_v6 }
 0x8a5   : > { %v3937_v41 = vrot.slane %v3929_v26, %v11267_v7  ;;  %v3944_v40 = vrot.slane %v3930_v28, %v11267_v7  ;;  %v3953_v62 = vrot.slane %v3945_v32, %v11267_v7  ;;  %v3960_v18 = vrot.slane %v3946_v4, %v11267_v7 }
 0x8a7   : > { %v9062_v39 = vcombine.low %v3937_v41, %v3944_v40  ;;  %v9064_v45 = vcombine.high %v3937_v41, %v3944_v40  ;;  %v9066_v58 = vcombine.low %v3953_v62, %v3960_v18  ;;  %v9068_v42 = vcombine.high %v3953_v62, %v3960_v18  ;;  %v9069_v62 = vld [vmem:[%s12357_s6] ss:$0 sm:$0xff] }
 0x8a9   : > { %v4120_v46 = vrot.slane %v9062_v39, %v11262_v38  ;;  %v4136_v57 = vrot.slane %v9064_v45, %v11262_v38  ;;  %v4152_v59 = vrot.slane %v9066_v58, %v11262_v38  ;;  %v4168_v0 = vrot.slane %v9068_v42, %v11262_v38 }
 0x8ab   : > { %v4185_v60 = vcombine.low %v4120_v46, %v4136_v57  ;;  %v4217_v61 = vcombine.low %v4152_v59, %v4168_v0  ;;  %v4186_v21 = vcombine.high %v4120_v46, %v4136_v57  ;;  %v4218_v24 = vcombine.high %v4152_v59, %v4168_v0  ;;  %v10216_v46 = vld [vmem:[%s12358_s7] sm:$0xff]   ;;  %v10217_v57 = vld [vmem:[%s12358_s7 + $0x8] sm:$0xff]  }
 0x8ac   : > { %9770 = vmatpush3.bf16.msra.mxu0 %v10216_v46 }
 0x8ad   : > { %v4193_v8 = vrot.slane %v4185_v60, %v11267_v7  ;;  %v4225_v30 = vrot.slane %v4217_v61, %v11267_v7  ;;  %v4200_v44 = vrot.slane %v4186_v21, %v11267_v7  ;;  %v4232_v63 = vrot.slane %v4218_v24, %v11267_v7  ;;  %9771 = vmatprep.subr.bf16.mxu0 %v10505_v3  ;;  %v10218_v21 = vld [vmem:[%s12358_s7 + $0x10] sm:$0xff]   ;;  %v10219_v24 = vld [vmem:[%s12358_s7 + $0x18] sm:$0xff]  }
 0x8af   : > { %v4238_v13 = vcombine.high %v4193_v8, %v4225_v30  ;;  %v4237_v51 = vcombine.low %v4193_v8, %v4225_v30  ;;  %v4240_v14 = vcombine.high %v4200_v44, %v4232_v63  ;;  %v4239_v52 = vcombine.low %v4200_v44, %v4232_v63  ;;  %v10220_v8 = vld [vmem:[%s12358_s7 + $0x20] sm:$0xff]   ;;  %v10221_v30 = vld [vmem:[%s12358_s7 + $0x28] sm:$0xff]  }
 0x8b0   : > { %9772 = vmatpush3.bf16.msra.mxu0 %v10217_v57  ;;  %v10224_v44 = vld [vmem:[%s12360_s9] sm:$0xff]  }
 0x8b1   : > { %4290 = vrot.lane.b32.xlu0 %v4238_v13, %s12442_s27  ;;  %4286 = vrot.lane.b32.xlu1 %v4237_v51, %s12444_s19  ;;  %v10222_v13 = vld [vmem:[%s12358_s7 + $0x30] sm:$0xff]   ;;  %v10223_v51 = vld [vmem:[%s12358_s7 + $0x38] sm:$0xff]  }
 0x8b2   : > { %9773 = vmatprep.subr.bf16.mxu0 %v10505_v3 }
 0x8b4   : > { %9774 = vmatpush3.bf16.msra.mxu0 %v10218_v21  ;;  %v10242_v21 = vld [vmem:[%s12355_s4 + $0xf4] ss:$12 sps:$4 sm:$0xff]  }
 0x8b5   : > { %4298 = vrot.lane.b32.xlu0 %v4240_v14, %s12440_s21  ;;  %4294 = vrot.lane.b32.xlu1 %v4239_v52, %s12441_s17 }
 0x8b6   : > { %9775 = vmatprep.subr.bf16.mxu0 %v10505_v3 }
 0x8b8   : > { %9776 = vmatpush3.bf16.msra.mxu0 %v10219_v24  ;;  %v10240_v24 = vld [vmem:[%s12355_s4 + $0xf0] ss:$12 sps:$4 sm:$0xff]  }
 0x8b9   : > { %9777 = vmatprep.subr.bf16.mxu0 %v10505_v3 }
 0x8bc   : > { %9778 = vmatpush3.bf16.msra.mxu0 %v10220_v8 }
 0x8bd   : > { %9779 = vmatprep.subr.bf16.mxu0 %v10505_v3 }
 0x8bf   : > { %v4243_v43 = vpop.permute.xlu1 %4242  ;;  %v4247_v22 = vpop.permute.xlu0 %4246 }
 0x8c0   : > { %v4301_v55 = vsel %vm1263_vm7, %v4097_v53, %v4243_v43  ;;  %9780 = vmatpush3.bf16.msra.mxu0 %v10221_v30  ;;  %v4456_v43 = vsub.s32 2, %v10656_v5 }
 0x8c1   : > { %v4302_v11 = vsel %vm480_vm2, %v4301_v55, %v4247_v22  ;;  %9781 = vmatprep.subr.bf16.mxu0 %v10505_v3 }
 0x8c3   : > { %v4251_v17 = vpop.permute.xlu1 %4250 }
 0x8c4   : > { %v4304_v33 = vsel %vm4303_vm9, %v4302_v11, %v4251_v17  ;;  %9782 = vmatpush3.bf16.msra.mxu0 %v10222_v13  ;;  %v4461_v17 = vsub.s32 3, %v10656_v5  ;;  %v10283_v5 = vld [vmem:[%s12360_s9 + $0x58] sm:$0xff]  }
 0x8c5   : > { %9783 = vmatprep.subr.bf16.mxu0 %v10505_v3 }
 0x8c8   : > { %9784 = vmatpush3.bf16.msra.mxu0 %v10223_v51 }
 0x8cf   : > { %v4255_v36 = vpop.permute.xlu1 %4254  ;;  %v4267_v15 = vpop.permute.xlu0 %4266 }
 0x8d0   : > { %v4306_v27 = vsel %vm4305_vm10, %v4304_v33, %v4255_v36  ;;  %v10438_v36 = vld [vmem:[%s12354_s3] sm:$0xf] }
 0x8d3   : > { %v4259_v9 = vpop.permute.xlu1 %4258 }
 0x8d4   : > { %v4308_v16 = vsel %vm4307_vm11, %v4306_v27, %v4259_v9  ;;  %v4457_v9 = vrot.slane %v10438_v36, %v4456_v43  ;;  %v10225_v27 = vld [vmem:[%s12360_s9 + $0x8] sm:$0xff]  }
 0x8d7   : > { %v4263_v49 = vpop.permute.xlu1 %4262 }
 0x8d8   : > { %v4310_v37 = vsel %vm4309_vm12, %v4308_v16, %v4263_v49  ;;  %v4462_v49 = vrot.slane %v10438_v36, %v4461_v17  ;;  %v10226_v16 = vld [vmem:[%s12360_s9 + $0x10] sm:$0xff]  }
 0x8d9   : > { %v4312_v53 = vsel %vm12405_vm13, %v4310_v37, %v4267_v15  ;;  %vm4327_vm13 = vcmask 982016   ;;  %v10229_v37 = vld [vmem:[%s12360_s9 + $0x28] sm:$0xff]   ;;  %v10247_v36 = vld [vmem:[%s12355_s4 + $0x110] ss:$12 sps:$4 sm:$0xff]  }
 0x8f7   : > { %v4271_v56 = vpop.permute.xlu1 %4270  ;;  %v4275_v29 = vpop.permute.xlu0 %4274 }
 0x8f8   : > { %v4314_v20 = vsel %vm4313_vm14, %v4312_v53, %v4271_v56  ;;  %v10227_v56 = vld [vmem:[%s12360_s9 + $0x18] sm:$0xff]  }
 0x8f9   : > { %v4316_v23 = vsel %vm4315_vm15, %v4314_v20, %v4275_v29  ;;  %v10230_v29 = vld [vmem:[%s12360_s9 + $0x30] sm:$0xff]   ;;  %v10231_v53 = vld [vmem:[%s12360_s9 + $0x38] sm:$0xff]   ;;  %v9078_v20 = vld [vmem:[%s12445_s8] ss:$0 sm:$0xff] }
 0x8fb   : > { %v4279_v10 = vpop.permute.xlu1 %4278  ;;  %v4283_v47 = vpop.permute.xlu0 %4282 }
 0x8fc   : > { %v4318_v12 = vsel %vm4317_vm1, %v4316_v23, %v4279_v10 }
 0x8fd   : > { %v4320_v35 = vsel %vm4319_vm3, %v4318_v12, %v4283_v47 }
 0x923   : > { %v4287_v25 = vpop.permute.xlu1 %4286  ;;  %v4291_v6 = vpop.permute.xlu0 %4290 }
 0x924   : > { %v4322_v26 = vsel %vm4321_vm4, %v4320_v35, %v4287_v25 }
 0x925   : > { %v4324_v28 = vsel %vm4323_vm5, %v4322_v26, %v4291_v6 }
 0x927   : > { %v4295_v32 = vpop.permute.xlu1 %4294  ;;  %v4299_v4 = vpop.permute.xlu0 %4298 }
 0x928   : > { %v4326_v1 = vsel %vm4325_vm8, %v4324_v28, %v4295_v32 }
 0x929   : > { %v4328_v41 = vsel %vm4327_vm13, %v4326_v1, %v4299_v4 }
 0x92a   : > { %v4329_v40 = vpack.c.bf16 %v4328_v41, %v4328_v41 }
 0x92c   : > { %9766 = vmatmul.mubr.bf16.vlgmr.msra.gmra.mrb[64].mxu1 %v4329_v40 }
 0x92d   : > { %9805 = vmatprep.mubr.msk.bf16.mxu1 %vm10506_vm0, %v10505_v3  ;;  %9790 = vmatpush3.bf16.msra.mxu1 %v10224_v44 }
 0x92e   : > { %9791 = vmatprep.subr.bf16.mxu1 %v10505_v3 }
 0x931   : > { %9792 = vmatpush3.bf16.msra.mxu1 %v10225_v27  ;;  %v10256_v27 = vld [vmem:[%s12355_s4 + $0x150] ss:$12 sps:$4 sm:$0xff]  }
 0x932   : > { %9793 = vmatprep.subr.bf16.mxu1 %v10505_v3 }
 0x935   : > { %9794 = vmatpush3.bf16.msra.mxu1 %v10226_v16  ;;  %v10259_v16 = vld [vmem:[%s12355_s4 + $0x158] ss:$12 sps:$4 sm:$0xff]  }
 0x936   : > { %9795 = vmatprep.subr.bf16.mxu1 %v10505_v3 }
 0x939   : > { %9796 = vmatpush3.bf16.msra.mxu1 %v10227_v56  ;;  %v10262_v56 = vld [vmem:[%s12355_s4 + $0x16c] ss:$12 sps:$4 sm:$0xff]  }
 0x93a   : > { %9797 = vmatprep.subr.bf16.mxu1 %v10505_v3 }
 0x9ff   : > { %v4435_v18 = vpop.f32.mrb[64].mxu1 }
 0xa00   : > { %v4436_v39 = vadd.f32 %v9069_v62, %v4435_v18  ;;  %v9767_v45 = vpop.f32.mrb[65].mxu1  ;;  %v9087_v18 = vld [vmem:[%s12446_s10] ss:$0 sm:$0xff] }
 0xa01   : > { %v4438_v58 = vpop.f32.mrb[66].mxu1 }
 0xa02   : > { %v11410_v42 = vadd.f32 %v4436_v39, %v10704_v19  ;;  %v9768_v54 = vpop.f32.mrb[67].mxu1 }
 0xa04   : > { %4442 = vadd.xlane.f32.xlu1 %v11410_v42 }
 0xa91   : > { %v4443_v59 = vpop.xlane.xlu1 %4442 }
 0xa92   : > { %v4444_v19 = vmul.f32 0.03125, %v4443_v59  ;;  %v10232_v59 = vld [vmem:[%s12355_s4 + $0xc0] ss:$12 sps:$4 sm:$0xff]  }
 0xa94   : > { %v4445_v0 = vsub.f32 %v11410_v42, %v4444_v19  ;;  %v10234_v19 = vld [vmem:[%s12355_s4 + $0xc4] ss:$12 sps:$4 sm:$0xff]  }
 0xa95   : > { %4884 = vmatprep.subr.bf16.mxu0 %v10234_v19 }
 0xa96   : > { %v4446_v60 = vmul.f32 %v10727_v31, %v4445_v0  ;;  %v10235_v0 = vld [vmem:[%s12355_s4 + $0xc8] ss:$12 sps:$4 sm:$0xff]  }
 0xa98   : > { %v4447_v61 = vmul.f32 %v4446_v60, %v4446_v60 }
 0xa9a   : > { %4448 = vadd.xlane.f32.xlu0 %v4447_v61  ;;  %v10236_v61 = vld [vmem:[%s12355_s4 + $0xd8] ss:$12 sps:$4 sm:$0xff]  }
 0xb27   : > { %v4449_v63 = vpop.xlane.xlu0 %4448 }
 0xb28   : > { %v4450_v14 = vmul.f32 0.03125, %v4449_v63  ;;  %v10243_v63 = vld [vmem:[%s12355_s4 + $0xf8] ss:$12 sps:$4 sm:$0xff]  }
 0xb2a   : > { %v4451_v52 = vadd.f32 1e-05, %v4450_v14  ;;  %v10246_v14 = vld [vmem:[%s12355_s4 + $0x10c] ss:$12 sps:$4 sm:$0xff]  }
 0xb2c   : > { %10362 = vrsqrt.f32 %v4451_v52  ;;  %v10244_v52 = vld [vmem:[%s12355_s4 + $0x108] ss:$12 sps:$4 sm:$0xff]  }
 0xb36   : > { %v10363_v55 = vpop.eup %10362 }
 0xb37   : > { %v4453_v22 = vmul.f32 %v10363_v55, %v4446_v60  ;;  %v10239_v60 = vld [vmem:[%s12355_s4 + $0xe0] ss:$12 sps:$4 sm:$0xff]  }
 0xb38   : > { %v10248_v55 = vld [vmem:[%s12355_s4 + $0x120] ss:$12 sps:$4 sm:$0xff]  }
 0xb39   : > { %v4458_v11 = vmul.f32 %v4457_v9, %v4453_v22  ;;  %v10250_v9 = vld [vmem:[%s12355_s4 + $0x124] ss:$12 sps:$4 sm:$0xff]   ;;  %v10251_v22 = vld [vmem:[%s12355_s4 + $0x128] ss:$12 sps:$4 sm:$0xff]  }
 0xb3b   : > { %v4463_v33 = vadd.f32 %v4462_v49, %v4458_v11  ;;  %v10254_v49 = vld [vmem:[%s12355_s4 + $0x13c] ss:$12 sps:$4 sm:$0xff]   ;;  %v10252_v11 = vld [vmem:[%s12355_s4 + $0x138] ss:$12 sps:$4 sm:$0xff]  }
 0xb3d   : > { %v4464_v15 = vpack.c.bf16 %v4463_v33, %v4463_v33  ;;  %v10255_v33 = vld [vmem:[%s12355_s4 + $0x140] ss:$12 sps:$4 sm:$0xff]  }
 0xb3f   : > { %9786 = vmatmul.mubr.bf16.vlgmr.msra.gmra.mrb[76].mxu0 %v4464_v15  ;;  %v10258_v15 = vld [vmem:[%s12355_s4 + $0x154] ss:$12 sps:$4 sm:$0xff]  }
 0xb40   : > { %4916 = vmatprep.mubr.bf16.mxu0 %v10504_v2  ;;  %v10228_v2 = vld [vmem:[%s12360_s9 + $0x20] sm:$0xff]   ;;  %4885 = vmatpush1.bf16.msra.mxu0 %v10232_v59 }
 0xb41   : > { %9798 = vmatpush3.bf16.msra.mxu1 %v10228_v2  ;;  %v10260_v2 = vld [vmem:[%s12355_s4 + $0x168] ss:$12 sps:$4 sm:$0xff]  }
 0xb42   : > { %9799 = vmatprep.subr.bf16.mxu1 %v10505_v3 }
 0xb45   : > { %9800 = vmatpush3.bf16.msra.mxu1 %v10229_v37  ;;  %v10263_v37 = vld [vmem:[%s12355_s4 + $0x170] ss:$12 sps:$4 sm:$0xff]  }
 0xb46   : > { %9801 = vmatprep.subr.bf16.mxu1 %v10505_v3 }
 0xb49   : > { %9802 = vmatpush3.bf16.msra.mxu1 %v10230_v29 }
 0xb4a   : > { %9803 = vmatprep.subr.bf16.mxu1 %v10505_v3 }
 0xb4d   : > { %9804 = vmatpush3.bf16.msra.mxu1 %v10231_v53 }
 0xb4e   : > { %9809 = vmatprep.subr.bf16.mxu1 %v10505_v3 }
 0xc12   : > { %v4570_v10 = vpop.f32.mrb[76].mxu0 }
 0xc13   : > { %v4571_v23 = vadd.f32 %v9078_v20, %v4570_v10  ;;  %v9787_v47 = vpop.f32.mrb[77].mxu0  ;;  %v9096_v10 = vld [vmem:[%s12354_s3 + $0x4] sm:$0xf] }
 0xc14   : > { %v4573_v12 = vpop.f32.mrb[78].mxu0 }
 0xc15   : > { %v4577_v35 = vmul.f32 %v4571_v23, %v4571_v23  ;;  %v9788_v25 = vpop.f32.mrb[79].mxu0  ;;  %v4576_v1 = vmul.f32 0.5, %v4571_v23 }
 0xc17   : > { %v4578_v6 = vmul.f32 %v4577_v35, %v4571_v23  ;;  %v4720_v35 = vrot.slane %v9096_v10, %v10769_v50 }
 0xc19   : > { %v4579_v26 = vmul.f32 0.044715, %v4578_v6 }
 0xc1b   : > { %v4580_v28 = vadd.f32 %v4579_v26, %v4571_v23  ;;  %v4715_v23 = vrot.slane %v9096_v10, %v10763_v48 }
 0xc1d   : > { %v4581_v32 = vmul.f32 0.7978845, %v4580_v28 }
 0xc1f   : > { %10364 = vtanh.f32 %v4581_v32 }
 0xc29   : > { %v10365_v4 = vpop.eup %10364 }
 0xc2a   : > { %v4583_v41 = vadd.f32 1.0, %v10365_v4 }
 0xc2c   : > { %v4584_v40 = vmul.f32 %v4583_v41, %v4576_v1 }
 0xc2e   : > { %v4585_v62 = vpack.c.bf16 %v4584_v40, %v4584_v40 }
 0xc30   : > { %9806 = vmatmul.mubr.bf16.vlgmr.msra.gmra.mrb[68].mxu1 %v4585_v62 }
 0xc31   : > { %9825 = vmatprep.mubr.msk.bf16.mxu1 %vm10506_vm0, %v10505_v3  ;;  %9810 = vmatpush3.bf16.msra.mxu1 %v10235_v0 }
 0xc32   : > { %9811 = vmatprep.subr.bf16.mxu1 %v10505_v3 }
 0xc35   : > { %9812 = vmatpush3.bf16.msra.mxu1 %v10239_v60 }
 0xc36   : > { %9813 = vmatprep.subr.bf16.mxu1 %v10505_v3 }
 0xc39   : > { %9814 = vmatpush3.bf16.msra.mxu1 %v10243_v63 }
 0xc3a   : > { %9815 = vmatprep.subr.bf16.mxu1 %v10505_v3 }
 0xc3d   : > { %9816 = vmatpush3.bf16.msra.mxu1 %v10247_v36 }
 0xc3e   : > { %9817 = vmatprep.subr.bf16.mxu1 %v10505_v3 }
 0xc41   : > { %9818 = vmatpush3.bf16.msra.mxu1 %v10251_v22 }
 0xc42   : > { %9819 = vmatprep.subr.bf16.mxu1 %v10505_v3 }
 0xc45   : > { %9820 = vmatpush3.bf16.msra.mxu1 %v10255_v33 }
 0xc46   : > { %9821 = vmatprep.subr.bf16.mxu1 %v10505_v3 }
 0xc49   : > { %9822 = vmatpush3.bf16.msra.mxu1 %v10259_v16 }
 0xc4a   : > { %9823 = vmatprep.subr.bf16.mxu1 %v10505_v3 }
 0xc4d   : > { %9824 = vmatpush3.bf16.msra.mxu1 %v10263_v37 }
 0xc4e   : > { %9853 = vmatprep.subr.bf16.mxu1 %v10505_v3 }
 0xd03   : > { %v4691_v39 = vpop.f32.mrb[68].mxu1 }
 0xd04   : > { %v4692_v45 = vadd.f32 %v9087_v18, %v4691_v39  ;;  %v9807_v58 = vpop.f32.mrb[69].mxu1 }
 0xd05   : > { %v4694_v54 = vpop.f32.mrb[70].mxu1 }
 0xd06   : > { %v11497_v46 = vadd.f32 %v4692_v45, %v11410_v42  ;;  %v9808_v57 = vpop.f32.mrb[71].mxu1  ;;  %v10238_v42 = vld [vmem:[%s12355_s4 + $0xdc] ss:$12 sps:$4 sm:$0xff]  }
 0xd07   : > { %4886 = vmatprep.subr.bf16.mxu0 %v10238_v42 }
 0xd08   : > { %4700 = vadd.xlane.f32.xlu0 %v11497_v46  ;;  %4887 = vmatpush1.bf16.msra.mxu0 %v10236_v61 }
 0xd09   : > { %4888 = vmatprep.subr.bf16.mxu0 %v10242_v21 }
 0xd0c   : > { %4889 = vmatpush1.bf16.msra.mxu0 %v10240_v24 }
 0xd0d   : > { %4890 = vmatprep.subr.bf16.mxu0 %v10246_v14 }
 0xd10   : > { %4891 = vmatpush1.bf16.msra.mxu0 %v10244_v52 }
 0xd11   : > { %4892 = vmatprep.subr.bf16.mxu0 %v10250_v9 }
 0xd14   : > { %4893 = vmatpush1.bf16.msra.mxu0 %v10248_v55 }
 0xd15   : > { %4894 = vmatprep.subr.bf16.mxu0 %v10254_v49 }
 0xd18   : > { %4895 = vmatpush1.bf16.msra.mxu0 %v10252_v11 }
 0xd19   : > { %4896 = vmatprep.subr.bf16.mxu0 %v10258_v15 }
 0xd1c   : > { %4897 = vmatpush1.bf16.msra.mxu0 %v10256_v27 }
 0xd1d   : > { %4898 = vmatprep.subr.bf16.mxu0 %v10262_v56 }
 0xd20   : > { %4899 = vmatpush1.bf16.msra.mxu0 %v10260_v2 }
 0xd21   : > { %9829 = vmatprep.subr.bf16.mxu0 %v10505_v3 }
 0xd95   : > { %v4701_v8 = vpop.xlane.xlu0 %4700 }
 0xd96   : > { %v4702_v30 = vmul.f32 0.03125, %v4701_v8 }
 0xd98   : > { %v4703_v13 = vsub.f32 %v11497_v46, %v4702_v30 }
 0xd9a   : > { %v4704_v51 = vmul.f32 %v10727_v31, %v4703_v13 }
 0xd9c   : > { %v4705_v44 = vmul.f32 %v4704_v51, %v4704_v51 }
 0xd9e   : > { %4706 = vadd.xlane.f32.xlu1 %v4705_v44 }
 0xe2b   : > { %v4707_v29 = vpop.xlane.xlu1 %4706 }
 0xe2c   : > { %v4708_v53 = vmul.f32 0.03125, %v4707_v29 }
 0xe2e   : > { %v4709_v20 = vadd.f32 1e-05, %v4708_v53 }
 0xe30   : > { %10366 = vrsqrt.f32 %v4709_v20 }
 0xe3a   : > { %v10367_v47 = vpop.eup %10366 }
 0xe3b   : > { %v4711_v12 = vmul.f32 %v10367_v47, %v4704_v51 }
 0xe3d   : > { %v4716_v25 = vmul.f32 %v4715_v23, %v4711_v12 }
 0xe3f   : > { %v4721_v6 = vadd.f32 %v4720_v35, %v4716_v25 }
 0xe41   : > { %v4722_v26 = vpack.c.bf16 %v4721_v6, %v4721_v6 }
 0xe43   : > { %4917 = vmatmul.mubr.bf16.vlgmr.msra.gmra.mrb[80].mxu0 %v4722_v26  ;;  %9826 = vmatmul.mubr.bf16.vlgmr.msra.gmra.mrb[72].mxu1 %v4722_v26 }
 0xe44   : > { %9831 = vmatprep.mubr.msk.bf16.mxu0 %vm10506_vm0, %v10505_v3  ;;  %9855 = vmatprep.mubr.msk.bf16.mxu1 %vm10506_vm0, %v10505_v3 }
 0xf16   : > { %v4918_v28 = vpop.f32.mrb[80].mxu0  ;;  %v11592_v32 = vpop.f32.mrb[72].mxu1 }
 0xf17   : > { %v4920_v4 = vpop.f32.mrb[81].mxu0  ;;  %v9827_v1 = vpop.f32.mrb[73].mxu1  ;;  %v4965_v45 = vmul.f32 0.35355338, %v4918_v28  ;;  %v11631_v63 = vpack.c.bf16 %v11592_v32, %v11592_v32 }
 0xf18   : > { %v4998_v41 = vpack.c.bf16 %v4920_v4, %v4920_v4  ;;  %v4922_v40 = vpop.f32.mrb[82].mxu0  ;;  %v4962_v62 = vpop.f32.mrb[74].mxu1 }
 0xf19   : > { %v4923_v18 = vpop.f32.mrb[83].mxu0  ;;  %v9828_v39 = vpop.f32.mrb[75].mxu1  ;;  %v4966_v58 = vpack.c.bf16 %v4965_v45, %v4965_v45 }
 0xf1a   : > { %5003 = vrot.lane.b32.xlu1 %v4998_v41, %s12441_s17  ;;  %5000 = vrot.lane.b32.xlu0 %v4998_v41, %s12440_s21 }
 0xf1e   : > { %5006 = vrot.lane.b32.xlu1 %v4998_v41, %s12442_s27  ;;  %5009 = vrot.lane.b32.xlu0 %v4998_v41, %s12444_s19 }
 0xf22   : > { %5012 = vrot.lane.b32.xlu1 %v4998_v41, %s12443_s14  ;;  %5015 = vrot.lane.b32.xlu0 %v4998_v41, %s12431_s24 }
 0xf26   : > { %5018 = vrot.lane.b32.xlu1 %v4998_v41, %s12430_s16  ;;  %5021 = vrot.lane.b32.xlu0 %v4998_v41, %s12432_s0 }
 0xf2a   : > { %5024 = vrot.lane.b32.xlu1 %v4998_v41, %s12434_s20  ;;  %5030 = vrot.lane.b32.xlu0 %v4998_v41, %s12435_s2 }
 0xf2e   : > { %5027 = vrot.lane.b32.xlu1 %v4998_v41, %s12433_s30 }
 0xf32   : > { %5033 = vrot.lane.b32.xlu1 %v4998_v41, %s12436_s15 }
 0xf36   : > { %5036 = vrot.lane.b32.xlu1 %v4998_v41, %s12438_s22 }
 0xf3a   : > { %4970 = vrot.lane.b32.xlu1 %v4966_v58, %s12441_s17 }
 0xf3e   : > { %4972 = vrot.lane.b32.xlu1 %v4966_v58, %s12442_s27 }
 0xf42   : > { %4980 = vrot.lane.b32.xlu1 %v4966_v58, %s12430_s16 }
 0xf46   : > { %4982 = vrot.lane.b32.xlu1 %v4966_v58, %s12432_s0 }
 0xf48   : > { %5092 = vxpose.xlu0.c.b16.start.end [1/1] (short) (narrow) %v4998_v41, 16 }
 0xf4a   : > { %4984 = vrot.lane.b32.xlu1 %v4966_v58, %s12434_s20 }
 0xf4e   : > { %4990 = vrot.lane.b32.xlu1 %v4966_v58, %s12436_s15 }
 0xf51   : > { %5039 = vrot.lane.b32.xlu0 %v4998_v41, %s12437_s1 }
 0xf55   : > { %5042 = vrot.lane.b32.xlu0 %v4998_v41, %s12439_s23 }
 0xf59   : > { %4968 = vrot.lane.b32.xlu0 %v4966_v58, %s12440_s21 }
 0xf5d   : > { %4974 = vrot.lane.b32.xlu0 %v4966_v58, %s12444_s19 }
 0xf61   : > { %4976 = vrot.lane.b32.xlu0 %v4966_v58, %s12443_s14 }
 0xf65   : > { %4978 = vrot.lane.b32.xlu0 %v4966_v58, %s12431_s24 }
 0xf69   : > { %4986 = vrot.lane.b32.xlu0 %v4966_v58, %s12433_s30 }
 0xf6d   : > { %4988 = vrot.lane.b32.xlu0 %v4966_v58, %s12435_s2 }
 0xf71   : > { %4994 = vrot.lane.b32.xlu0 %v4966_v58, %s12437_s1 }
 0xf8c   : > { %v5004_v54 = vpop.permute.xlu1 %5003  ;;  %v5001_v57 = vpop.permute.xlu0 %5000 }
 0xf8d   : > { %5108 = vxpose.xlu1.c.b16.start.end [1/1] (short) (narrow) %v5001_v57, 16 }
 0xf90   : > { %v5007_v59 = vpop.permute.xlu1 %5006  ;;  %v5010_v19 = vpop.permute.xlu0 %5009 }
 0xf91   : > { %5140 = vxpose.xlu0.c.b16.start.end [1/1] (short) (narrow) %v5007_v59, 16  ;;  %5124 = vxpose.xlu1.c.b16.start.end [1/1] (short) (narrow) %v5004_v54, 16 }
 0xf94   : > { %v5013_v0 = vpop.permute.xlu1 %5012  ;;  %v5016_v42 = vpop.permute.xlu0 %5015 }
 0xf95   : > { %5172 = vxpose.xlu0.c.b16.start.end [1/1] (short) (narrow) %v5013_v0, 16  ;;  %5156 = vxpose.xlu1.c.b16.start.end [1/1] (short) (narrow) %v5010_v19, 16 }
 0xf98   : > { %v5019_v60 = vpop.permute.xlu1 %5018  ;;  %v5022_v21 = vpop.permute.xlu0 %5021 }
 0xf99   : > { %5204 = vxpose.xlu0.c.b16.start.end [1/1] (short) (narrow) %v5019_v60, 16  ;;  %5188 = vxpose.xlu1.c.b16.start.end [1/1] (short) (narrow) %v5016_v42, 16 }
 0xf9c   : > { %v5025_v61 = vpop.permute.xlu1 %5024  ;;  %v5031_v24 = vpop.permute.xlu0 %5030 }
 0xf9d   : > { %5236 = vxpose.xlu0.c.b16.start.end [1/1] (short) (narrow) %v5025_v61, 16  ;;  %4992 = vrot.lane.b32.xlu1 %v4966_v58, %s12438_s22 }
 0xfa0   : > { %v5028_v13 = vpop.permute.xlu1 %5027 }
 0xfa4   : > { %v5034_v51 = vpop.permute.xlu1 %5033 }
 0xfa6   : > { %4996 = vrot.lane.b32.xlu0 %v4966_v58, %s12439_s23 }
 0xfa8   : > { %v5037_v14 = vpop.permute.xlu1 %5036 }
 0xfac   : > { %v4971_v36 = vpop.permute.xlu1 %4970 }
 0xfae   : > { %v5100_v8 = vpop.trf.xlu0 }
 0xfaf   : > { %v5352_v30 = vsel %vm1267_vm6, %v5100_v8, 0 }
 0xfb0   : > { %9830 = vmatpush3.bf16.msra.mxu0 %v5352_v30  ;;  %v4973_v55 = vpop.permute.xlu1 %4972 }
 0xfb1   : > { %9835 = vmatprep.subr.bf16.mxu0 %v10505_v3 }
 0xfb3   : > { %9832 = vmatmul.mubr.msk.bf16.vlgmr.msra.gmra.mrb[84].mxu0 %vm1263_vm7, %v4966_v58 }
 0xfb4   : > { %9837 = vmatprep.mubr.msk.bf16.mxu0 %vm10506_vm0, %v10505_v3  ;;  %v4981_v49 = vpop.permute.xlu1 %4980 }
 0xfb8   : > { %v11645_v33 = vpop.permute.xlu1 %4982 }
 0xfbc   : > { %v4985_v27 = vpop.permute.xlu1 %4984 }
 0xfc0   : > { %5220 = vxpose.xlu1.c.b16.start.end [1/1] (short) (narrow) %v5022_v21, 16  ;;  %v11649_v56 = vpop.permute.xlu1 %4990 }
 0xfc3   : > { %v5040_v44 = vpop.permute.xlu0 %5039 }
 0xfc4   : > { %5252 = vxpose.xlu1.c.b16.start.end [1/1] (short) (narrow) %v5028_v13, 16  ;;  %5268 = vxpose.xlu0.c.b16.start.end [1/1] (short) (narrow) %v5031_v24, 16 }
 0xfc7   : > { %v5043_v52 = vpop.permute.xlu0 %5042 }
 0xfc8   : > { %5284 = vxpose.xlu1.c.b16.start.end [1/1] (short) (narrow) %v5034_v51, 16 }
 0xfcb   : > { %v4969_v9 = vpop.permute.xlu0 %4968 }
 0xfcc   : > { %5300 = vxpose.xlu1.c.b16.start.end [1/1] (short) (narrow) %v5037_v14, 16 }
 0xfcd   : > { %5047 = vrot.lane.b32.xlu0 %v11631_v63, %s12440_s21 }
 0xfcf   : > { %v4975_v22 = vpop.permute.xlu0 %4974 }
 0xfd0   : > { %5316 = vxpose.xlu1.c.b16.start.end [1/1] (short) (narrow) %v5040_v44, 16 }
 0xfd1   : > { %5053 = vrot.lane.b32.xlu0 %v11631_v63, %s12442_s27 }
 0xfd3   : > { %v4977_v11 = vpop.permute.xlu0 %4976 }
 0xfd4   : > { %5332 = vxpose.xlu1.c.b16.start.end [1/1] (short) (narrow) %v5043_v52, 16 }
 0xfd5   : > { %5056 = vrot.lane.b32.xlu0 %v11631_v63, %s12444_s19 }
 0xfd7   : > { %v4979_v15 = vpop.permute.xlu0 %4978 }
 0xfd8   : > { %5050 = vrot.lane.b32.xlu1 %v11631_v63, %s12441_s17 }
 0xfd9   : > { %5062 = vrot.lane.b32.xlu0 %v11631_v63, %s12431_s24 }
 0xfdb   : > { %v11647_v16 = vpop.permute.xlu0 %4986 }
 0xfdc   : > { %5059 = vrot.lane.b32.xlu1 %v11631_v63, %s12443_s14 }
 0xfdf   : > { %v11651_v2 = vpop.permute.xlu0 %4988 }
 0xfe3   : > { %v11655_v53 = vpop.permute.xlu0 %4994 }
 0xff3   : > { %v5116_v37 = vpop.trf.xlu1 }
 0xff4   : > { %v5398_v29 = vsel %vm1267_vm6, %v5116_v37, 0 }
 0xff5   : > { %9836 = vmatpush3.bf16.msra.mxu0 %v5398_v29 }
 0xff6   : > { %9841 = vmatprep.subr.bf16.mxu0 %v10505_v3 }
 0xff7   : > { %v5132_v20 = vpop.trf.xlu1  ;;  %6276 = vxpose.xlu0.c.b16.start.end [1/1] (short) (narrow) %v11631_v63, 16  ;;  %v5148_v47 = vpop.trf.xlu0 }
 0xff8   : > { %v5444_v10 = vsel %vm1267_vm6, %v5132_v20, 0  ;;  %9838 = vmatmul.mubr.msk.bf16.vlgmr.msra.gmra.mrb[88].mxu0 %vm1263_vm7, %v4969_v9  ;;  %v5490_v35 = vsel %vm1267_vm6, %v5148_v47, 0 }
 0xff9   : > { %9842 = vmatpush3.bf16.msra.mxu0 %v5444_v10  ;;  %9843 = vmatprep.mubr.msk.bf16.mxu0 %vm10506_vm0, %v10505_v3 }
 0xffa   : > { %9847 = vmatprep.subr.bf16.mxu0 %v10505_v3 }
 0xffb   : > { %v5164_v23 = vpop.trf.xlu1  ;;  %v5180_v26 = vpop.trf.xlu0 }
 0xffc   : > { %v5536_v12 = vsel %vm1267_vm6, %v5164_v23, 0  ;;  %v5582_v28 = vsel %vm1267_vm6, %v5180_v26, 0 }
 0xffd   : > { %9854 = vmatpush3.bf16.msra.mxu1 %v5536_v12 }
 0xffe   : > { %9865 = vmatprep.subr.bf16.mxu1 %v10505_v3 }
 0xfff   : > { %v5196_v25 = vpop.trf.xlu1  ;;  %v5212_v32 = vpop.trf.xlu0 }
0x1000   : > { %9844 = vmatmul.mubr.msk.bf16.vlgmr.msra.gmra.mrb[92].mxu0 %vm1263_vm7, %v4971_v36  ;;  %9856 = vmatmul.mubr.msk.bf16.vlgmr.msra.gmra.mrb[76].mxu1 %vm1263_vm7, %v4975_v22  ;;  %v5628_v6 = vsel %vm1267_vm6, %v5196_v25, 0  ;;  %v5674_v4 = vsel %vm1267_vm6, %v5212_v32, 0 }
0x1001   : > { %9848 = vmatpush3.bf16.msra.mxu0 %v5490_v35  ;;  %9866 = vmatpush3.bf16.msra.mxu1 %v5628_v6 }
0x1002   : > { %9849 = vmatprep.mubr.msk.bf16.mxu0 %vm10506_vm0, %v10505_v3  ;;  %9867 = vmatprep.mubr.msk.bf16.mxu1 %vm10506_vm0, %v10505_v3 }
0x1003   : > { %9859 = vmatprep.subr.bf16.mxu0 %v10505_v3  ;;  %9877 = vmatprep.subr.bf16.mxu1 %v10505_v3  ;;  %v5244_v1 = vpop.trf.xlu0 }
0x1004   : > { %v5766_v41 = vsel %vm1267_vm6, %v5244_v1, 0 }
0x1008   : > { %9850 = vmatmul.mubr.msk.bf16.vlgmr.msra.gmra.mrb[96].mxu0 %vm1263_vm7, %v4973_v55  ;;  %9868 = vmatmul.mubr.msk.bf16.vlgmr.msra.gmra.mrb[80].mxu1 %vm1263_vm7, %v4979_v15 }
0x1009   : > { %9860 = vmatpush3.bf16.msra.mxu0 %v5582_v28  ;;  %9861 = vmatprep.mubr.msk.bf16.mxu0 %vm10506_vm0, %v10505_v3 }
0x100a   : > { %9871 = vmatprep.subr.bf16.mxu0 %v10505_v3  ;;  %9879 = vmatprep.mubr.msk.bf16.mxu1 %vm10506_vm0, %v10505_v3 }
0x100f   : > { %v4993_v40 = vpop.permute.xlu1 %4992 }
0x1010   : > { %9862 = vmatmul.mubr.msk.bf16.vlgmr.msra.gmra.mrb[100].mxu0 %vm1263_vm7, %v4977_v11 }
0x1011   : > { %9872 = vmatpush3.bf16.msra.mxu0 %v5674_v4  ;;  %9873 = vmatprep.mubr.msk.bf16.mxu0 %vm10506_vm0, %v10505_v3 }
0x1012   : > { %9883 = vmatprep.subr.bf16.mxu0 %v10505_v3 }
0x1018   : > { %9874 = vmatmul.mubr.msk.bf16.vlgmr.msra.gmra.mrb[104].mxu0 %vm1263_vm7, %v4981_v49  ;;  %v4997_v62 = vpop.permute.xlu0 %4996 }
0x1019   : > { %9884 = vmatpush3.bf16.msra.mxu0 %v5766_v41  ;;  %9885 = vmatprep.mubr.msk.bf16.mxu0 %vm10506_vm0, %v10505_v3 }
0x101a   : > { %9895 = vmatprep.subr.bf16.mxu0 %v10505_v3 }
0x1020   : > { %9886 = vmatmul.mubr.msk.bf16.vlgmr.msra.gmra.mrb[108].mxu0 %vm1263_vm7, %v4985_v27 }
0x1021   : > { %9897 = vmatprep.mubr.msk.bf16.mxu0 %vm10506_vm0, %v10505_v3 }
0x1026   : > { %v5228_v18 = vpop.trf.xlu1 }
0x1027   : > { %v5720_v39 = vsel %vm1267_vm6, %v5228_v18, 0 }
0x1028   : > { %9878 = vmatpush3.bf16.msra.mxu1 %v5720_v39 }
0x1029   : > { %9889 = vmatprep.subr.bf16.mxu1 %v10505_v3 }
0x102a   : > { %v5260_v45 = vpop.trf.xlu1  ;;  %v5276_v58 = vpop.trf.xlu0 }
0x102b   : > { %v5812_v54 = vsel %vm1267_vm6, %v5260_v45, 0  ;;  %v5858_v57 = vsel %vm1267_vm6, %v5276_v58, 0  ;;  %9880 = vmatmul.mubr.msk.bf16.vlgmr.msra.gmra.mrb[84].mxu1 %vm1263_vm7, %v11645_v33 }
0x102c   : > { %9896 = vmatpush3.bf16.msra.mxu0 %v5858_v57  ;;  %9890 = vmatpush3.bf16.msra.mxu1 %v5812_v54 }
0x102d   : > { %9891 = vmatprep.mubr.msk.bf16.mxu1 %vm10506_vm0, %v10505_v3  ;;  %9907 = vmatprep.subr.bf16.mxu0 %v10505_v3 }
0x102e   : > { %v5292_v59 = vpop.trf.xlu1  ;;  %9901 = vmatprep.subr.bf16.mxu1 %v10505_v3 }
0x102f   : > { %9898 = vmatmul.mubr.msk.bf16.vlgmr.msra.gmra.mrb[112].mxu0 %vm1263_vm7, %v11651_v2  ;;  %v5904_v19 = vsel %vm1267_vm6, %v5292_v59, 0 }
0x1030   : > { %9909 = vmatprep.mubr.msk.bf16.mxu0 %vm10506_vm0, %v10505_v3 }
0x1032   : > { %v5308_v0 = vpop.trf.xlu1 }
0x1033   : > { %v5950_v42 = vsel %vm1267_vm6, %v5308_v0, 0  ;;  %9892 = vmatmul.mubr.msk.bf16.vlgmr.msra.gmra.mrb[88].mxu1 %vm1263_vm7, %v11647_v16 }
0x1034   : > { %9908 = vmatpush3.bf16.msra.mxu0 %v5950_v42  ;;  %9902 = vmatpush3.bf16.msra.mxu1 %v5904_v19 }
0x1035   : > { %9903 = vmatprep.mubr.msk.bf16.mxu1 %vm10506_vm0, %v10505_v3  ;;  %9919 = vmatprep.subr.bf16.mxu0 %v10505_v3 }
0x1036   : > { %v5324_v60 = vpop.trf.xlu1  ;;  %9913 = vmatprep.subr.bf16.mxu1 %v10505_v3 }
0x1037   : > { %9910 = vmatmul.mubr.msk.bf16.vlgmr.msra.gmra.mrb[116].mxu0 %vm1263_vm7, %v4993_v40  ;;  %v5996_v61 = vsel %vm1267_vm6, %v5324_v60, 0 }
0x1038   : > { %9921 = vmatprep.mubr.msk.bf16.mxu0 %vm10506_vm0, %v10505_v3 }
0x103a   : > { %v5340_v21 = vpop.trf.xlu1 }
0x103b   : > { %v6042_v24 = vsel %vm1267_vm6, %v5340_v21, 0  ;;  %9904 = vmatmul.mubr.msk.bf16.vlgmr.msra.gmra.mrb[92].mxu1 %vm1263_vm7, %v11649_v56  ;;  %vm12447_vm6 = vcmask 457728  }
0x103c   : > { %9920 = vmatpush3.bf16.msra.mxu0 %v6042_v24  ;;  %9914 = vmatpush3.bf16.msra.mxu1 %v5996_v61 }
0x103d   : > { %9915 = vmatprep.mubr.msk.bf16.mxu1 %vm10506_vm0, %v10505_v3  ;;  %9925 = vmatprep.subr.bf16.mxu1 %v10505_v3 }
0x103e   : > { %9931 = vmatprep.subr.bf16.mxu0 %v10505_v3 }
0x103f   : > { %9922 = vmatmul.mubr.msk.bf16.vlgmr.msra.gmra.mrb[120].mxu0 %vm1263_vm7, %v4997_v62  ;;  %v5048_v8 = vpop.permute.xlu0 %5047 }
0x1040   : > { %6292 = vxpose.xlu1.c.b16.start.end [1/1] (short) (narrow) %v5048_v8, 16  ;;  %9933 = vmatprep.mubr.msk.bf16.mxu0 %vm10506_vm0, %v10505_v3 }
0x1043   : > { %9916 = vmatmul.mubr.msk.bf16.vlgmr.msra.gmra.mrb[96].mxu1 %vm1263_vm7, %v11655_v53  ;;  %v5054_v30 = vpop.permute.xlu0 %5053 }
0x1044   : > { %9927 = vmatprep.mubr.msk.bf16.mxu1 %vm10506_vm0, %v10505_v3 }
0x1047   : > { %v5057_v13 = vpop.permute.xlu0 %5056 }
0x1048   : > { %6340 = vxpose.xlu1.c.b16.start.end [1/1] (short) (narrow) %v5057_v13, 16 }
0x104a   : > { %v5051_v51 = vpop.permute.xlu1 %5050 }
0x104b   : > { %6308 = vxpose.xlu0.c.b16.start.end [1/1] (short) (narrow) %v5051_v51, 16  ;;  %v5063_v44 = vpop.permute.xlu0 %5062 }
0x104c   : > { %6372 = vxpose.xlu1.c.b16.start.end [1/1] (short) (narrow) %v5063_v44, 16 }
0x104e   : > { %v5060_v14 = vpop.permute.xlu1 %5059 }
0x104f   : > { %6324 = vxpose.xlu0.c.b16.start.end [1/1] (short) (narrow) %v5054_v30, 16 }
0x1050   : > { %5065 = vrot.lane.b32.xlu1 %v11631_v63, %s12430_s16 }
0x1053   : > { %6356 = vxpose.xlu0.c.b16.start.end [1/1] (short) (narrow) %v5060_v14, 16 }
0x1086   : > { %v5388_v52 = vpop.f32.mrb[84].mxu0 }
0x1087   : > { %v11739_v36 = vadd.f32 %v5388_v52, %v10961_v34  ;;  %v9833_v9 = vpop.f32.mrb[85].mxu0 }
0x1088   : > { %v5391_v55 = vpop.f32.mrb[86].mxu0 }
0x1089   : > { %v9834_v22 = vpop.f32.mrb[87].mxu0  ;;  %v6084_v49 = vsel %vm1263_vm7, %v11739_v36, -inf }
0x108a   : > { %6085 = vmax.xlane.f32.xlu1 %v6084_v49 }
0x10a6   : > { %v11743_v11 = vpop.trf.xlu1 }
0x10ae   : > { %v11745_v33 = vpop.trf.xlu1 }
0x10b2   : > { %v11747_v15 = vpop.trf.xlu1 }
0x10c2   : > { %v5066_v27 = vpop.permute.xlu1 %5065 }
0x10c3   : > { %6388 = vxpose.xlu0.c.b16.start.end [1/1] (short) (narrow) %v5066_v27, 16 }
0x10cb   : > { %v5434_v16 = vpop.f32.mrb[88].mxu0 }
0x10cc   : > { %5068 = vrot.lane.b32.xlu0 %v11631_v63, %s12432_s0  ;;  %v9839_v56 = vpop.f32.mrb[89].mxu0  ;;  %v11774_v60 = vadd.f32 %v5434_v16, %v10961_v34 }
0x10cd   : > { %v5437_v2 = vpop.f32.mrb[90].mxu0 }
0x10ce   : > { %v9840_v37 = vpop.f32.mrb[91].mxu0  ;;  %v6087_v51 = vsel %vm1263_vm7, %v11774_v60, -inf }
0x10d0   : > { %5074 = vrot.lane.b32.xlu0 %v11631_v63, %s12433_s30 }
0x10d3   : > { %v5480_v29 = vpop.f32.mrb[92].mxu0  ;;  %v5572_v53 = vpop.f32.mrb[76].mxu1 }
0x10d4   : > { %v11754_v20 = vadd.f32 %v5572_v53, %v10961_v34  ;;  %v9845_v10 = vpop.f32.mrb[93].mxu0  ;;  %v9857_v23 = vpop.f32.mrb[77].mxu1  ;;  %v11757_v35 = vadd.f32 %v5480_v29, %v10961_v34 }
0x10d5   : > { %v5483_v47 = vpop.f32.mrb[94].mxu0  ;;  %v5575_v12 = vpop.f32.mrb[78].mxu1 }
0x10d6   : > { %v9846_v25 = vpop.f32.mrb[95].mxu0  ;;  %v9858_v6 = vpop.f32.mrb[79].mxu1  ;;  %v6096_v26 = vsel %vm1263_vm7, %v11754_v20, -inf  ;;  %v6090_v28 = vsel %vm1263_vm7, %v11757_v35, -inf }
0x10d7   : > { %6097 = vmax.xlane.f32.xlu1 %v6096_v26 }
0x10db   : > { %v5664_v32 = vpop.f32.mrb[80].mxu1  ;;  %6091 = vmax.xlane.f32.xlu1 %v6090_v28  ;;  %v5526_v4 = vpop.f32.mrb[96].mxu0 }
0x10dc   : > { %v11764_v1 = vadd.f32 %v5526_v4, %v10961_v34  ;;  %v9851_v41 = vpop.f32.mrb[97].mxu0  ;;  %v9869_v40 = vpop.f32.mrb[81].mxu1  ;;  %v11780_v30 = vadd.f32 %v5664_v32, %v10961_v34 }
0x10dd   : > { %v5529_v62 = vpop.f32.mrb[98].mxu0  ;;  %v5667_v18 = vpop.f32.mrb[82].mxu1 }
0x10de   : > { %v9852_v39 = vpop.f32.mrb[99].mxu0  ;;  %v9870_v45 = vpop.f32.mrb[83].mxu1  ;;  %v6093_v58 = vsel %vm1263_vm7, %v11764_v1, -inf  ;;  %v6102_v14 = vsel %vm1263_vm7, %v11780_v30, -inf }
0x10df   : > { %6094 = vmax.xlane.f32.xlu1 %v6093_v58 }
0x10e3   : > { %v5618_v54 = vpop.f32.mrb[100].mxu0 }
0x10e4   : > { %v11769_v57 = vadd.f32 %v5618_v54, %v10961_v34  ;;  %v9863_v59 = vpop.f32.mrb[101].mxu0 }
0x10e5   : > { %v5621_v19 = vpop.f32.mrb[102].mxu0 }
0x10e6   : > { %v9864_v0 = vpop.f32.mrb[103].mxu0  ;;  %v6099_v42 = vsel %vm1263_vm7, %v11769_v57, -inf }
0x10e7   : > { %6100 = vmax.xlane.f32.xlu1 %v6099_v42 }
0x10eb   : > { %v5710_v61 = vpop.f32.mrb[104].mxu0 }
0x10ec   : > { %v11777_v21 = vadd.f32 %v5710_v61, %v10961_v34  ;;  %v9875_v24 = vpop.f32.mrb[105].mxu0 }
0x10ed   : > { %v5713_v8 = vpop.f32.mrb[106].mxu0 }
0x10ee   : > { %v9876_v13 = vpop.f32.mrb[107].mxu0  ;;  %v6105_v44 = vsel %vm1263_vm7, %v11777_v21, -inf }
0x10ef   : > { %6088 = vmax.xlane.f32.xlu0 %v6087_v51  ;;  %6106 = vmax.xlane.f32.xlu1 %v6105_v44 }
0x10f3   : > { %6103 = vmax.xlane.f32.xlu0 %v6102_v14  ;;  %v5802_v52 = vpop.f32.mrb[108].mxu0 }
0x10f4   : > { %v11789_v9 = vadd.f32 %v5802_v52, %v10961_v34  ;;  %v9887_v55 = vpop.f32.mrb[109].mxu0 }
0x10f5   : > { %v5805_v22 = vpop.f32.mrb[110].mxu0 }
0x10f6   : > { %v9888_v49 = vpop.f32.mrb[111].mxu0  ;;  %v6111_v27 = vsel %vm1263_vm7, %v11789_v9, -inf }
0x10f7   : > { %6112 = vmax.xlane.f32.xlu1 %v6111_v27 }
0x10fe   : > { %v5756_v16 = vpop.f32.mrb[84].mxu1 }
0x10ff   : > { %v11794_v56 = vadd.f32 %v5756_v16, %v10961_v34  ;;  %v9881_v2 = vpop.f32.mrb[85].mxu1 }
0x1100   : > { %v5759_v37 = vpop.f32.mrb[86].mxu1 }
0x1101   : > { %v9882_v29 = vpop.f32.mrb[87].mxu1  ;;  %v6108_v53 = vsel %vm1263_vm7, %v11794_v56, -inf }
0x1102   : > { %6109 = vmax.xlane.f32.xlu0 %v6108_v53  ;;  %v5894_v10 = vpop.f32.mrb[112].mxu0 }
0x1103   : > { %v9899_v23 = vpop.f32.mrb[113].mxu0  ;;  %v11812_v49 = vadd.f32 %v5894_v10, %v10961_v34 }
0x1104   : > { %v5897_v47 = vpop.f32.mrb[114].mxu0  ;;  %v11835_v23 = vpop.trf.xlu0 }
0x1105   : > { %v9900_v12 = vpop.f32.mrb[115].mxu0 }
0x1106   : > { %v5848_v25 = vpop.f32.mrb[88].mxu1 }
0x1107   : > { %v11799_v6 = vadd.f32 %v5848_v25, %v10961_v34  ;;  %v9893_v26 = vpop.f32.mrb[89].mxu1 }
0x1108   : > { %v5851_v28 = vpop.f32.mrb[90].mxu1  ;;  %v11837_v47 = vpop.trf.xlu0 }
0x1109   : > { %v9894_v32 = vpop.f32.mrb[91].mxu1  ;;  %v6114_v4 = vsel %vm1263_vm7, %v11799_v6, -inf }
0x110a   : > { %6115 = vmax.xlane.f32.xlu0 %v6114_v4  ;;  %v5986_v41 = vpop.f32.mrb[116].mxu0 }
0x110b   : > { %v9911_v40 = vpop.f32.mrb[117].mxu0  ;;  %v11819_v16 = vadd.f32 %v5986_v41, %v10961_v34 }
0x110c   : > { %v5989_v62 = vpop.f32.mrb[118].mxu0  ;;  %v11839_v12 = vpop.trf.xlu0 }
0x110d   : > { %v9912_v18 = vpop.f32.mrb[119].mxu0  ;;  %v6123_v37 = vsel %vm1263_vm7, %v11819_v16, -inf }
0x110e   : > { %v5940_v39 = vpop.f32.mrb[92].mxu1 }
0x110f   : > { %v11804_v45 = vadd.f32 %v5940_v39, %v10961_v34  ;;  %v9905_v58 = vpop.f32.mrb[93].mxu1 }
0x1110   : > { %v5943_v54 = vpop.f32.mrb[94].mxu1  ;;  %v11842_v28 = vpop.trf.xlu0 }
0x1111   : > { %v9906_v59 = vpop.f32.mrb[95].mxu1  ;;  %v6120_v19 = vsel %vm1263_vm7, %v11804_v45, -inf }
0x1112   : > { %6121 = vmax.xlane.f32.xlu0 %v6120_v19  ;;  %v6078_v0 = vpop.f32.mrb[120].mxu0 }
0x1113   : > { %v9923_v42 = vpop.f32.mrb[121].mxu0  ;;  %v11824_v2 = vadd.f32 %v6078_v0, %v10961_v34 }
0x1114   : > { %v6081_v61 = vpop.f32.mrb[122].mxu0 }
0x1115   : > { %v9924_v24 = vpop.f32.mrb[123].mxu0  ;;  %v6129_v29 = vsel %vm1263_vm7, %v11824_v2, -inf }
0x1116   : > { %v6032_v8 = vpop.f32.mrb[96].mxu1 }
0x1117   : > { %v9917_v13 = vpop.f32.mrb[97].mxu1  ;;  %v6086_v51 = vpop.xlane.xlu1 %6085  ;;  %v11831_v53 = vadd.f32 %v6032_v8, %v10961_v34 }
0x1118   : > { %v6132_v44 = vsub.f32 %v11739_v36, %v6086_v51  ;;  %v6035_v14 = vpop.f32.mrb[98].mxu1  ;;  %v6117_v36 = vsel %vm1263_vm7, %v11812_v49, -inf }
0x1119   : > { %v9918_v52 = vpop.f32.mrb[99].mxu1  ;;  %v6126_v10 = vsel %vm1263_vm7, %v11831_v53, -inf }
0x111a   : > { %v6148_v55 = vmul.f32 1.442695, %v6132_v44 }
0x111c   : > { %10368 = vpow2.f32 %v6148_v55 }
0x1126   : > { %v11809_v22 = vpop.eup %10368 }
0x1127   : > { %v6180_v27 = vsel %vm1263_vm7, %v11809_v22, 0.0 }
0x1128   : > { %5080 = vrot.lane.b32.xlu0 %v11631_v63, %s12436_s15  ;;  %6181 = vadd.xlane.f32.xlu1 %v6180_v27 }
0x1129   : > { %v11845_v40 = vpop.trf.xlu0 }
0x112c   : > { %6118 = vmax.xlane.f32.xlu1 %v6117_v36 }
0x1130   : > { %6124 = vmax.xlane.f32.xlu1 %v6123_v37 }
0x1134   : > { %6130 = vmax.xlane.f32.xlu1 %v6129_v29 }
0x113e   : > { %v5069_v62 = vpop.permute.xlu0 %5068 }
0x1147   : > { %6127 = vmax.xlane.f32.xlu0 %v6126_v10 }
0x1164   : > { %v6098_v25 = vpop.xlane.xlu1 %6097 }
0x1165   : > { %v6136_v26 = vsub.f32 %v11754_v20, %v6098_v25  ;;  %v11853_v20 = vpop.permute.xlu0 %5074 }
0x1167   : > { %v6156_v32 = vmul.f32 1.442695, %v6136_v26 }
0x1168   : > { %v6092_v4 = vpop.xlane.xlu1 %6091 }
0x1169   : > { %10370 = vpow2.f32 %v6156_v32  ;;  %v6134_v34 = vsub.f32 %v11757_v35, %v6092_v4 }
0x116b   : > { %v6152_v41 = vmul.f32 1.442695, %v6134_v34 }
0x116d   : > { %10372 = vpow2.f32 %v6152_v41 }
0x1173   : > { %v11847_v18 = vpop.eup %10370 }
0x1174   : > { %v6192_v39 = vsel %vm1263_vm7, %v11847_v18, 0.0 }
0x1175   : > { %6193 = vadd.xlane.f32.xlu0 %v6192_v39 }
0x1177   : > { %v11851_v58 = vpop.eup %10372 }
0x1178   : > { %v6186_v54 = vsel %vm1263_vm7, %v11851_v58, 0.0 }
0x1179   : > { %6187 = vadd.xlane.f32.xlu0 %v6186_v54 }
0x117c   : > { %v6089_v35 = vpop.xlane.xlu0 %6088 }
0x117d   : > { %v6133_v59 = vsub.f32 %v11774_v60, %v6089_v35  ;;  %v6095_v60 = vpop.xlane.xlu1 %6094 }
0x117f   : > { %v6150_v19 = vmul.f32 1.442695, %v6133_v59 }
0x1180   : > { %v6104_v0 = vpop.xlane.xlu0 %6103 }
0x1181   : > { %10374 = vpow2.f32 %v6150_v19  ;;  %v6138_v42 = vsub.f32 %v11780_v30, %v6104_v0  ;;  %v6101_v44 = vpop.xlane.xlu1 %6100  ;;  %v6135_v19 = vsub.f32 %v11764_v1, %v6095_v60 }
0x1183   : > { %v6160_v61 = vmul.f32 1.442695, %v6138_v42 }
0x1185   : > { %10376 = vpow2.f32 %v6160_v61  ;;  %v6107_v30 = vpop.xlane.xlu1 %6106  ;;  %v6154_v61 = vmul.f32 1.442695, %v6135_v19 }
0x1189   : > { %v6113_v55 = vpop.xlane.xlu1 %6112 }
0x118b   : > { %v11859_v24 = vpop.eup %10374 }
0x118c   : > { %v6183_v8 = vsel %vm1263_vm7, %v11859_v24, 0.0 }
0x118d   : > { %6184 = vadd.xlane.f32.xlu1 %v6183_v8  ;;  %v6137_v8 = vsub.f32 %v11769_v57, %v6101_v44 }
0x118f   : > { %v11863_v13 = vpop.eup %10376  ;;  %v6110_v14 = vpop.xlane.xlu0 %6109 }
0x1190   : > { %v6198_v51 = vsel %vm1263_vm7, %v11863_v13, 0.0  ;;  %v6140_v52 = vsub.f32 %v11794_v56, %v6110_v14 }
0x1191   : > { %6199 = vadd.xlane.f32.xlu0 %v6198_v51  ;;  %v6139_v51 = vsub.f32 %v11777_v21, %v6107_v30 }
0x1192   : > { %v6164_v36 = vmul.f32 1.442695, %v6140_v52  ;;  %v6141_v52 = vsub.f32 %v11789_v9, %v6113_v55 }
0x1193   : > { %v6162_v14 = vmul.f32 1.442695, %v6139_v51 }
0x1197   : > { %v6116_v27 = vpop.xlane.xlu0 %6115 }
0x1198   : > { %v6142_v37 = vsub.f32 %v11799_v6, %v6116_v27 }
0x119a   : > { %v6168_v25 = vmul.f32 1.442695, %v6142_v37 }
0x119f   : > { %v6122_v29 = vpop.xlane.xlu0 %6121 }
0x11a0   : > { %v6144_v26 = vsub.f32 %v11804_v45, %v6122_v29 }
0x11a2   : > { %v6172_v32 = vmul.f32 1.442695, %v6144_v26 }
0x11a3   : > { %v11897_v35 = vpop.permute.xlu0 %5080 }
0x11a7   : > { %5086 = vrot.lane.b32.xlu0 %v11631_v63, %s12437_s1 }
0x11b5   : > { %v6182_v10 = vpop.xlane.xlu1 %6181 }
0x11b6   : > { %10378 = vrcp.f32 %v6182_v10 }
0x11b7   : > { %10380 = vpow2.f32 %v6164_v36 }
0x11b8   : > { %10382 = vpow2.f32 %v6168_v25 }
0x11b9   : > { %10384 = vpow2.f32 %v6172_v32  ;;  %v6119_v27 = vpop.xlane.xlu1 %6118 }
0x11ba   : > { %6404 = vxpose.xlu1.c.b16.start.end [1/1] (short) (narrow) %v5069_v62, 16  ;;  %v6143_v60 = vsub.f32 %v11812_v49, %v6119_v27 }
0x11bc   : > { %v6170_v44 = vmul.f32 1.442695, %v6143_v60 }
0x11be   : > { %5071 = vrot.lane.b32.xlu1 %v11631_v63, %s12434_s20 }
0x11c0   : > { %v10379_v4 = vpop.eup %10378 }
0x11c1   : > { %v6244_v56 = vmul.f32 %v10379_v4, %v11809_v22  ;;  %v11875_v34 = vpop.eup %10380  ;;  %v6125_v4 = vpop.xlane.xlu1 %6124 }
0x11c2   : > { %5077 = vrot.lane.b32.xlu1 %v11631_v63, %s12435_s2  ;;  %v6204_v41 = vsel %vm1263_vm7, %v11875_v34, 0.0  ;;  %v11882_v62 = vpop.eup %10382  ;;  %v6145_v19 = vsub.f32 %v11819_v16, %v6125_v4 }
0x11c3   : > { %v6260_v6 = vpack.c.bf16 %v6244_v56, %v6244_v56  ;;  %v6210_v22 = vsel %vm1263_vm7, %v11882_v62, 0.0  ;;  %v11889_v39 = vpop.eup %10384 }
0x11c4   : > { %v6216_v54 = vsel %vm1263_vm7, %v11889_v39, 0.0 }
0x11c5   : > { %v6536_v45 = vsel %vm1263_vm7, %v6260_v6, 0 }
0x11c6   : > { %6205 = vadd.xlane.f32.xlu0 %v6204_v41  ;;  %9926 = vmatpush3.bf16.xpose.msra.mxu1 %v6536_v45 }
0x11c7   : > { %5083 = vrot.lane.b32.xlu1 %v11631_v63, %s12438_s22  ;;  %9937 = vmatprep.subr.bf16.mxu1 %v10505_v3 }
0x11ca   : > { %6211 = vadd.xlane.f32.xlu0 %v6210_v22  ;;  %v6131_v22 = vpop.xlane.xlu1 %6130 }
0x11cd   : > { %9928 = vmatmul.mubr.msk.bf16.vlgmr.msra.gmra.mrb[100].mxu1 %vm1263_vm7, %v11835_v23  ;;  %v6158_v23 = vmul.f32 1.442695, %v6137_v8 }
0x11ce   : > { %6217 = vadd.xlane.f32.xlu0 %v6216_v54  ;;  %9939 = vmatprep.mubr.msk.bf16.mxu1 %vm10506_vm0, %v10505_v3 }
0x11d4   : > { %v6128_v59 = vpop.xlane.xlu0 %6127 }
0x11d5   : > { %v6146_v0 = vsub.f32 %v11831_v53, %v6128_v59  ;;  %v6166_v53 = vmul.f32 1.442695, %v6141_v52 }
0x11d7   : > { %v6176_v42 = vmul.f32 1.442695, %v6146_v0 }
0x11d9   : > { %10386 = vpow2.f32 %v6176_v42 }
0x11da   : > { %10388 = vpow2.f32 %v6154_v61  ;;  %v6147_v61 = vsub.f32 %v11824_v2, %v6131_v22 }
0x11db   : > { %10390 = vpow2.f32 %v6158_v23 }
0x11dc   : > { %10392 = vpow2.f32 %v6162_v14  ;;  %v6178_v16 = vmul.f32 1.442695, %v6147_v61 }
0x11dd   : > { %10394 = vpow2.f32 %v6166_v53 }
0x11de   : > { %10396 = vpow2.f32 %v6170_v44 }
0x11e3   : > { %v11904_v36 = vpop.eup %10386 }
0x11e4   : > { %v6222_v1 = vsel %vm1263_vm7, %v11904_v36, 0.0  ;;  %v11909_v57 = vpop.eup %10388 }
0x11e5   : > { %6223 = vadd.xlane.f32.xlu0 %v6222_v1  ;;  %v6189_v21 = vsel %vm1263_vm7, %v11909_v57, 0.0  ;;  %v11913_v30 = vpop.eup %10390 }
0x11e6   : > { %v6195_v9 = vsel %vm1263_vm7, %v11913_v30, 0.0  ;;  %v11917_v55 = vpop.eup %10392 }
0x11e7   : > { %v6201_v49 = vsel %vm1263_vm7, %v11917_v55, 0.0  ;;  %v11921_v37 = vpop.eup %10394 }
0x11e8   : > { %v6207_v29 = vsel %vm1263_vm7, %v11921_v37, 0.0  ;;  %v11925_v10 = vpop.eup %10396 }
0x11e9   : > { %v6213_v25 = vsel %vm1263_vm7, %v11925_v10, 0.0 }
0x11eb   : > { %6190 = vadd.xlane.f32.xlu1 %v6189_v21 }
0x11ef   : > { %6196 = vadd.xlane.f32.xlu1 %v6195_v9 }
0x11f3   : > { %6202 = vadd.xlane.f32.xlu1 %v6201_v49 }
0x11f7   : > { %6208 = vadd.xlane.f32.xlu1 %v6207_v29 }
0x11fb   : > { %6214 = vadd.xlane.f32.xlu1 %v6213_v25 }
0x1202   : > { %v6194_v26 = vpop.xlane.xlu0 %6193 }
0x1206   : > { %v6188_v32 = vpop.xlane.xlu0 %6187 }
0x1207   : > { %10398 = vrcp.f32 %v6188_v32 }
0x1208   : > { %10400 = vrcp.f32 %v6194_v26 }
0x120c   : > { %5089 = vrot.lane.b32.xlu1 %v11631_v63, %s12439_s23  ;;  %v6174_v63 = vmul.f32 1.442695, %v6145_v19 }
0x1211   : > { %v10399_v56 = vpop.eup %10398 }
0x1212   : > { %v6246_v6 = vmul.f32 %v10399_v56, %v11851_v58  ;;  %v10401_v41 = vpop.eup %10400 }
0x1213   : > { %v6248_v59 = vmul.f32 %v10401_v41, %v11847_v18 }
0x1214   : > { %v6262_v45 = vpack.c.bf16 %v6246_v6, %v6246_v6 }
0x1215   : > { %v6264_v42 = vpack.c.bf16 %v6248_v59, %v6248_v59 }
0x1216   : > { %v6628_v54 = vsel %vm1263_vm7, %v6262_v45, 0 }
0x1217   : > { %9938 = vmatpush3.bf16.xpose.msra.mxu1 %v6628_v54  ;;  %v6720_v58 = vsel %vm1263_vm7, %v6264_v42, 0 }
0x1218   : > { %9949 = vmatprep.subr.bf16.mxu1 %v10505_v3 }
0x121a   : > { %v6185_v0 = vpop.xlane.xlu1 %6184 }
0x121b   : > { %10402 = vrcp.f32 %v6185_v0 }
0x121e   : > { %v6200_v8 = vpop.xlane.xlu0 %6199  ;;  %9940 = vmatmul.mubr.msk.bf16.vlgmr.msra.gmra.mrb[104].mxu1 %vm1263_vm7, %v11837_v47 }
0x121f   : > { %10404 = vrcp.f32 %v6200_v8  ;;  %9950 = vmatpush3.bf16.xpose.msra.mxu1 %v6720_v58  ;;  %9951 = vmatprep.mubr.msk.bf16.mxu1 %vm10506_vm0, %v10505_v3 }
0x1220   : > { %9961 = vmatprep.subr.bf16.mxu1 %v10505_v3  ;;  %10406 = vpow2.f32 %v6174_v63  ;;  %v6412_v14 = vpop.trf.xlu1 }
0x1221   : > { %10408 = vpow2.f32 %v6178_v16 }
0x1222   : > { %v5087_v9 = vpop.permute.xlu0 %5086 }
0x1225   : > { %v10403_v18 = vpop.eup %10402 }
0x1226   : > { %9952 = vmatmul.mubr.msk.bf16.vlgmr.msra.gmra.mrb[108].mxu1 %vm1263_vm7, %v11745_v33  ;;  %v6245_v2 = vmul.f32 %v10403_v18, %v11859_v24 }
0x1227   : > { %9963 = vmatprep.mubr.msk.bf16.mxu1 %vm10506_vm0, %v10505_v3 }
0x1228   : > { %v6261_v47 = vpack.c.bf16 %v6245_v2, %v6245_v2 }
0x1229   : > { %v10405_v23 = vpop.eup %10404 }
0x122a   : > { %v6582_v51 = vsel %vm1263_vm7, %v6261_v47, 0  ;;  %v6250_v52 = vmul.f32 %v10405_v23, %v11863_v13  ;;  %v11950_v27 = vpop.eup %10406 }
0x122b   : > { %9932 = vmatpush3.bf16.xpose.msra.mxu0 %v6582_v51  ;;  %v6219_v24 = vsel %vm1263_vm7, %v11950_v27, 0.0  ;;  %v11956_v53 = vpop.eup %10408 }
0x122c   : > { %v6266_v1 = vpack.c.bf16 %v6250_v52, %v6250_v52  ;;  %9943 = vmatprep.subr.bf16.mxu0 %v10505_v3  ;;  %v6225_v13 = vsel %vm1263_vm7, %v11956_v53, 0.0 }
0x122e   : > { %v6812_v33 = vsel %vm1263_vm7, %v6266_v1, 0 }
0x122f   : > { %9962 = vmatpush3.bf16.xpose.msra.mxu1 %v6812_v33 }
0x1230   : > { %6220 = vadd.xlane.f32.xlu1 %v6219_v24  ;;  %v5072_v60 = vpop.permute.xlu1 %5071  ;;  %9973 = vmatprep.subr.bf16.mxu1 %v10505_v3 }
0x1231   : > { %6420 = vxpose.xlu0.c.b16.start.end [1/1] (short) (narrow) %v5072_v60, 16 }
0x1232   : > { %9934 = vmatmul.mubr.msk.bf16.vlgmr.msra.gmra.mrb[124].mxu0 %vm1263_vm7, %v11743_v11 }
0x1233   : > { %9945 = vmatprep.mubr.msk.bf16.mxu0 %vm10506_vm0, %v10505_v3 }
0x1234   : > { %6226 = vadd.xlane.f32.xlu1 %v6225_v13  ;;  %v5078_v44 = vpop.permute.xlu1 %5077 }
0x1235   : > { %6452 = vxpose.xlu0.c.b16.start.end [1/1] (short) (narrow) %v5078_v44, 16 }
0x1236   : > { %9964 = vmatmul.mubr.msk.bf16.vlgmr.msra.gmra.mrb[112].mxu1 %vm1263_vm7, %v11747_v15 }
0x1237   : > { %9975 = vmatprep.mubr.msk.bf16.mxu1 %vm10506_vm0, %v10505_v3 }
0x1239   : > { %v5084_v21 = vpop.permute.xlu1 %5083 }
0x123a   : > { %6484 = vxpose.xlu0.c.b16.start.end [1/1] (short) (narrow) %v5084_v21, 16 }
0x1253   : > { %v6206_v49 = vpop.xlane.xlu0 %6205 }
0x1254   : > { %10410 = vrcp.f32 %v6206_v49 }
0x1257   : > { %v6212_v11 = vpop.xlane.xlu0 %6211 }
0x1258   : > { %10412 = vrcp.f32 %v6212_v11 }
0x125b   : > { %v6218_v2 = vpop.xlane.xlu0 %6217 }
0x125e   : > { %v10411_v29 = vpop.eup %10410 }
0x125f   : > { %v6252_v25 = vmul.f32 %v10411_v29, %v11875_v34 }
0x1261   : > { %6436 = vxpose.xlu1.c.b16.start.end [1/1] (short) (narrow) %v11853_v20, 16  ;;  %v6268_v26 = vpack.c.bf16 %v6252_v25, %v6252_v25 }
0x1262   : > { %v10413_v32 = vpop.eup %10412 }
0x1263   : > { %v6904_v4 = vsel %vm1263_vm7, %v6268_v26, 0  ;;  %v6254_v15 = vmul.f32 %v10413_v32, %v11882_v62 }
0x1264   : > { %9974 = vmatpush3.bf16.xpose.msra.mxu1 %v6904_v4 }
0x1265   : > { %6468 = vxpose.xlu1.c.b16.start.end [1/1] (short) (narrow) %v11897_v35, 16  ;;  %9985 = vmatprep.subr.bf16.mxu1 %v10505_v3  ;;  %v6270_v56 = vpack.c.bf16 %v6254_v15, %v6254_v15 }
0x1267   : > { %v6996_v6 = vsel %vm1263_vm7, %v6270_v56, 0 }
0x1269   : > { %6500 = vxpose.xlu1.c.b16.start.end [1/1] (short) (narrow) %v5087_v9, 16 }
0x126b   : > { %9976 = vmatmul.mubr.msk.bf16.vlgmr.msra.gmra.mrb[116].mxu1 %vm1263_vm7, %v6412_v14 }
0x126c   : > { %9986 = vmatpush3.bf16.xpose.msra.mxu1 %v6996_v6  ;;  %9987 = vmatprep.mubr.msk.bf16.mxu1 %vm10506_vm0, %v10505_v3 }
0x126d   : > { %9997 = vmatprep.subr.bf16.mxu1 %v10505_v3 }
0x1272   : > { %v6224_v51 = vpop.xlane.xlu0 %6223 }
0x1278   : > { %v6191_v20 = vpop.xlane.xlu1 %6190 }
0x1279   : > { %10414 = vrcp.f32 %v6191_v20 }
0x127c   : > { %v6197_v34 = vpop.xlane.xlu1 %6196 }
0x127d   : > { %10416 = vrcp.f32 %v6197_v34 }
0x1280   : > { %v6203_v62 = vpop.xlane.xlu1 %6202 }
0x1281   : > { %10418 = vrcp.f32 %v6203_v62 }
0x1283   : > { %v10415_v35 = vpop.eup %10414 }
0x1284   : > { %v6209_v41 = vpop.xlane.xlu1 %6208  ;;  %v6247_v45 = vmul.f32 %v10415_v35, %v11909_v57 }
0x1285   : > { %10420 = vrcp.f32 %v6209_v41 }
0x1286   : > { %v6263_v22 = vpack.c.bf16 %v6247_v45, %v6247_v45 }
0x1287   : > { %v10417_v54 = vpop.eup %10416 }
0x1288   : > { %v6215_v59 = vpop.xlane.xlu1 %6214  ;;  %v6674_v19 = vsel %vm1263_vm7, %v6263_v22, 0  ;;  %v6249_v0 = vmul.f32 %v10417_v54, %v11913_v30 }
0x1289   : > { %9944 = vmatpush3.bf16.xpose.msra.mxu0 %v6674_v19  ;;  %10422 = vrcp.f32 %v6215_v59 }
0x128a   : > { %9955 = vmatprep.subr.bf16.mxu0 %v10505_v3  ;;  %v6265_v63 = vpack.c.bf16 %v6249_v0, %v6249_v0  ;;  %10424 = vrcp.f32 %v6218_v2 }
0x128b   : > { %v10419_v61 = vpop.eup %10418  ;;  %10426 = vrcp.f32 %v6224_v51 }
0x128c   : > { %v5090_v42 = vpop.permute.xlu1 %5089  ;;  %v6766_v57 = vsel %vm1263_vm7, %v6265_v63, 0  ;;  %v6251_v8 = vmul.f32 %v10419_v61, %v11917_v55 }
0x128d   : > { %6516 = vxpose.xlu0.c.b16.start.end [1/1] (short) (narrow) %v5090_v42, 16 }
0x128e   : > { %v6267_v30 = vpack.c.bf16 %v6251_v8, %v6251_v8 }
0x128f   : > { %v10421_v58 = vpop.eup %10420 }
0x1290   : > { %9946 = vmatmul.mubr.msk.bf16.vlgmr.msra.gmra.mrb[128].mxu0 %vm1263_vm7, %v11839_v12  ;;  %v6858_v16 = vsel %vm1263_vm7, %v6267_v30, 0  ;;  %v6253_v12 = vmul.f32 %v10421_v58, %v11921_v37 }
0x1291   : > { %9956 = vmatpush3.bf16.xpose.msra.mxu0 %v6766_v57  ;;  %9957 = vmatprep.mubr.msk.bf16.mxu0 %vm10506_vm0, %v10505_v3 }
0x1292   : > { %9967 = vmatprep.subr.bf16.mxu0 %v10505_v3  ;;  %v6269_v55 = vpack.c.bf16 %v6253_v12, %v6253_v12 }
0x1293   : > { %v10423_v18 = vpop.eup %10422 }
0x1294   : > { %v6950_v23 = vsel %vm1263_vm7, %v6269_v55, 0  ;;  %v10425_v24 = vpop.eup %10424 }
0x1295   : > { %v6256_v13 = vmul.f32 %v10425_v24, %v11889_v39  ;;  %v10427_v9 = vpop.eup %10426 }
0x1296   : > { %v6258_v25 = vmul.f32 %v10427_v9, %v11904_v36 }
0x1297   : > { %v6428_v33 = vpop.trf.xlu0  ;;  %v6272_v21 = vpack.c.bf16 %v6256_v13, %v6256_v13 }
0x1298   : > { %9958 = vmatmul.mubr.msk.bf16.vlgmr.msra.gmra.mrb[132].mxu0 %vm1263_vm7, %v11842_v28  ;;  %v6255_v28 = vmul.f32 %v10423_v18, %v11925_v10  ;;  %v6274_v4 = vpack.c.bf16 %v6258_v25, %v6258_v25 }
0x1299   : > { %9968 = vmatpush3.bf16.xpose.msra.mxu0 %v6858_v16  ;;  %9969 = vmatprep.mubr.msk.bf16.mxu0 %vm10506_vm0, %v10505_v3  ;;  %v7088_v29 = vsel %vm1263_vm7, %v6272_v21, 0 }
0x129a   : > { %9979 = vmatprep.subr.bf16.mxu0 %v10505_v3  ;;  %v6271_v1 = vpack.c.bf16 %v6255_v28, %v6255_v28  ;;  %v7180_v36 = vsel %vm1263_vm7, %v6274_v4, 0 }
0x129b   : > { %v6460_v10 = vpop.trf.xlu0 }
0x12a0   : > { %9970 = vmatmul.mubr.msk.bf16.vlgmr.msra.gmra.mrb[136].mxu0 %vm1263_vm7, %v11845_v40  ;;  %v6572_v47 = vpop.f32.mrb[100].mxu1  ;;  %v7042_v40 = vsel %vm1263_vm7, %v6271_v1, 0  ;;  %v6492_v20 = vpop.trf.xlu0 }
0x12a1   : > { %9980 = vmatpush3.bf16.xpose.msra.mxu0 %v6950_v23  ;;  %v9929_v37 = vpop.f32.mrb[101].mxu1  ;;  %7268 = vxpose.xlu1.b32.start.end [1/1] (short) (narrow) %v6572_v47, 8 }
0x12a2   : > { %v6575_v14 = vpop.f32.mrb[102].mxu1  ;;  %9981 = vmatprep.mubr.msk.bf16.mxu0 %vm10506_vm0, %v10505_v3  ;;  %9991 = vmatprep.subr.bf16.mxu0 %v10505_v3 }
0x12a3   : > { %v9930_v52 = vpop.f32.mrb[103].mxu1 }
0x12a8   : > { %9982 = vmatmul.mubr.msk.bf16.vlgmr.msra.gmra.mrb[140].mxu0 %vm1263_vm7, %v6428_v33 }
0x12a9   : > { %9992 = vmatpush3.bf16.xpose.msra.mxu0 %v7042_v40  ;;  %9993 = vmatprep.mubr.msk.bf16.mxu0 %vm10506_vm0, %v10505_v3 }
0x12aa   : > { %10003 = vmatprep.subr.bf16.mxu0 %v10505_v3 }
0x12b0   : > { %9994 = vmatmul.mubr.msk.bf16.vlgmr.msra.gmra.mrb[144].mxu0 %vm1263_vm7, %v6460_v10 }
0x12b1   : > { %10005 = vmatprep.mubr.msk.bf16.mxu0 %vm10506_vm0, %v10505_v3 }
0x12bd   : > { %v6221_v60 = vpop.xlane.xlu1 %6220 }
0x12be   : > { %10428 = vrcp.f32 %v6221_v60 }
0x12c1   : > { %v6227_v44 = vpop.xlane.xlu1 %6226 }
0x12c2   : > { %10430 = vrcp.f32 %v6227_v44 }
0x12c7   : > { %v6444_v49 = vpop.trf.xlu1 }
0x12c8   : > { %v10429_v11 = vpop.eup %10428  ;;  %9988 = vmatmul.mubr.msk.bf16.vlgmr.msra.gmra.mrb[120].mxu1 %vm1263_vm7, %v6444_v49 }
0x12c9   : > { %9998 = vmatpush3.bf16.xpose.msra.mxu1 %v7088_v29  ;;  %v6257_v26 = vmul.f32 %v10429_v11, %v11950_v27  ;;  %9999 = vmatprep.mubr.msk.bf16.mxu1 %vm10506_vm0, %v10505_v3 }
0x12ca   : > { %10009 = vmatprep.subr.bf16.mxu1 %v10505_v3 }
0x12cb   : > { %v6273_v39 = vpack.c.bf16 %v6257_v26, %v6257_v26  ;;  %v6476_v56 = vpop.trf.xlu1 }
0x12cc   : > { %v10431_v32 = vpop.eup %10430 }
0x12cd   : > { %v7134_v15 = vsel %vm1263_vm7, %v6273_v39, 0  ;;  %v6259_v6 = vmul.f32 %v10431_v32, %v11956_v53 }
0x12ce   : > { %10004 = vmatpush3.bf16.xpose.msra.mxu0 %v7134_v15 }
0x12cf   : > { %10015 = vmatprep.subr.bf16.mxu0 %v10505_v3  ;;  %v6275_v27 = vpack.c.bf16 %v6259_v6, %v6259_v6  ;;  %v6508_v53 = vpop.trf.xlu1 }
0x12d0   : > { %10000 = vmatmul.mubr.msk.bf16.vlgmr.msra.gmra.mrb[124].mxu1 %vm1263_vm7, %v6476_v56 }
0x12d1   : > { %10010 = vmatpush3.bf16.xpose.msra.mxu1 %v7180_v36  ;;  %10011 = vmatprep.mubr.msk.bf16.mxu1 %vm10506_vm0, %v10505_v3  ;;  %v7226_v34 = vsel %vm1263_vm7, %v6275_v27, 0 }
0x12d2   : > { %10021 = vmatprep.subr.bf16.mxu1 %v10505_v3 }
0x12d5   : > { %10006 = vmatmul.mubr.msk.bf16.vlgmr.msra.gmra.mrb[148].mxu0 %vm1263_vm7, %v6492_v20 }
0x12d6   : > { %10016 = vmatpush3.bf16.xpose.msra.mxu0 %v7226_v34  ;;  %10017 = vmatprep.mubr.msk.bf16.mxu0 %vm10506_vm0, %v10505_v3 }
0x12d7   : > { %10041 = vmatprep.subr.bf16.mxu0 %v10505_v3 }
0x12d8   : > { %10012 = vmatmul.mubr.msk.bf16.vlgmr.msra.gmra.mrb[128].mxu1 %vm1263_vm7, %v6508_v53 }
0x12d9   : > { %10037 = vmatprep.mubr.msk.bf16.mxu1 %vm10506_vm0, %v10505_v3 }
0x12f1   : > { %v6664_v62 = vpop.f32.mrb[104].mxu1 }
0x12f2   : > { %v9941_v35 = vpop.f32.mrb[105].mxu1 }
0x12f3   : > { %v6524_v41 = vpop.trf.xlu0  ;;  %v6667_v45 = vpop.f32.mrb[106].mxu1 }
0x12f4   : > { %10018 = vmatmul.mubr.msk.bf16.vlgmr.msra.gmra.mrb[152].mxu0 %vm1263_vm7, %v6524_v41  ;;  %v9942_v22 = vpop.f32.mrb[107].mxu1 }
0x12f5   : > { %10057 = vmatprep.mubr.msk.bf16.mxu0 %vm10506_vm0, %v10505_v3 }
0x12f9   : > { %v6756_v54 = vpop.f32.mrb[108].mxu1 }
0x12fa   : > { %v9953_v59 = vpop.f32.mrb[109].mxu1  ;;  %7396 = vxpose.xlu1.b32.start.end [1/1] (short) (narrow) %v6756_v54, 8 }
0x12fb   : > { %v6759_v19 = vpop.f32.mrb[110].mxu1 }
0x12fc   : > { %v9954_v0 = vpop.f32.mrb[111].mxu1 }
0x1305   : > { %v6618_v42 = vpop.f32.mrb[124].mxu0 }
0x1306   : > { %7300 = vxpose.xlu0.b32.start.end [1/1] (short) (narrow) %v6618_v42, 8  ;;  %v9935_v63 = vpop.f32.mrb[125].mxu0 }
0x1307   : > { %v6621_v61 = vpop.f32.mrb[126].mxu0 }
0x1308   : > { %v9936_v57 = vpop.f32.mrb[127].mxu0 }
0x1309   : > { %v6848_v8 = vpop.f32.mrb[112].mxu1 }
0x130a   : > { %v9965_v30 = vpop.f32.mrb[113].mxu1  ;;  %7460 = vxpose.xlu1.b32.start.end [1/1] (short) (narrow) %v6848_v8, 8  ;;  %7332 = vxpose.xlu0.b32.start.end [1/1] (short) (narrow) %v6664_v62, 8 }
0x130b   : > { %v6851_v58 = vpop.f32.mrb[114].mxu1 }
0x130c   : > { %v9966_v16 = vpop.f32.mrb[115].mxu1 }
0x1321   : > { %v7284_v42 = vpop.trf.xlu1 }
0x133e   : > { %v6940_v12 = vpop.f32.mrb[116].mxu1 }
0x133f   : > { %v9977_v55 = vpop.f32.mrb[117].mxu1  ;;  %7524 = vxpose.xlu1.b32.start.end [1/1] (short) (narrow) %v6940_v12, 8 }
0x1340   : > { %v6943_v18 = vpop.f32.mrb[118].mxu1 }
0x1341   : > { %v9978_v2 = vpop.f32.mrb[119].mxu1 }
0x1363   : > { %v6710_v47 = vpop.f32.mrb[128].mxu0 }
0x1364   : > { %7364 = vxpose.xlu0.b32.start.end [1/1] (short) (narrow) %v6710_v47, 8  ;;  %v9947_v23 = vpop.f32.mrb[129].mxu0 }
0x1365   : > { %v6713_v28 = vpop.f32.mrb[130].mxu0 }
0x1366   : > { %v9948_v51 = vpop.f32.mrb[131].mxu0 }
0x136b   : > { %v6802_v37 = vpop.f32.mrb[132].mxu0 }
0x136c   : > { %7428 = vxpose.xlu0.b32.start.end [1/1] (short) (narrow) %v6802_v37, 8  ;;  %v9959_v14 = vpop.f32.mrb[133].mxu0 }
0x136d   : > { %v6805_v52 = vpop.f32.mrb[134].mxu0 }
0x136e   : > { %v9960_v1 = vpop.f32.mrb[135].mxu0 }
0x1373   : > { %v6894_v33 = vpop.f32.mrb[136].mxu0 }
0x1374   : > { %7492 = vxpose.xlu0.b32.start.end [1/1] (short) (narrow) %v6894_v33, 8  ;;  %v9971_v40 = vpop.f32.mrb[137].mxu0 }
0x1375   : > { %v6897_v10 = vpop.f32.mrb[138].mxu0 }
0x1376   : > { %v9972_v24 = vpop.f32.mrb[139].mxu0 }
0x137a   : > { %v7412_v18 = vpop.trf.xlu1 }
0x137b   : > { %v6986_v60 = vpop.f32.mrb[140].mxu0 }
0x137c   : > { %7556 = vxpose.xlu0.b32.start.end [1/1] (short) (narrow) %v6986_v60, 8  ;;  %v9983_v13 = vpop.f32.mrb[141].mxu0 }
0x137d   : > { %v6989_v44 = vpop.f32.mrb[142].mxu0 }
0x137e   : > { %v9984_v21 = vpop.f32.mrb[143].mxu0 }
0x1383   : > { %v7078_v9 = vpop.f32.mrb[144].mxu0 }
0x1384   : > { %7620 = vxpose.xlu0.b32.start.end [1/1] (short) (narrow) %v7078_v9, 8  ;;  %v9995_v49 = vpop.f32.mrb[145].mxu0 }
0x1385   : > { %v7081_v11 = vpop.f32.mrb[146].mxu0 }
0x1386   : > { %v9996_v29 = vpop.f32.mrb[147].mxu0  ;;  %v7316_v19 = vpop.trf.xlu0 }
0x138a   : > { %v7348_v0 = vpop.trf.xlu0  ;;  %v7476_v24 = vpop.trf.xlu1 }
0x138b   : > { %v7780_v63 = vcombine.low %v7284_v42, %v7348_v0  ;;  %v7781_v61 = vcombine.high %v7284_v42, %v7348_v0  ;;  %v7812_v49 = vcombine.low %v7412_v18, %v7476_v24  ;;  %v7813_v11 = vcombine.high %v7412_v18, %v7476_v24 }
0x138d   : > { %v7788_v8 = vrot.slane %v7780_v63, %v11262_v38  ;;  %v7795_v30 = vrot.slane %v7781_v61, %v11262_v38 }
0x139b   : > { %v7032_v25 = vpop.f32.mrb[120].mxu1 }
0x139c   : > { %7588 = vxpose.xlu1.b32.start.end [1/1] (short) (narrow) %v7032_v25, 8  ;;  %v9989_v26 = vpop.f32.mrb[121].mxu1 }
0x139d   : > { %v7035_v39 = vpop.f32.mrb[122].mxu1 }
0x139e   : > { %v9990_v32 = vpop.f32.mrb[123].mxu1 }
0x13a3   : > { %v7124_v4 = vpop.f32.mrb[124].mxu1 }
0x13a4   : > { %v10001_v15 = vpop.f32.mrb[125].mxu1  ;;  %7652 = vxpose.xlu1.b32.start.end [1/1] (short) (narrow) %v7124_v4, 8 }
0x13a5   : > { %v7127_v56 = vpop.f32.mrb[126].mxu1 }
0x13a6   : > { %v10002_v6 = vpop.f32.mrb[127].mxu1 }
0x13a7   : > { %v7820_v6 = vrot.slane %v7812_v49, %v11262_v38 }
0x13a8   : > { %v7170_v36 = vpop.f32.mrb[148].mxu0 }
0x13a9   : > { %v10007_v27 = vpop.f32.mrb[149].mxu0  ;;  %7684 = vxpose.xlu0.b32.start.end [1/1] (short) (narrow) %v7170_v36, 8  ;;  %v7827_v36 = vrot.slane %v7813_v11, %v11262_v38 }
0x13aa   : > { %v7173_v20 = vpop.f32.mrb[150].mxu0 }
0x13ab   : > { %v10008_v34 = vpop.f32.mrb[151].mxu0  ;;  %v7216_v53 = vpop.f32.mrb[128].mxu1 }
0x13ac   : > { %7716 = vxpose.xlu1.b32.start.end [1/1] (short) (narrow) %v7216_v53, 8  ;;  %v10013_v62 = vpop.f32.mrb[129].mxu1 }
0x13ad   : > { %v7219_v35 = vpop.f32.mrb[130].mxu1 }
0x13ae   : > { %v10014_v41 = vpop.f32.mrb[131].mxu1 }
0x13c7   : > { %v7262_v45 = vpop.f32.mrb[152].mxu0 }
0x13c8   : > { %7748 = vxpose.xlu0.b32.start.end [1/1] (short) (narrow) %v7262_v45, 8  ;;  %v10019_v22 = vpop.f32.mrb[153].mxu0 }
0x13c9   : > { %v7265_v54 = vpop.f32.mrb[154].mxu0 }
0x13ca   : > { %v10020_v59 = vpop.f32.mrb[155].mxu0 }
0x13e4   : > { %v7380_v57 = vpop.trf.xlu0 }
0x13e5   : > { %v7796_v58 = vcombine.low %v7316_v19, %v7380_v57  ;;  %v7797_v16 = vcombine.high %v7316_v19, %v7380_v57 }
0x13e7   : > { %v7804_v12 = vrot.slane %v7796_v58, %v11262_v38  ;;  %v7811_v55 = vrot.slane %v7797_v16, %v11262_v38 }
0x13e9   : > { %v7844_v2 = vcombine.low %v7788_v8, %v7804_v12  ;;  %v7845_v47 = vcombine.high %v7788_v8, %v7804_v12  ;;  %v7860_v23 = vcombine.low %v7795_v30, %v7811_v55  ;;  %v7861_v28 = vcombine.high %v7795_v30, %v7811_v55 }
0x13eb   : > { %v7852_v51 = vrot.slane %v7844_v2, %v11267_v7  ;;  %v7859_v37 = vrot.slane %v7845_v47, %v11267_v7  ;;  %v7868_v14 = vrot.slane %v7860_v23, %v11267_v7  ;;  %v7875_v52 = vrot.slane %v7861_v28, %v11267_v7 }
0x13ec   : > { %v7444_v60 = vpop.trf.xlu0 }
0x13ed   : > { %v9185_v1 = vcombine.low %v7852_v51, %v7859_v37  ;;  %v9187_v33 = vcombine.high %v7852_v51, %v7859_v37  ;;  %v9189_v40 = vcombine.low %v7868_v14, %v7875_v52  ;;  %v9191_v10 = vcombine.high %v7868_v14, %v7875_v52 }
0x13ef   : > { %v8060_v13 = vrot.slane %v9185_v1, %v11262_v38  ;;  %v8076_v44 = vrot.slane %v9187_v33, %v11262_v38  ;;  %v8092_v21 = vrot.slane %v9189_v40, %v11262_v38  ;;  %v8108_v9 = vrot.slane %v9191_v10, %v11262_v38 }
0x13f1   : > { %v8116_v29 = vcombine.low %v8060_v13, %v8076_v44  ;;  %v8148_v25 = vcombine.low %v8092_v21, %v8108_v9  ;;  %v8117_v26 = vcombine.high %v8060_v13, %v8076_v44  ;;  %v8149_v39 = vcombine.high %v8092_v21, %v8108_v9  ;;  %v7540_v13 = vpop.trf.xlu1 }
0x13f3   : > { %v12053_v32 = vrot.slane %v8116_v29, %v11267_v7  ;;  %v12056_v4 = vrot.slane %v8148_v25, %v11267_v7  ;;  %v8131_v15 = vrot.slane %v8117_v26, %v11267_v7  ;;  %v8163_v56 = vrot.slane %v8149_v39, %v11267_v7 }
0x13f4   : > { %v7508_v27 = vpop.trf.xlu0 }
0x13f5   : > { %v7828_v20 = vcombine.low %v7444_v60, %v7508_v27  ;;  %v7829_v34 = vcombine.high %v7444_v60, %v7508_v27  ;;  %v8181_v53 = vcombine.high %v12053_v32, %v12056_v4  ;;  %v8182_v62 = vcombine.low %v8131_v15, %v8163_v56 }
0x13f6   : > { %v8180_v35 = vcombine.low %v12053_v32, %v12056_v4  ;;  %v8183_v22 = vcombine.high %v8131_v15, %v8163_v56 }
0x13f7   : > { %v7836_v41 = vrot.slane %v7828_v20, %v11262_v38  ;;  %v7843_v45 = vrot.slane %v7829_v34, %v11262_v38  ;;  %8325 = vrot.lane.b32.xlu1 %v8181_v53, %s12439_s23  ;;  %8329 = vrot.lane.b32.xlu0 %v8182_v62, %s12437_s1  ;;  %s12448_s23 = sld [smem:[#allocation17_spill]] }
0x13f9   : > { %v7876_v54 = vcombine.low %v7820_v6, %v7836_v41  ;;  %v7877_v59 = vcombine.high %v7820_v6, %v7836_v41  ;;  %v7892_v19 = vcombine.low %v7827_v36, %v7843_v45  ;;  %v7893_v0 = vcombine.high %v7827_v36, %v7843_v45 }
0x13fb   : > { %v7884_v42 = vrot.slane %v7876_v54, %v11267_v7  ;;  %v7891_v63 = vrot.slane %v7877_v59, %v11267_v7  ;;  %v7900_v61 = vrot.slane %v7892_v19, %v11267_v7  ;;  %v7907_v57 = vrot.slane %v7893_v0, %v11267_v7  ;;  %8333 = vrot.lane.b32.xlu1 %v8183_v22, %s12438_s22 }
0x13fc   : > { %v7572_v60 = vpop.trf.xlu0 }
0x13fd   : > { %v9186_v8 = vcombine.low %v7884_v42, %v7891_v63  ;;  %v9188_v30 = vcombine.high %v7884_v42, %v7891_v63  ;;  %v9190_v58 = vcombine.low %v7900_v61, %v7907_v57  ;;  %v9192_v16 = vcombine.high %v7900_v61, %v7907_v57  ;;  %v10264_v63 = vld [vmem:[%s12356_s5 + $0x40] sm:$0xff]  }
0x13fe   : > { %10022 = vmatpush3.bf16.msra.mxu1 %v10264_v63 }
0x13ff   : > { %v8067_v12 = vrot.slane %v9186_v8, %v11262_v38  ;;  %v8083_v55 = vrot.slane %v9188_v30, %v11262_v38  ;;  %v8099_v18 = vrot.slane %v9190_v58, %v11262_v38  ;;  %v8115_v2 = vrot.slane %v9192_v16, %v11262_v38  ;;  %v10265_v58 = vld [vmem:[%s12356_s5 + $0x48] sm:$0xff]   ;;  %10023 = vmatprep.subr.bf16.mxu1 %v10505_v3 }
0x1401   : > { %v8132_v47 = vcombine.low %v8067_v12, %v8083_v55  ;;  %v8164_v23 = vcombine.low %v8099_v18, %v8115_v2  ;;  %v8133_v28 = vcombine.high %v8067_v12, %v8083_v55  ;;  %v8165_v51 = vcombine.high %v8099_v18, %v8115_v2 }
0x1402   : > { %10024 = vmatpush3.bf16.msra.mxu1 %v10265_v58 }
0x1403   : > { %v8140_v37 = vrot.slane %v8132_v47, %v11267_v7  ;;  %v8172_v14 = vrot.slane %v8164_v23, %v11267_v7  ;;  %v8147_v52 = vrot.slane %v8133_v28, %v11267_v7  ;;  %v8179_v1 = vrot.slane %v8165_v51, %v11267_v7  ;;  %v10266_v23 = vld [vmem:[%s12356_s5 + $0x50] sm:$0xff]   ;;  %10025 = vmatprep.subr.bf16.mxu1 %v10505_v3 }
0x1404   : > { %v7636_v44 = vpop.trf.xlu0 }
0x1405   : > { %v8184_v33 = vcombine.low %v8140_v37, %v8172_v14  ;;  %v8187_v40 = vcombine.high %v8147_v52, %v8179_v1  ;;  %v8185_v10 = vcombine.high %v8140_v37, %v8172_v14  ;;  %v8186_v24 = vcombine.low %v8147_v52, %v8179_v1  ;;  %v10267_v37 = vld [vmem:[%s12356_s5 + $0x58] sm:$0xff]   ;;  %v10268_v14 = vld [vmem:[%s12356_s5 + $0x60] sm:$0xff]   ;;  %v10269_v52 = vld [vmem:[%s12356_s5 + $0x68] sm:$0xff]  }
0x1406   : > { %v7932_v21 = vcombine.low %v7572_v60, %v7636_v44  ;;  %v7933_v9 = vcombine.high %v7572_v60, %v7636_v44  ;;  %10026 = vmatpush3.bf16.msra.mxu1 %v10266_v23 }
0x1407   : > { %8337 = vrot.lane.b32.xlu1 %v8184_v33, %s12436_s15  ;;  %8349 = vrot.lane.b32.xlu0 %v8187_v40, %s12434_s20  ;;  %s12452_s20 = sld [smem:[#allocation9_spill]] }
0x1408   : > { %v7940_v25 = vrot.slane %v7932_v21, %v11262_v38  ;;  %v7947_v26 = vrot.slane %v7933_v9, %v11262_v38  ;;  %10027 = vmatprep.subr.bf16.mxu1 %v10505_v3 }
0x140a   : > { %10028 = vmatpush3.bf16.msra.mxu1 %v10267_v37 }
0x140b   : > { %8341 = vrot.lane.b32.xlu1 %v8185_v10, %s12435_s2  ;;  %10029 = vmatprep.subr.bf16.mxu1 %v10505_v3  ;;  %s12451_s2 = sld [smem:[#allocation6_spill]] }
0x140e   : > { %10030 = vmatpush3.bf16.msra.mxu1 %v10268_v14 }
0x140f   : > { %8345 = vrot.lane.b32.xlu1 %v8186_v24, %s12433_s30  ;;  %10031 = vmatprep.subr.bf16.mxu1 %v10505_v3 }
0x1411   : > { %s429_s15 = sand.u32 1, %s12451_s2  }
0x1412   : > { %10032 = vmatpush3.bf16.msra.mxu1 %v10269_v52 }
0x1413   : > { %10033 = vmatprep.subr.bf16.mxu1 %v10505_v3 }
0x141c   : > { %v7604_v49 = vpop.trf.xlu1 }
0x141d   : > { %v7916_v11 = vcombine.low %v7540_v13, %v7604_v49  ;;  %v7917_v29 = vcombine.high %v7540_v13, %v7604_v49 }
0x141f   : > { %v7924_v39 = vrot.slane %v7916_v11, %v11262_v38  ;;  %v7931_v15 = vrot.slane %v7917_v29, %v11262_v38 }
0x1421   : > { %v7980_v56 = vcombine.low %v7924_v39, %v7940_v25  ;;  %v7981_v6 = vcombine.high %v7924_v39, %v7940_v25  ;;  %v7996_v36 = vcombine.low %v7931_v15, %v7947_v26  ;;  %v7997_v27 = vcombine.high %v7931_v15, %v7947_v26  ;;  %v10270_v15 = vld [vmem:[%s12356_s5 + $0x70] sm:$0xff]  }
0x1422   : > { %10034 = vmatpush3.bf16.msra.mxu1 %v10270_v15 }
0x1423   : > { %v7988_v20 = vrot.slane %v7980_v56, %v11267_v7  ;;  %v7995_v34 = vrot.slane %v7981_v6, %v11267_v7  ;;  %v8004_v53 = vrot.slane %v7996_v36, %v11267_v7  ;;  %v8011_v62 = vrot.slane %v7997_v27, %v11267_v7  ;;  %10035 = vmatprep.subr.bf16.mxu1 %v10505_v3 }
0x1424   : > { %v7668_v1 = vpop.trf.xlu1 }
0x1425   : > { %v9193_v41 = vcombine.low %v7988_v20, %v7995_v34  ;;  %v9195_v45 = vcombine.high %v7988_v20, %v7995_v34  ;;  %v9197_v22 = vcombine.low %v8004_v53, %v8011_v62  ;;  %v9199_v54 = vcombine.high %v8004_v53, %v8011_v62 }
0x1427   : > { %v8196_v59 = vrot.slane %v9193_v41, %v11262_v38  ;;  %v8212_v19 = vrot.slane %v9195_v45, %v11262_v38  ;;  %v8228_v0 = vrot.slane %v9197_v22, %v11262_v38  ;;  %v8244_v42 = vrot.slane %v9199_v54, %v11262_v38  ;;  %v10271_v41 = vld [vmem:[%s12356_s5 + $0x78] sm:$0xff]  }
0x1428   : > { %10036 = vmatpush3.bf16.msra.mxu1 %v10271_v41  ;;  %v10273_v41 = vld [vmem:[%s12358_s7 + $0x48] sm:$0xff]  }
0x1429   : > { %v8252_v61 = vcombine.low %v8196_v59, %v8212_v19  ;;  %v8284_v57 = vcombine.low %v8228_v0, %v8244_v42  ;;  %v8253_v8 = vcombine.high %v8196_v59, %v8212_v19  ;;  %v8285_v30 = vcombine.high %v8228_v0, %v8244_v42  ;;  %v7700_v33 = vpop.trf.xlu0  ;;  %10061 = vmatprep.subr.bf16.mxu1 %v10505_v3 }
0x142b   : > { %v8260_v16 = vrot.slane %v8252_v61, %v11267_v7  ;;  %v8292_v12 = vrot.slane %v8284_v57, %v11267_v7  ;;  %v8267_v55 = vrot.slane %v8253_v8, %v11267_v7  ;;  %v8299_v18 = vrot.slane %v8285_v30, %v11267_v7 }
0x142c   : > { %v7732_v40 = vpop.trf.xlu1 }
0x142d   : > { %v8316_v2 = vcombine.low %v8260_v16, %v8292_v12  ;;  %v8317_v47 = vcombine.high %v8260_v16, %v8292_v12  ;;  %v8318_v28 = vcombine.low %v8267_v55, %v8299_v18  ;;  %v8319_v51 = vcombine.high %v8267_v55, %v8299_v18 }
0x142e   : > { %v7948_v10 = vcombine.low %v7668_v1, %v7732_v40  ;;  %v7949_v24 = vcombine.high %v7668_v1, %v7732_v40 }
0x142f   : > { %8353 = vrot.lane.b32.xlu1 %v8316_v2, %s12432_s0  ;;  %8357 = vrot.lane.b32.xlu0 %v8317_v47, %s12430_s16  ;;  %s12450_s16 = sld [smem:[#allocation20_spill]]  ;;  %s9288_s0 = sshll.u32 %s12452_s20, 7 }
0x1430   : > { %v7956_v21 = vrot.slane %v7948_v10, %v11262_v38  ;;  %v7963_v9 = vrot.slane %v7949_v24, %v11262_v38  ;;  %s12311_s26 = scalar_lea.hbm %s12455_s12, %s9288_s0 }
0x1433   : > { %8361 = vrot.lane.b32.xlu1 %v8318_v28, %s12431_s24  ;;  %8365 = vrot.lane.b32.xlu0 %v8319_v51, %s12443_s14 }
0x1448   : > { %v7764_v60 = vpop.trf.xlu0 }
0x1449   : > { %v7964_v13 = vcombine.low %v7700_v33, %v7764_v60  ;;  %v7965_v44 = vcombine.high %v7700_v33, %v7764_v60 }
0x144b   : > { %v7972_v49 = vrot.slane %v7964_v13, %v11262_v38  ;;  %v7979_v11 = vrot.slane %v7965_v44, %v11262_v38 }
0x144d   : > { %v8012_v29 = vcombine.low %v7956_v21, %v7972_v49  ;;  %v8013_v25 = vcombine.high %v7956_v21, %v7972_v49  ;;  %v8028_v26 = vcombine.low %v7963_v9, %v7979_v11  ;;  %v8029_v39 = vcombine.high %v7963_v9, %v7979_v11 }
0x144f   : > { %v8020_v56 = vrot.slane %v8012_v29, %v11267_v7  ;;  %v8027_v6 = vrot.slane %v8013_v25, %v11267_v7  ;;  %v8036_v36 = vrot.slane %v8028_v26, %v11267_v7  ;;  %v8043_v27 = vrot.slane %v8029_v39, %v11267_v7 }
0x1451   : > { %v9194_v20 = vcombine.low %v8020_v56, %v8027_v6  ;;  %v9196_v34 = vcombine.high %v8020_v56, %v8027_v6  ;;  %v9198_v53 = vcombine.low %v8036_v36, %v8043_v27  ;;  %v9200_v62 = vcombine.high %v8036_v36, %v8043_v27  ;;  %v9218_v56 = vld [vmem:[%s12357_s6 + $0x1] ss:$0 sm:$0xff] }
0x1453   : > { %v8203_v45 = vrot.slane %v9194_v20, %v11262_v38  ;;  %v8219_v22 = vrot.slane %v9196_v34, %v11262_v38  ;;  %v8235_v54 = vrot.slane %v9198_v53, %v11262_v38  ;;  %v8251_v59 = vrot.slane %v9200_v62, %v11262_v38  ;;  %v10272_v62 = vld [vmem:[%s12358_s7 + $0x40] sm:$0xff]  }
0x1454   : > { %10042 = vmatpush3.bf16.msra.mxu0 %v10272_v62 }
0x1455   : > { %v8268_v19 = vcombine.low %v8203_v45, %v8219_v22  ;;  %v8300_v0 = vcombine.low %v8235_v54, %v8251_v59  ;;  %v8269_v42 = vcombine.high %v8203_v45, %v8219_v22  ;;  %v8301_v63 = vcombine.high %v8235_v54, %v8251_v59  ;;  %10043 = vmatprep.subr.bf16.mxu0 %v10505_v3 }
0x1457   : > { %v8276_v61 = vrot.slane %v8268_v19, %v11267_v7  ;;  %v8308_v57 = vrot.slane %v8300_v0, %v11267_v7  ;;  %v8283_v58 = vrot.slane %v8269_v42, %v11267_v7  ;;  %v8315_v16 = vrot.slane %v8301_v63, %v11267_v7  ;;  %v10274_v19 = vld [vmem:[%s12358_s7 + $0x50] sm:$0xff]   ;;  %v10275_v0 = vld [vmem:[%s12358_s7 + $0x58] sm:$0xff]   ;;  %v10276_v42 = vld [vmem:[%s12358_s7 + $0x60] sm:$0xff]  }
0x1458   : > { %10044 = vmatpush3.bf16.msra.mxu0 %v10273_v41  ;;  %v10277_v63 = vld [vmem:[%s12358_s7 + $0x68] sm:$0xff]  }
0x1459   : > { %v8321_v8 = vcombine.high %v8276_v61, %v8308_v57  ;;  %v8320_v30 = vcombine.low %v8276_v61, %v8308_v57  ;;  %v8323_v38 = vcombine.high %v8283_v58, %v8315_v16  ;;  %v8322_v12 = vcombine.low %v8283_v58, %v8315_v16  ;;  %10045 = vmatprep.subr.bf16.mxu0 %v10505_v3  ;;  %v10278_v61 = vld [vmem:[%s12358_s7 + $0x70] sm:$0xff]   ;;  %v10279_v57 = vld [vmem:[%s12358_s7 + $0x78] sm:$0xff]  }
0x145b   : > { %8373 = vrot.lane.b32.xlu0 %v8321_v8, %s12442_s27  ;;  %8369 = vrot.lane.b32.xlu1 %v8320_v30, %s12444_s19  ;;  %v10280_v8 = vld [vmem:[%s12360_s9 + $0x40] sm:$0xff]   ;;  %s8904_s27 = scalar_lea.sflag [#allocation3], %s429_s15  ;;  %s10526_s19 = smov [#allocation2]  }
0x145c   : > { %10046 = vmatpush3.bf16.msra.mxu0 %v10274_v19 }
0x145d   : > { %10047 = vmatprep.subr.bf16.mxu0 %v10505_v3 }
0x145f   : > { %8381 = vrot.lane.b32.xlu0 %v8323_v38, %s12440_s21  ;;  %8377 = vrot.lane.b32.xlu1 %v8322_v12, %s12441_s17  ;;  %v10439_v38 = vld [vmem:[%s12354_s3 + $0x4] sm:$0xf]  ;;  %s10444_s21 = sshll.u32 %s10526_s19, 4  ;;  %s10445_s21 = int_to_ptr.vmem [resolvable:$false] %s10444_s21 }
0x1460   : > { %10048 = vmatpush3.bf16.msra.mxu0 %v10275_v0  ;;  %v8529_v12 = vrot.slane %v10439_v38, %v4456_v43  ;;  %v10282_v43 = vld [vmem:[%s12360_s9 + $0x50] sm:$0xff]   ;;  %s10446_s18 = scalar_lea.vmem %s10445_s21, 256 }
0x1461   : > { %10049 = vmatprep.subr.bf16.mxu0 %v10505_v3 }
0x1464   : > { %10050 = vmatpush3.bf16.msra.mxu0 %v10276_v42 }
0x1465   : > { %10051 = vmatprep.subr.bf16.mxu0 %v10505_v3 }
0x1468   : > { %10052 = vmatpush3.bf16.msra.mxu0 %v10277_v63 }
0x1469   : > { %v8326_v55 = vpop.permute.xlu1 %8325  ;;  %v8330_v7 = vpop.permute.xlu0 %8329  ;;  %10053 = vmatprep.subr.bf16.mxu0 %v10505_v3 }
0x146a   : > { %v8384_v23 = vsel %vm1263_vm7, %v8180_v35, %v8326_v55 }
0x146b   : > { %v8385_v51 = vsel %vm480_vm2, %v8384_v23, %v8330_v7 }
0x146c   : > { %10054 = vmatpush3.bf16.msra.mxu0 %v10278_v61 }
0x146d   : > { %v8334_v18 = vpop.permute.xlu1 %8333  ;;  %10055 = vmatprep.subr.bf16.mxu0 %v10505_v3 }
0x146e   : > { %v8386_v37 = vsel %vm4303_vm9, %v8385_v51, %v8334_v18  ;;  %v10285_v51 = vld [vmem:[%s12360_s9 + $0x68] sm:$0xff]  }
0x1470   : > { %10056 = vmatpush3.bf16.msra.mxu0 %v10279_v57 }
0x1471   : > { %10081 = vmatprep.subr.bf16.mxu0 %v10505_v3 }
0x1479   : > { %v8338_v2 = vpop.permute.xlu1 %8337  ;;  %v8350_v14 = vpop.permute.xlu0 %8349 }
0x147a   : > { %v8387_v52 = vsel %vm4305_vm10, %v8386_v37, %v8338_v2  ;;  %v8534_v2 = vrot.slane %v10439_v38, %v4461_v17  ;;  %v10284_v17 = vld [vmem:[%s12360_s9 + $0x60] sm:$0xff]   ;;  %v10286_v37 = vld [vmem:[%s12360_s9 + $0x70] sm:$0xff]  }
0x147d   : > { %v8342_v47 = vpop.permute.xlu1 %8341 }
0x147e   : > { %v8388_v1 = vsel %vm4307_vm11, %v8387_v52, %v8342_v47  ;;  %v9244_v52 = vld [vmem:[%s12448_s23 + $0x1] ss:$0 sm:$0xff]  ;;  %s12453_s23 = sld [smem:[#allocation19_spill]] }
0x1481   : > { %v8346_v28 = vpop.permute.xlu1 %8345 }
0x1482   : > { %v8389_v40 = vsel %vm4309_vm12, %v8388_v1, %v8346_v28  ;;  %v10281_v28 = vld [vmem:[%s12360_s9 + $0x48] sm:$0xff]  }
0x1483   : > { %v8390_v24 = vsel %vm12447_vm6, %v8389_v40, %v8350_v14  ;;  %v10287_v14 = vld [vmem:[%s12360_s9 + $0x78] sm:$0xff]  }
0x1484   : > { %v8774_v63 = vld [vmem:[%s12453_s23] sm:$0x3] }
0x1485   : > { %v8790_v61 = vrot.slane %v8774_v63, %v10763_v48 }
0x14a1   : > { %v8354_v33 = vpop.permute.xlu1 %8353  ;;  %v8358_v10 = vpop.permute.xlu0 %8357 }
0x14a2   : > { %v8391_v32 = vsel %vm4313_vm14, %v8390_v24, %v8354_v33 }
0x14a3   : > { %v8392_v35 = vsel %vm4315_vm15, %v8391_v32, %v8358_v10 }
0x14a5   : > { %v8362_v4 = vpop.permute.xlu1 %8361  ;;  %v8366_v60 = vpop.permute.xlu0 %8365 }
0x14a6   : > { %v8393_v13 = vsel %vm4317_vm1, %v8392_v35, %v8362_v4 }
0x14a7   : > { %v8394_v44 = vsel %vm4319_vm3, %v8393_v13, %v8366_v60 }
0x14cd   : > { %v8370_v21 = vpop.permute.xlu1 %8369  ;;  %v8374_v9 = vpop.permute.xlu0 %8373 }
0x14ce   : > { %v8395_v49 = vsel %vm4321_vm4, %v8394_v44, %v8370_v21 }
0x14cf   : > { %v8396_v11 = vsel %vm4323_vm5, %v8395_v49, %v8374_v9 }
0x14d1   : > { %v8378_v29 = vpop.permute.xlu1 %8377  ;;  %v8382_v25 = vpop.permute.xlu0 %8381 }
0x14d2   : > { %v8397_v26 = vsel %vm4325_vm8, %v8396_v11, %v8378_v29  ;;  %v9270_v29 = vld [vmem:[%s12449_s11 + $0x1] ss:$0 sm:$0xff]  ;;  %s8980_s11 = sshll.u32 %s429_s15, 3 }
0x14d3   : > { %v8398_v39 = vsel %vm4327_vm13, %v8397_v26, %v8382_v25  ;;  %s431_s29 = scalar_lea.vmem [#allocation2], %s8980_s11 }
0x14d4   : > { %v8399_v15 = vpack.c.bf16 %v8398_v39, %v8398_v39  ;;  %s8917_s13 = sshll.u32 %s431_s29, 4  ;;  %s12306_s13 = int_to_ptr.vmem [resolvable:$true] %s8917_s13 }
0x14d5   : > { %s10440_s17 = scalar_lea.vmem %s12306_s13, 128  ;;  %p10447_p0 = scmp.lt.s32.totalorder %s12306_s13, %s10445_s21 }
0x14d6   : > { %10038 = vmatmul.mubr.bf16.vlgmr.msra.gmra.mrb[132].mxu1 %v8399_v15  ;;  %p10441_p11 = scmp.ne.s32.totalorder %s12306_s13, %s10440_s17  ;;  %p10448_p1 = scmp.lt.s32.totalorder %s10446_s18, %s10440_s17 }
0x14d7   : > { %10077 = vmatprep.mubr.msk.bf16.mxu1 %vm10506_vm0, %v10505_v3  ;;  %10062 = vmatpush3.bf16.msra.mxu1 %v10280_v8 }
0x14d8   : > { %10063 = vmatprep.subr.bf16.mxu1 %v10505_v3  ;;  %p10442_p12 = pnand %p10441_p11, %p10635_p5  ;;  %p10449_p2 = por %p10448_p1, %p10447_p0 }
0x14da   : > { %p10443_p13 = pneg %p10442_p12 }
0x14db   : > { %10064 = vmatpush3.bf16.msra.mxu1 %v10281_v28 }
0x14dc   : > { %10065 = vmatprep.subr.bf16.mxu1 %v10505_v3  ;;  %p10450_p3 = pnand %p10449_p2, %p10443_p13 }
0x14df   : > { %10066 = vmatpush3.bf16.msra.mxu1 %v10282_v43 }
0x14e0   : > { %10067 = vmatprep.subr.bf16.mxu1 %v10505_v3 }
0x14e3   : > { %10068 = vmatpush3.bf16.msra.mxu1 %v10283_v5 }
0x14e4   : > { %10069 = vmatprep.subr.bf16.mxu1 %v10505_v3 }
0x14e7   : > { %10070 = vmatpush3.bf16.msra.mxu1 %v10284_v17 }
0x14e8   : > { %10071 = vmatprep.subr.bf16.mxu1 %v10505_v3 }
0x14eb   : > { %10072 = vmatpush3.bf16.msra.mxu1 %v10285_v51 }
0x14ec   : > { %10073 = vmatprep.subr.bf16.mxu1 %v10505_v3 }
0x14ef   : > { %10074 = vmatpush3.bf16.msra.mxu1 %v10286_v37 }
0x14f0   : > { %10075 = vmatprep.subr.bf16.mxu1 %v10505_v3 }
0x14f3   : > { %10076 = vmatpush3.bf16.msra.mxu1 %v10287_v14 }
0x15a9   : > { %v8507_v6 = vpop.f32.mrb[132].mxu1 }
0x15aa   : > { %v8508_v36 = vadd.f32 %v9218_v56, %v8507_v6  ;;  %v10039_v27 = vpop.f32.mrb[133].mxu1 }
0x15ab   : > { %v8510_v20 = vpop.f32.mrb[134].mxu1  ;;  %v10289_v27 = vld [vmem:[%s12450_s16 + $0x8] sm:$0xff]  }
0x15ac   : > { %v12183_v34 = vadd.f32 %v8508_v36, %v11497_v46  ;;  %v10040_v53 = vpop.f32.mrb[135].mxu1  ;;  %v10288_v36 = vld [vmem:[%s12450_s16] sm:$0xff]  }
0x15ae   : > { %8514 = vadd.xlane.f32.xlu1 %v12183_v34 }
0x163b   : > { %v8515_v45 = vpop.xlane.xlu1 %8514 }
0x163c   : > { %v8516_v46 = vmul.f32 0.03125, %v8515_v45  ;;  %v10290_v45 = vld [vmem:[%s12450_s16 + $0x10] sm:$0xff]  }
0x163e   : > { %v8517_v22 = vsub.f32 %v12183_v34, %v8516_v46  ;;  %v10291_v46 = vld [vmem:[%s12450_s16 + $0x18] sm:$0xff]  }
0x1640   : > { %v8518_v54 = vmul.f32 %v10727_v31, %v8517_v22  ;;  %v10293_v22 = vld [vmem:[%s12450_s16 + $0x28] sm:$0xff]  }
0x1642   : > { %v8519_v59 = vmul.f32 %v8518_v54, %v8518_v54 }
0x1644   : > { %8520 = vadd.xlane.f32.xlu0 %v8519_v59  ;;  %v10295_v59 = vld [vmem:[%s12450_s16 + $0x38] sm:$0xff]  }
0x16d1   : > { %v8521_v30 = vpop.xlane.xlu0 %8520 }
0x16d2   : > { %v8522_v58 = vmul.f32 0.03125, %v8521_v30  ;;  %v8795_v30 = vrot.slane %v8774_v63, %v10769_v50 }
0x16d4   : > { %v8523_v16 = vadd.f32 1e-05, %v8522_v58 }
0x16d6   : > { %10432 = vrsqrt.f32 %v8523_v16 }
0x16e0   : > { %v10433_v55 = vpop.eup %10432 }
0x16e1   : > { %v8525_v18 = vmul.f32 %v10433_v55, %v8518_v54  ;;  %v10294_v54 = vld [vmem:[%s12450_s16 + $0x30] sm:$0xff]  }
0x16e3   : > { %v8530_v47 = vmul.f32 %v8529_v12, %v8525_v18 }
0x16e5   : > { %v8535_v23 = vadd.f32 %v8534_v2, %v8530_v47 }
0x16e7   : > { %v8536_v7 = vpack.c.bf16 %v8535_v23, %v8535_v23 }
0x16e9   : > { %10058 = vmatmul.mubr.bf16.vlgmr.msra.gmra.mrb[156].mxu0 %v8536_v7 }
0x16ea   : > { %10097 = vmatprep.mubr.msk.bf16.mxu0 %vm10506_vm0, %v10505_v3  ;;  %10082 = vmatpush3.bf16.msra.mxu0 %v10288_v36 }
0x16eb   : > { %10083 = vmatprep.subr.bf16.mxu0 %v10505_v3 }
0x16ee   : > { %10084 = vmatpush3.bf16.msra.mxu0 %v10289_v27 }
0x16ef   : > { %10085 = vmatprep.subr.bf16.mxu0 %v10505_v3 }
0x16f2   : > { %10086 = vmatpush3.bf16.msra.mxu0 %v10290_v45 }
0x16f3   : > { %10087 = vmatprep.subr.bf16.mxu0 %v10505_v3 }
0x16f6   : > { %10088 = vmatpush3.bf16.msra.mxu0 %v10291_v46 }
0x16f7   : > { %10089 = vmatprep.subr.bf16.mxu0 %v10505_v3 }
0x17bc   : > { %v8644_v1 = vpop.f32.mrb[156].mxu0 }
0x17bd   : > { %v8645_v33 = vadd.f32 %v9244_v52, %v8644_v1  ;;  %v10059_v40 = vpop.f32.mrb[157].mxu0 }
0x17be   : > { %v8647_v10 = vpop.f32.mrb[158].mxu0 }
0x17bf   : > { %v8651_v24 = vmul.f32 %v8645_v33, %v8645_v33  ;;  %v10060_v32 = vpop.f32.mrb[159].mxu0  ;;  %v8650_v21 = vmul.f32 0.5, %v8645_v33 }
0x17c1   : > { %v8652_v4 = vmul.f32 %v8651_v24, %v8645_v33 }
0x17c3   : > { %v8653_v35 = vmul.f32 0.044715, %v8652_v4 }
0x17c5   : > { %v8654_v60 = vadd.f32 %v8653_v35, %v8645_v33 }
0x17c7   : > { %v8655_v13 = vmul.f32 0.7978845, %v8654_v60 }
0x17c9   : > { %10434 = vtanh.f32 %v8655_v13 }
0x17d3   : > { %v10435_v44 = vpop.eup %10434 }
0x17d4   : > { %v8657_v9 = vadd.f32 1.0, %v10435_v44 }
0x17d6   : > { %v8658_v49 = vmul.f32 %v8657_v9, %v8650_v21 }
0x17d8   : > { %v8659_v11 = vpack.c.bf16 %v8658_v49, %v8658_v49 }
0x17da   : > { %10078 = vmatmul.mubr.bf16.vlgmr.msra.gmra.mrb[136].mxu1 %v8659_v11 }
0x18ad   : > { %v8767_v25 = vpop.f32.mrb[136].mxu1 }
0x18ae   : > { %v8768_v26 = vadd.f32 %v9270_v29, %v8767_v25  ;;  %v10079_v39 = vpop.f32.mrb[137].mxu1 }
0x18af   : > { %v8770_v15 = vpop.f32.mrb[138].mxu1 }
0x18b0   : > { %v8773_v56 = vadd.f32 %v8768_v26, %v12183_v34  ;;  %v10080_v6 = vpop.f32.mrb[139].mxu1 }
0x18b2   : > { %8775 = vadd.xlane.f32.xlu0 %v8773_v56 }
0x193f   : > { %v8776_v20 = vpop.xlane.xlu0 %8775 }
0x1940   : > { %v8777_v53 = vmul.f32 0.03125, %v8776_v20 }
0x1942   : > { %v8778_v62 = vsub.f32 %v8773_v56, %v8777_v53 }
0x1944   : > { %v8779_v34 = vmul.f32 %v10727_v31, %v8778_v62  ;;  %v10292_v31 = vld [vmem:[%s12450_s16 + $0x20] sm:$0xff]  }
0x1945   : > { %10090 = vmatpush3.bf16.msra.mxu0 %v10292_v31 }
0x1946   : > { %v8780_v41 = vmul.f32 %v8779_v34, %v8779_v34  ;;  %10091 = vmatprep.subr.bf16.mxu0 %v10505_v3 }
0x1948   : > { %8781 = vadd.xlane.f32.xlu1 %v8780_v41 }
0x1949   : > { %10092 = vmatpush3.bf16.msra.mxu0 %v10293_v22 }
0x194a   : > { %10093 = vmatprep.subr.bf16.mxu0 %v10505_v3 }
0x194d   : > { %10094 = vmatpush3.bf16.msra.mxu0 %v10294_v54 }
0x194e   : > { %10095 = vmatprep.subr.bf16.mxu0 %v10505_v3 }
0x1951   : > { %10096 = vmatpush3.bf16.msra.mxu0 %v10295_v59 }
0x19d5   : > { %v8782_v19 = vpop.xlane.xlu1 %8781 }
0x19d6   : > { %v8783_v0 = vmul.f32 0.03125, %v8782_v19 }
0x19d8   : > { %v8784_v42 = vadd.f32 1e-05, %v8783_v0 }
0x19da   : > { %10436 = vrsqrt.f32 %v8784_v42 }
0x19e4   : > { %v10437_v57 = vpop.eup %10436 }
0x19e5   : > { %v8786_v8 = vmul.f32 %v10437_v57, %v8779_v34 }
0x19e7   : > { %v8791_v58 = vmul.f32 %v8790_v61, %v8786_v8 }
0x19e9   : > { %v8796_v16 = vadd.f32 %v8795_v30, %v8791_v58 }
0x19eb   : > { %v8797_v38 = vpack.c.bf16 %v8796_v16, %v8796_v16 }
0x19ed   : > { %10098 = vmatmul.mubr.bf16.vlgmr.msra.gmra.mrb[160].mxu0 %v8797_v38 }
0x1ac0   : > { %v8896_v3 = vpop.f32.mrb[160].mxu0 }
0x1ac1   : > { %8902 = vst [vmem:[%s431_s29] sm:$0xff] %v8896_v3  ;;  %v10099_v48 = vpop.f32.mrb[161].mxu0 }
0x1ac2   : > { %v8899_v50 = vpop.f32.mrb[162].mxu0 }
0x1ac3   : > { %10453 = shalt.err (!%p10450_p3)
}
0x1ac4   : > { %s10454_s8 = scalar_lea.hbm %s12311_s26, 128  ;;  %s10458_s28 = scalar_lea.hbm %s12455_s12, 256 }
0x1ac5   : > { %p10455_p4 = scmp.ne.s32.totalorder %s12311_s26, %s10454_s8  ;;  %p10459_p9 = scmp.lt.u32.totalorder %s12311_s26, %s12455_s12 }
0x1ac6   : > { %p10460_p10 = scmp.lt.u32.totalorder %s10458_s28, %s10454_s8  ;;  %p10462_p12 = scmp.lt.u32.totalorder %s10454_s8, %s12311_s26 }
0x1ac7   : > { %p10456_p7 = pnand %p10455_p4, %p10635_p5 }
0x1ac8   : > { %p10461_p11 = por %p10460_p10, %p10459_p9 }
0x1ac9   : > { %p10457_p8 = pneg %p10456_p7 }
0x1aca   : > { %p10463_p13 = por %p10462_p12, %p10461_p11 }
0x1acc   : > { %p10464_p0 = pnand %p10463_p13, %p10457_p8 }
0x1ace   : > { %10467 = shalt.err (!%p10464_p0)
}
0x1acf   : > { %10105 = dma.vmem_to_hbm [thread:$0]  (%p10635_p5), %s12306_s13, 128, %s12311_s26, %s8904_s27   ;;  %v10100_v12 = vpop.f32.mrb[163].mxu0 }
0x1ad0 PF: > { %s12456_s1 = sld [smem:[#allocation8_spill]]  ;;  %s12457_s22 = sld [smem:[#allocation5_spill]] }
0x1ad6   : > { %p10111_p1 = scmp.ge.s32.totalorder %s12456_s1, 2  ;;  %s8929_s15 = sand.u32 1, %s12457_s22  }
0x1ad7   : > { %s8930_s11 = scalar_lea.sflag [#allocation3], %s8929_s15 }
0x1ad8   : > { %p10108_p2 = pnand %p10111_p1, %p10639_p6 }
0x1ada   : > { %10485 = dma.done.wait (!%p10108_p2), %s8930_s11, 128  }
0x1adb   : > { %10487 = vsyncadd (!%p10108_p2), %s8930_s11, 4294967168  ;;  %s12459_s28 = sld [smem:[#allocation10_spill]]  ;;  %s12460_s25 = sld [smem:[#allocation6_spill]] }
0x1adc   : > { %s12461_s26 = sld [smem:[#allocation7_spill]]  ;;  %s12462_s27 = sld [smem:[#allocation11_spill]] }
0x1ae1   : > { %p23_p3 = scmp.ge.s32.totalorder %s12459_s28, 4  }
0x1ae3   :  { %25 = sbr.rel (!%p23_p3) target bundleno = 12 (0xc), region = 115 }
0x1aea   :  { %8935 = vsyncpa [#allocation3], 1 }
0x1aeb   :  { %8937 = vsyncpa [#allocation3 + $0x1], 1 }

</bundles_post_ra>
